<compile_context>
chip_gen: v6e
topology: v6e:2x2x1
jax: 0.10.0
libtpu: 0.0.40
codegen_flags: <defaults>
</compile_context>

<pallas_src>
import jax
import jax.numpy as jnp
from jax.experimental import pallas as pl
from jax.experimental.pallas import tpu as pltpu


# --------------------------------------------------------------------------
# Kernels
# --------------------------------------------------------------------------
def _sigmoid(x):
    # Exact sigmoid (exp + divide, both off the VALU critical path).
    return 1.0 / (1.0 + jnp.exp(-x))


def fusdiffcg_kernel_narrow(xb_ref, xa_ref, w_ref, b_ref, out_ref):
    """K=128 matmul shapes — optimal for v5e's 128x128 MXUs."""
    f32 = jnp.float32
    cdt = w_ref.dtype                       # MXU input dtype (bf16)
    D = out_ref.shape[-1]

    xb = xb_ref[...].astype(f32)            # activations stay f32 for VPU math
    xa = xa_ref[...].astype(f32)

    # weight slab columns: [wc1 | wc2 | w12a(2D) | w1f(2D) | w2f(2D) | wfb]
    wc1 = w_ref[:, 0:D]
    wc2 = w_ref[:, D:2 * D]
    w12a = w_ref[:, 2 * D:4 * D]
    w1f = w_ref[:, 4 * D:6 * D]
    w2f = w_ref[:, 6 * D:8 * D]
    wfb = w_ref[:, 8 * D:9 * D]
    # bias slab columns: [bc1 | bc2 | b1 | b2 | bf]
    bc1 = b_ref[:, 0:D]
    bc2 = b_ref[:, D:2 * D]
    b1 = b_ref[:, 2 * D:3 * D]
    b2 = b_ref[:, 3 * D:4 * D]
    bf = b_ref[:, 4 * D:5 * D]

    # ContextGating (no BN): GLU(cat(x, fc(x)), 1) == x * sigmoid(fc(x)).
    s1 = _sigmoid(jnp.dot(xb.astype(cdt), wc1, preferred_element_type=f32) + bc1)
    s2 = _sigmoid(jnp.dot(xa.astype(cdt), wc2, preferred_element_type=f32) + bc2)
    g1 = xb * s1
    g2 = xa * s2
    prod = g1 * g2

    # Shared-LHS fused matmuls (N = 2D):
    #   t12 = [prod@W1a | prod@W2a], t1f = [g1@W1b | g1@Wfa], t2f = [g2@W2b | g2@Wfc]
    t12 = jnp.dot(prod.astype(cdt), w12a, preferred_element_type=f32)
    t1f = jnp.dot(g1.astype(cdt), w1f, preferred_element_type=f32)
    t2f = jnp.dot(g2.astype(cdt), w2f, preferred_element_type=f32)

    # Fold the wide f32 temporaries immediately (short live ranges before the
    # serial final matmul).
    xb_ = jax.nn.relu(t12[:, :D] + t1f[:, :D] + b1)     # fc1(cat(prod, g1))
    xa_ = jax.nn.relu(t12[:, D:] + t2f[:, :D] + b2)     # fc2(cat(prod, g2))
    f_tail = t1f[:, D:] + t2f[:, D:] + bf                # g1@Wfa + g2@Wfc + bf
    diff = (xa_ - xb_).astype(cdt)

    out = jax.nn.relu(jnp.dot(diff, wfb, preferred_element_type=f32) + f_tail)
    out_ref[...] = out.astype(out_ref.dtype)


def fusdiffcg_kernel_wide(xb_ref, xa_ref, w_ref, b_ref, out_ref):
    """Full K=256/N=256 passes — optimal for v6e/v7x's 256-wide MXU."""
    f32 = jnp.float32
    cdt = w_ref.dtype
    D = out_ref.shape[-1]

    xb = xb_ref[...].astype(f32)
    xa = xa_ref[...].astype(f32)

    # weight slab (2D rows): [wcg(2D) | wm1(2D) | wm2(2D) | wfb (rows :D)]
    wcg = w_ref[:, 0:2 * D]                 # diag(Wc1, Wc2)
    wm1 = w_ref[:, 2 * D:4 * D]             # [[W1a, 0], [W1b, Wfa]]
    wm2 = w_ref[:, 4 * D:6 * D]             # [[W2a, 0], [W2b, Wfc]]
    wfb = w_ref[0:D, 6 * D:7 * D]
    # bias slab: [bc1 | bc2 | b1 | b2 | bf]
    bcg = b_ref[:, 0:2 * D]
    b1 = b_ref[:, 2 * D:3 * D]
    b2 = b_ref[:, 3 * D:4 * D]
    bf = b_ref[:, 4 * D:5 * D]

    # Fused ContextGating: one K=256/N=256 pass for both gates.
    x_cat = jnp.concatenate([xb.astype(cdt), xa.astype(cdt)], axis=-1)
    s = _sigmoid(jnp.dot(x_cat, wcg, preferred_element_type=f32) + bcg)
    g1 = xb * s[:, :D]
    g2 = xa * s[:, D:]
    prod = g1 * g2

    # Two fully-utilized K=256/N=256 mid-layer passes.
    pg1 = jnp.concatenate([prod.astype(cdt), g1.astype(cdt)], axis=-1)
    pg2 = jnp.concatenate([prod.astype(cdt), g2.astype(cdt)], axis=-1)
    t1 = jnp.dot(pg1, wm1, preferred_element_type=f32)   # [xb_pre | g1@Wfa]
    t2 = jnp.dot(pg2, wm2, preferred_element_type=f32)   # [xa_pre | g2@Wfc]

    xb_ = jax.nn.relu(t1[:, :D] + b1)
    xa_ = jax.nn.relu(t2[:, :D] + b2)
    f_tail = t1[:, D:] + t2[:, D:] + bf
    diff = (xa_ - xb_).astype(cdt)

    out = jax.nn.relu(jnp.dot(diff, wfb, preferred_element_type=f32) + f_tail)
    out_ref[...] = out.astype(out_ref.dtype)


# --------------------------------------------------------------------------
# Parameters (PyTorch-equivalent init) and host-side weight packing
# --------------------------------------------------------------------------
def _linear_params(key, fan_in, fan_out):
    """nn.Linear default init: U(-1/sqrt(fan_in), ...); stored as (in, out)."""
    kw, kb = jax.random.split(key)
    bound = 1.0 / (fan_in ** 0.5)
    w = jax.random.uniform(kw, (fan_in, fan_out), jnp.float32, -bound, bound)
    b = jax.random.uniform(kb, (1, fan_out), jnp.float32, -bound, bound)
    return w, b


def make_params(embed_dim, seed=0):
    keys = jax.random.split(jax.random.PRNGKey(seed), 5)
    wc1, bc1 = _linear_params(keys[0], embed_dim, embed_dim)        # cg1.fc
    wc2, bc2 = _linear_params(keys[1], embed_dim, embed_dim)        # cg2.fc
    w1, b1 = _linear_params(keys[2], 2 * embed_dim, embed_dim)      # fd.fc1
    w2, b2 = _linear_params(keys[3], 2 * embed_dim, embed_dim)      # fd.fc2
    wf, bf = _linear_params(keys[4], 3 * embed_dim, embed_dim)      # fd.fc
    return dict(wc1=wc1, bc1=bc1, wc2=wc2, bc2=bc2,
                w1=w1, b1=b1, w2=w2, b2=b2, wf=wf, bf=bf)


def default_wide_mxu():
    """True on 256-wide-MXU generations (v6e/v7x), False on 128x128 MXUs."""
    try:
        kind = jax.devices()[0].device_kind.lower()
    except Exception:
        return True
    for tag in ("v2", "v3", "v4", "v5"):
        if tag in kind:
            return False
    return True


def fuse_params(p, embed_dim, compute_dtype=jnp.bfloat16, wide_mxu=None):
    """Pack all weights into one bf16 slab and all biases into one f32 slab."""
    if wide_mxu is None:
        wide_mxu = default_wide_mxu()
    D = embed_dim
    cd = compute_dtype
    f32 = jnp.float32
    w1, w2, wf = p["w1"], p["w2"], p["wf"]
    b_slab = jnp.concatenate(
        [p["bc1"], p["bc2"], p["b1"], p["b2"], p["bf"]], axis=1).astype(f32)

    if wide_mxu:
        z = jnp.zeros((D, D), f32)
        wcg = jnp.block([[p["wc1"], z], [z, p["wc2"]]])             # diag(Wc1,Wc2)
        wm1 = jnp.block([[w1[:D], z], [w1[D:], wf[:D]]])            # [[W1a,0],[W1b,Wfa]]
        wm2 = jnp.block([[w2[:D], z], [w2[D:], wf[2 * D:]]])        # [[W2a,0],[W2b,Wfc]]
        wfb = jnp.concatenate([wf[D:2 * D], jnp.zeros((D, D), f32)], axis=0)
        w_slab = jnp.concatenate([wcg, wm1, wm2, wfb], axis=1).astype(cd)   # (2D, 7D)
    else:
        w12a = jnp.concatenate([w1[:D], w2[:D]], axis=1)            # prod@[W1a|W2a]
        w1f = jnp.concatenate([w1[D:], wf[:D]], axis=1)             # g1@[W1b|Wfa]
        w2f = jnp.concatenate([w2[D:], wf[2 * D:]], axis=1)         # g2@[W2b|Wfc]
        w_slab = jnp.concatenate(
            [p["wc1"], p["wc2"], w12a, w1f, w2f, wf[D:2 * D]], axis=1).astype(cd)  # (D, 9D)

    return dict(w=w_slab, b=b_slab, wide=bool(wide_mxu))


# --------------------------------------------------------------------------
# pallas_call wrapper
# --------------------------------------------------------------------------
def fusdiffcg(x_before, x_after, fused, tile_b=1024, out_dtype=jnp.bfloat16):
    B, D = x_before.shape
    w, b = fused["w"], fused["b"]
    kernel = fusdiffcg_kernel_wide if fused["wide"] else fusdiffcg_kernel_narrow

    # Small batch: one grid step sized exactly to the batch (block dim == array
    # dim is legal even when not a multiple of 8) — no padding copies, no
    # wasted second grid step.  Large batch: ragged last tile is masked by the
    # pipelined writeback, so still no padding.
    if B <= tile_b:
        tile_b = B
    grid = (pl.cdiv(B, tile_b),)

    act_spec = pl.BlockSpec((tile_b, D), lambda i: (i, 0))
    # Constant index_map: slabs are DMA'd once and stay resident in VMEM.
    # TODO(synk): pipeline_mode=pl.Buffered(1) would single-buffer the slabs.
    w_spec = pl.BlockSpec(w.shape, lambda i: (0, 0))
    b_spec = pl.BlockSpec(b.shape, lambda i: (0, 0))

    # VMEM budget: resident slabs (+double-buffer headroom) + double-buffered
    # f32 activation tiles + output tile + f32 intermediates.  Cap at 48 MiB so
    # the request is safe on v7x's 64 MiB physical VMEM.
    in_item = jnp.dtype(x_before.dtype).itemsize
    out_item = jnp.dtype(out_dtype).itemsize
    slab_bytes = 2 * (w.size * w.dtype.itemsize + b.size * b.dtype.itemsize)
    act_bytes = 2 * 2 * tile_b * D * in_item
    out_bytes = 2 * tile_b * D * out_item
    inter_bytes = 20 * tile_b * D * 4
    needed = slab_bytes + act_bytes + out_bytes + inter_bytes
    vmem_limit = int(min(max(int(1.5 * needed), 32 << 20), 48 << 20))

    return pl.pallas_call(
        kernel,
        out_shape=jax.ShapeDtypeStruct((B, D), out_dtype),
        grid=grid,
        in_specs=[act_spec, act_spec, w_spec, b_spec],
        out_specs=pl.BlockSpec((tile_b, D), lambda i: (i, 0)),
        compiler_params=pltpu.CompilerParams(
            dimension_semantics=("parallel",),
            vmem_limit_bytes=vmem_limit),
    )(x_before, x_after, w, b)


# --------------------------------------------------------------------------
# Pure-JAX reference (mirrors the PyTorch forward; matmul inputs may be
# quantized to the kernel's MXU dtype, elementwise math stays f32).
# --------------------------------------------------------------------------
def fusdiffcg_reference(x_before, x_after, p, compute_dtype=jnp.float32):
    f32 = jnp.float32

    def lin(x, w, b):
        return jnp.dot(x.astype(compute_dtype), w.astype(compute_dtype),
                       preferred_element_type=f32) + b

    xb = x_before.astype(f32)
    xa = x_after.astype(f32)
    g1 = xb * jax.nn.sigmoid(lin(xb, p["wc1"], p["bc1"]))
    g2 = xa * jax.nn.sigmoid(lin(xa, p["wc2"], p["bc2"]))
    prod = g1 * g2
    xb_ = jax.nn.relu(lin(jnp.concatenate([prod, g1], -1), p["w1"], p["b1"]))
    xa_ = jax.nn.relu(lin(jnp.concatenate([prod, g2], -1), p["w2"], p["b2"]))
    diff = xa_ - xb_
    return jax.nn.relu(lin(jnp.concatenate([g1, diff, g2], -1), p["wf"], p["bf"]))


if __name__ == "__main__":
    B, D = 300, 128        # batch (non-multiple of 8/128), embed_dim
    kx1, kx2 = jax.random.split(jax.random.PRNGKey(0))
    x_before = jax.random.normal(kx1, (B, D), jnp.float32)
    x_after = jax.random.normal(kx2, (B, D), jnp.float32)

    raw_params = make_params(D, seed=0)
    ref = fusdiffcg_reference(x_before, x_after, raw_params,
                              compute_dtype=jnp.bfloat16)

    # Validate both MXU-shaping variants and both tiling paths
    # (single full-batch tile, and gridded launch with a ragged last tile).
    for wide in (False, True):
        fused = fuse_params(raw_params, D, jnp.bfloat16, wide_mxu=wide)
        out_single = jax.block_until_ready(
            fusdiffcg(x_before, x_after, fused, tile_b=1024))
        out_grid = jax.block_until_ready(
            fusdiffcg(x_before, x_after, fused, tile_b=128))
        for tag, out in (("single", out_single), ("grid", out_grid)):
            assert out.shape == (B, D)
            o = out.astype(jnp.float32)
            max_err = float(jnp.max(jnp.abs(o - ref)))
            assert jnp.allclose(o, ref, atol=3e-2, rtol=3e-2), \
                f"mismatch (wide={wide}, {tag}): max abs err {max_err}"

    print("KERNEL_OK")
</pallas_src>

<mosaic_0001>
module attributes {stable_mosaic.version = 11 : i64} {
  func.func @fusdiffcg_kernel_narrow(%arg0: i32, %arg1: memref<300x128xf32, #tpu.memory_space<vmem>>, %arg2: memref<300x128xf32, #tpu.memory_space<vmem>>, %arg3: memref<128x1152xbf16, #tpu.memory_space<vmem>>, %arg4: memref<1x640xf32, #tpu.memory_space<vmem>>, %arg5: memref<300x128xbf16, #tpu.memory_space<vmem>>) attributes {dimension_semantics = [#tpu.dimension_semantics<parallel>], iteration_bounds = array<i64: 1>, scalar_prefetch = 0 : i64, scratch_operands = 0 : i64, tpu.core_type = #tpu.core_type<tc>, window_params = [{transform_indices = @transform_0, window_bounds = array<i64: 300, 128>}, {transform_indices = @transform_1, window_bounds = array<i64: 300, 128>}, {pipeline_mode = #tpu.pipeline_mode<synchronous>, transform_indices = @transform_2, window_bounds = array<i64: 128, 1152>}, {pipeline_mode = #tpu.pipeline_mode<synchronous>, transform_indices = @transform_3, window_bounds = array<i64: 1, 640>}, {transform_indices = @transform_4, window_bounds = array<i64: 300, 128>}]} {
    %c0 = arith.constant 0 : index
    %c0_0 = arith.constant 0 : index
    %0 = vector.load %arg1[%c0, %c0_0] : memref<300x128xf32, #tpu.memory_space<vmem>>, vector<300x128xf32>
    %c0_1 = arith.constant 0 : index
    %c0_2 = arith.constant 0 : index
    %1 = vector.load %arg2[%c0_1, %c0_2] : memref<300x128xf32, #tpu.memory_space<vmem>>, vector<300x128xf32>
    %c0_3 = arith.constant 0 : index
    %c0_4 = arith.constant 0 : index
    %2 = vector.load %arg3[%c0_3, %c0_4] : memref<128x1152xbf16, #tpu.memory_space<vmem>>, vector<128x128xbf16>
    %c0_5 = arith.constant 0 : index
    %c128 = arith.constant 128 : index
    %3 = vector.load %arg3[%c0_5, %c128] : memref<128x1152xbf16, #tpu.memory_space<vmem>>, vector<128x128xbf16>
    %c0_6 = arith.constant 0 : index
    %c256 = arith.constant 256 : index
    %4 = vector.load %arg3[%c0_6, %c256] : memref<128x1152xbf16, #tpu.memory_space<vmem>>, vector<128x256xbf16>
    %c0_7 = arith.constant 0 : index
    %c512 = arith.constant 512 : index
    %5 = vector.load %arg3[%c0_7, %c512] : memref<128x1152xbf16, #tpu.memory_space<vmem>>, vector<128x256xbf16>
    %c0_8 = arith.constant 0 : index
    %c768 = arith.constant 768 : index
    %6 = vector.load %arg3[%c0_8, %c768] : memref<128x1152xbf16, #tpu.memory_space<vmem>>, vector<128x256xbf16>
    %c0_9 = arith.constant 0 : index
    %c1024 = arith.constant 1024 : index
    %7 = vector.load %arg3[%c0_9, %c1024] : memref<128x1152xbf16, #tpu.memory_space<vmem>>, vector<128x128xbf16>
    %c0_10 = arith.constant 0 : index
    %c0_11 = arith.constant 0 : index
    %8 = vector.load %arg4[%c0_10, %c0_11] : memref<1x640xf32, #tpu.memory_space<vmem>>, vector<1x128xf32>
    %c0_12 = arith.constant 0 : index
    %c128_13 = arith.constant 128 : index
    %9 = vector.load %arg4[%c0_12, %c128_13] : memref<1x640xf32, #tpu.memory_space<vmem>>, vector<1x128xf32>
    %c0_14 = arith.constant 0 : index
    %c256_15 = arith.constant 256 : index
    %10 = vector.load %arg4[%c0_14, %c256_15] : memref<1x640xf32, #tpu.memory_space<vmem>>, vector<1x128xf32>
    %c0_16 = arith.constant 0 : index
    %c384 = arith.constant 384 : index
    %11 = vector.load %arg4[%c0_16, %c384] : memref<1x640xf32, #tpu.memory_space<vmem>>, vector<1x128xf32>
    %c0_17 = arith.constant 0 : index
    %c512_18 = arith.constant 512 : index
    %12 = vector.load %arg4[%c0_17, %c512_18] : memref<1x640xf32, #tpu.memory_space<vmem>>, vector<1x128xf32>
    %13 = arith.truncf %0 : vector<300x128xf32> to vector<300x128xbf16>
    %cst = arith.constant dense<0.000000e+00> : vector<300x128xf32>
    %14 = tpu.matmul %13, %2, %cst {dimension_numbers = #tpu.dot_dimension_numbers<[1], [0], [0], [1], [0, 0, 1, 1], [], []>} : vector<300x128xbf16>, vector<128x128xbf16>, vector<300x128xf32> -> vector<300x128xf32>
    %15 = vector.broadcast %8 : vector<1x128xf32> to vector<300x128xf32>
    %16 = arith.addf %14, %15 : vector<300x128xf32>
    %cst_19 = arith.constant 0.000000e+00 : f32
    %17 = vector.broadcast %cst_19 : f32 to vector<300x128xf32>
    %18 = arith.subf %17, %16 : vector<300x128xf32>
    %19 = math.exp %18 : vector<300x128xf32>
    %cst_20 = arith.constant 1.000000e+00 : f32
    %20 = vector.broadcast %cst_20 : f32 to vector<300x128xf32>
    %21 = arith.addf %20, %19 : vector<300x128xf32>
    %cst_21 = arith.constant 1.000000e+00 : f32
    %22 = vector.broadcast %cst_21 : f32 to vector<300x128xf32>
    %23 = arith.divf %22, %21 : vector<300x128xf32>
    %24 = arith.truncf %1 : vector<300x128xf32> to vector<300x128xbf16>
    %cst_22 = arith.constant dense<0.000000e+00> : vector<300x128xf32>
    %25 = tpu.matmul %24, %3, %cst_22 {dimension_numbers = #tpu.dot_dimension_numbers<[1], [0], [0], [1], [0, 0, 1, 1], [], []>} : vector<300x128xbf16>, vector<128x128xbf16>, vector<300x128xf32> -> vector<300x128xf32>
    %26 = vector.broadcast %9 : vector<1x128xf32> to vector<300x128xf32>
    %27 = arith.addf %25, %26 : vector<300x128xf32>
    %cst_23 = arith.constant 0.000000e+00 : f32
    %28 = vector.broadcast %cst_23 : f32 to vector<300x128xf32>
    %29 = arith.subf %28, %27 : vector<300x128xf32>
    %30 = math.exp %29 : vector<300x128xf32>
    %cst_24 = arith.constant 1.000000e+00 : f32
    %31 = vector.broadcast %cst_24 : f32 to vector<300x128xf32>
    %32 = arith.addf %31, %30 : vector<300x128xf32>
    %cst_25 = arith.constant 1.000000e+00 : f32
    %33 = vector.broadcast %cst_25 : f32 to vector<300x128xf32>
    %34 = arith.divf %33, %32 : vector<300x128xf32>
    %35 = arith.mulf %0, %23 : vector<300x128xf32>
    %36 = arith.mulf %1, %34 : vector<300x128xf32>
    %37 = arith.mulf %35, %36 : vector<300x128xf32>
    %38 = arith.truncf %37 : vector<300x128xf32> to vector<300x128xbf16>
    %cst_26 = arith.constant dense<0.000000e+00> : vector<300x256xf32>
    %39 = tpu.matmul %38, %4, %cst_26 {dimension_numbers = #tpu.dot_dimension_numbers<[1], [0], [0], [1], [0, 0, 1, 1], [], []>} : vector<300x128xbf16>, vector<128x256xbf16>, vector<300x256xf32> -> vector<300x256xf32>
    %40 = arith.truncf %35 : vector<300x128xf32> to vector<300x128xbf16>
    %cst_27 = arith.constant dense<0.000000e+00> : vector<300x256xf32>
    %41 = tpu.matmul %40, %5, %cst_27 {dimension_numbers = #tpu.dot_dimension_numbers<[1], [0], [0], [1], [0, 0, 1, 1], [], []>} : vector<300x128xbf16>, vector<128x256xbf16>, vector<300x256xf32> -> vector<300x256xf32>
    %42 = arith.truncf %36 : vector<300x128xf32> to vector<300x128xbf16>
    %cst_28 = arith.constant dense<0.000000e+00> : vector<300x256xf32>
    %43 = tpu.matmul %42, %6, %cst_28 {dimension_numbers = #tpu.dot_dimension_numbers<[1], [0], [0], [1], [0, 0, 1, 1], [], []>} : vector<300x128xbf16>, vector<128x256xbf16>, vector<300x256xf32> -> vector<300x256xf32>
    %44 = vector.extract_strided_slice %39 {offsets = [0, 0], sizes = [300, 128], strides = [1, 1]} : vector<300x256xf32> to vector<300x128xf32>
    %45 = vector.extract_strided_slice %41 {offsets = [0, 0], sizes = [300, 128], strides = [1, 1]} : vector<300x256xf32> to vector<300x128xf32>
    %46 = arith.addf %44, %45 : vector<300x128xf32>
    %47 = vector.broadcast %10 : vector<1x128xf32> to vector<300x128xf32>
    %48 = arith.addf %46, %47 : vector<300x128xf32>
    %cst_29 = arith.constant 0.000000e+00 : f32
    %49 = vector.broadcast %cst_29 : f32 to vector<300x128xf32>
    %50 = arith.maximumf %48, %49 : vector<300x128xf32>
    %51 = vector.extract_strided_slice %39 {offsets = [0, 128], sizes = [300, 128], strides = [1, 1]} : vector<300x256xf32> to vector<300x128xf32>
    %52 = vector.extract_strided_slice %43 {offsets = [0, 0], sizes = [300, 128], strides = [1, 1]} : vector<300x256xf32> to vector<300x128xf32>
    %53 = arith.addf %51, %52 : vector<300x128xf32>
    %54 = vector.broadcast %11 : vector<1x128xf32> to vector<300x128xf32>
    %55 = arith.addf %53, %54 : vector<300x128xf32>
    %cst_30 = arith.constant 0.000000e+00 : f32
    %56 = vector.broadcast %cst_30 : f32 to vector<300x128xf32>
    %57 = arith.maximumf %55, %56 : vector<300x128xf32>
    %58 = vector.extract_strided_slice %41 {offsets = [0, 128], sizes = [300, 128], strides = [1, 1]} : vector<300x256xf32> to vector<300x128xf32>
    %59 = vector.extract_strided_slice %43 {offsets = [0, 128], sizes = [300, 128], strides = [1, 1]} : vector<300x256xf32> to vector<300x128xf32>
    %60 = arith.addf %58, %59 : vector<300x128xf32>
    %61 = vector.broadcast %12 : vector<1x128xf32> to vector<300x128xf32>
    %62 = arith.addf %60, %61 : vector<300x128xf32>
    %63 = arith.subf %57, %50 : vector<300x128xf32>
    %64 = arith.truncf %63 : vector<300x128xf32> to vector<300x128xbf16>
    %cst_31 = arith.constant dense<0.000000e+00> : vector<300x128xf32>
    %65 = tpu.matmul %64, %7, %cst_31 {dimension_numbers = #tpu.dot_dimension_numbers<[1], [0], [0], [1], [0, 0, 1, 1], [], []>} : vector<300x128xbf16>, vector<128x128xbf16>, vector<300x128xf32> -> vector<300x128xf32>
    %66 = arith.addf %65, %62 : vector<300x128xf32>
    %cst_32 = arith.constant 0.000000e+00 : f32
    %67 = vector.broadcast %cst_32 : f32 to vector<300x128xf32>
    %68 = arith.maximumf %66, %67 : vector<300x128xf32>
    %69 = arith.truncf %68 : vector<300x128xf32> to vector<300x128xbf16>
    %c0_33 = arith.constant 0 : index
    %c0_34 = arith.constant 0 : index
    %70 = vector.load %arg5[%c0_33, %c0_34] : memref<300x128xbf16, #tpu.memory_space<vmem>>, vector<300x128xbf16>
    tpu.vector_store %arg5[%c0_33, %c0_34], %69 {strides = array<i32>} : memref<300x128xbf16, #tpu.memory_space<vmem>>, vector<300x128xbf16>,
    return
  }
  func.func @transform_0(%arg0: i32) -> (i32, i32) {
    %c0_i32 = arith.constant 0 : i32
    %c0_i32_0 = arith.constant 0 : i32
    return %arg0, %c0_i32 : i32, i32
  }
  func.func @transform_1(%arg0: i32) -> (i32, i32) {
    %c0_i32 = arith.constant 0 : i32
    %c0_i32_0 = arith.constant 0 : i32
    return %arg0, %c0_i32 : i32, i32
  }
  func.func @transform_2(%arg0: i32) -> (i32, i32) {
    %c0_i32 = arith.constant 0 : i32
    %c0_i32_0 = arith.constant 0 : i32
    %c0_i32_1 = arith.constant 0 : i32
    return %c0_i32, %c0_i32_0 : i32, i32
  }
  func.func @transform_3(%arg0: i32) -> (i32, i32) {
    %c0_i32 = arith.constant 0 : i32
    %c0_i32_0 = arith.constant 0 : i32
    %c0_i32_1 = arith.constant 0 : i32
    return %c0_i32, %c0_i32_0 : i32, i32
  }
  func.func @transform_4(%arg0: i32) -> (i32, i32) {
    %c0_i32 = arith.constant 0 : i32
    %c0_i32_0 = arith.constant 0 : i32
    return %arg0, %c0_i32 : i32, i32
  }
}

</mosaic_0001>

<bundles_post_ra>
// kernel: tpu_custom_call.1
= control target key start
LH: loop header
LB: loop body
LE: loop exit
PB: predicated region body
PF: predicated region fallthrough
CT: control target
= control target key end

     0   :  { %9 = vsyncpa [#allocation3], 0  ;;  %s5606_s0 = inlined_call_operand.hbm [shape: f32[300,128], index: 0, kind: input, shape index: {}]   ;;  %s5607_s1 = inlined_call_operand.hbm [shape: f32[300,128], index: 1, kind: input, shape index: {}]   ;;  %s5608_s2 = inlined_call_operand.hbm [shape: bf16[128,1152], index: 2, kind: input, shape index: {}]   ;;  %s5609_s3 = inlined_call_operand.vmem [shape: f32[1,640], index: 3, kind: input, shape index: {}]   ;;  %s5610_s4 = inlined_call_operand.hbm [shape: bf16[300,128], index: 4, kind: output, shape index: {}]  }
   0x1   :  { %10 = vsyncpa [#allocation6], 0 }
   0x2   :  { %11 = vsyncpa [#allocation4], 0  ;;  %s4335_s15 = smov [#allocation5]   ;;  %s4336_s17 = smov [#allocation2]  }
   0x3   :  { %s29_s16 = sshll.u32 %s4335_s15, 4  ;;  %s17_s18 = sshll.u32 %s4336_s17, 4  ;;  %s30_s16 = int_to_ptr.vmem [resolvable:$true] %s29_s16  ;;  %s18_s18 = int_to_ptr.vmem [resolvable:$true] %s17_s18 }
   0x4   :  { %s4257_s19 = scalar_lea.vmem %s30_s16, 4864  ;;  %p4262_p1 = scmp.lt.s32.totalorder %s30_s16, %s30_s16 }
   0x5   :  { %p4258_p0 = scmp.ne.s32.totalorder %s30_s16, %s4257_s19  ;;  %p4263_p2 = scmp.lt.s32.totalorder %s4257_s19, %s4257_s19 }
   0x7   :  { %p4264_p3 = por %p4263_p2, %p4262_p1 }
   0x9   :  { %p4265_p4 = pnand %p4264_p3, %p4258_p0 }
   0xb   :  { %4268 = shalt.err (!%p4265_p4)
}
   0xc   :  { %s4337_s20 = smov 128   ;;  %s4338_s21 = smov 8  }
   0xd   :  { %35 = dma.hbm_to_vmem [thread:$0]  %s5607_s1, 4864, %s30_s16, [#allocation6], %s4337_s20, %s4337_s20, %s4338_s21  }
   0xe   :  { %s4277_s24 = scalar_lea.vmem %s18_s18, 4864  ;;  %p4282_p6 = scmp.lt.s32.totalorder %s18_s18, %s18_s18 }
   0xf   :  { %p4278_p5 = scmp.ne.s32.totalorder %s18_s18, %s4277_s24  ;;  %p4283_p7 = scmp.lt.s32.totalorder %s4277_s24, %s4277_s24 }
  0x11   :  { %p4284_p8 = por %p4283_p7, %p4282_p6 }
  0x13   :  { %p4285_p9 = pnand %p4284_p8, %p4278_p5 }
  0x15   :  { %4288 = shalt.err (!%p4285_p9)
}
  0x16   :  { %23 = dma.hbm_to_vmem [thread:$0]  %s5606_s0, 4864, %s18_s18, [#allocation3], %s4337_s20, %s4337_s20, %s4338_s21  }
  0x17   :  { %s4339_s27 = smov [#allocation7]  }
  0x18   :  { %s41_s28 = sshll.u32 %s4339_s27, 4  ;;  %s42_s28 = int_to_ptr.vmem [resolvable:$true] %s41_s28 }
  0x19   :  { %s4297_s29 = scalar_lea.vmem %s42_s28, 9216  ;;  %p4302_p11 = scmp.lt.s32.totalorder %s42_s28, %s42_s28 }
  0x1a   :  { %p4298_p10 = scmp.ne.s32.totalorder %s42_s28, %s4297_s29  ;;  %p4303_p12 = scmp.lt.s32.totalorder %s4297_s29, %s4297_s29 }
  0x1c   :  { %p4304_p13 = por %p4303_p12, %p4302_p11 }
  0x1e   :  { %p4305_p0 = pnand %p4304_p13, %p4298_p10 }
  0x20   :  { %4308 = shalt.err (!%p4305_p0)
}
  0x21   :  { %s4340_s1 = smov 576   ;;  %s4341_s30 = smov 36  }
  0x22   :  { %47 = dma.hbm_to_vmem [thread:$0]  %s5608_s2, 9216, %s42_s28, [#allocation6], %s4340_s1, %s4340_s1, %s4341_s30  }
  0x23   :  { %4329 = dma.done.wait [#allocation3], 4864  }
  0x24   :  { %4330 = vsyncadd [#allocation3], 4294962432 }
  0x25   :  { %4331 = dma.done.wait [#allocation6], 14080  }
  0x26   :  { %4332 = vsyncadd [#allocation6], 4294953216  ;;  %v5611_v0 = vmov 0.0   ;;  %vm4343_vm0 = vmmov 0   ;;  %v3777_v1 = vld [vmem:[#allocation7 + $0x1f8] ss:$36 sps:$4 sm:$0xff]  }
  0x27   :  { %3488 = vmatprep.subr.bf16.mxu0 %v5611_v0  ;;  %3580 = vmatprep.subr.bf16.mxu1 %v5611_v0  ;;  %v3778_v2 = vld [vmem:[#allocation7 + $0x1fc] ss:$36 sps:$4 sm:$0xff]   ;;  %v3779_v3 = vld [vmem:[#allocation7 + $0x1b0] ss:$36 sps:$4 sm:$0xff]   ;;  %v3781_v5 = vld [vmem:[#allocation7 + $0x168] ss:$36 sps:$4 sm:$0xff]  }
  0x28   :  { %3504 = vmatprep.mubr.msk.bf16.mxu0 %vm4343_vm0, %v5611_v0  ;;  %3596 = vmatprep.mubr.msk.bf16.mxu1 %vm4343_vm0, %v5611_v0  ;;  %v3780_v4 = vld [vmem:[#allocation7 + $0x1b4] ss:$36 sps:$4 sm:$0xff]   ;;  %v3782_v6 = vld [vmem:[#allocation7 + $0x16c] ss:$36 sps:$4 sm:$0xff]   ;;  %v3783_v7 = vld [vmem:[#allocation7 + $0x120] ss:$36 sps:$4 sm:$0xff]  }
  0x29   :  { %3489 = vmatpush3.bf16.msra.mxu0 %v3777_v1  ;;  %3581 = vmatpush3.bf16.msra.mxu1 %v3778_v2  ;;  %v3784_v8 = vld [vmem:[#allocation7 + $0x124] ss:$36 sps:$4 sm:$0xff]   ;;  %v3785_v9 = vld [vmem:[#allocation7 + $0xd8] ss:$36 sps:$4 sm:$0xff]   ;;  %v3787_v11 = vld [vmem:[#allocation7 + $0x90] ss:$36 sps:$4 sm:$0xff]  }
  0x2a   :  { %3490 = vmatprep.subr.bf16.mxu0 %v5611_v0  ;;  %3582 = vmatprep.subr.bf16.mxu1 %v5611_v0  ;;  %v3786_v10 = vld [vmem:[#allocation7 + $0xdc] ss:$36 sps:$4 sm:$0xff]   ;;  %v3788_v12 = vld [vmem:[#allocation7 + $0x94] ss:$36 sps:$4 sm:$0xff]   ;;  %v3789_v13 = vld [vmem:[#allocation7 + $0x48] ss:$36 sps:$4 sm:$0xff]  }
  0x2b   :  { %v3790_v14 = vld [vmem:[#allocation7 + $0x4c] ss:$36 sps:$4 sm:$0xff]   ;;  %v3791_v15 = vld [vmem:[#allocation7] ss:$36 sps:$4 sm:$0xff]   ;;  %v4407_v20 = vld [vmem:[#allocation5 + $0x8] sm:$0xff] }
  0x2c   :  { %v4400_v16 = vld [vmem:[#allocation2] sm:$0xff]  ;;  %v4402_v17 = vld [vmem:[#allocation2 + $0x8] sm:$0xff]  ;;  %v4405_v19 = vld [vmem:[#allocation5] sm:$0xff] }
  0x2d   :  { %3491 = vmatpush3.bf16.msra.mxu0 %v3779_v3  ;;  %3583 = vmatpush3.bf16.msra.mxu1 %v3780_v4  ;;  %v3792_v18 = vld [vmem:[#allocation7 + $0x4] ss:$36 sps:$4 sm:$0xff]   ;;  %v237_v21 = vpack.c.bf16 %v4402_v17, %v4400_v16  ;;  %v723_v22 = vpack.c.bf16 %v4407_v20, %v4405_v19  ;;  %v4416_v25 = vld [vmem:[#allocation2 + $0x10] sm:$0xff]  ;;  %v63_v26 = vld [vmem:[#allocation2 + $0x18] sm:$0xff] }
  0x2e   :  { %3492 = vmatprep.subr.bf16.mxu0 %v5611_v0  ;;  %3584 = vmatprep.subr.bf16.mxu1 %v5611_v0  ;;  %v3793_v23 = vld [vmem:[#allocation7 + $0x200] ss:$36 sps:$4 sm:$0xff]   ;;  %v101_v28 = vld [vmem:[#allocation5 + $0x18] sm:$0xff]  ;;  %v3796_v29 = vld [vmem:[#allocation7 + $0x1b8] ss:$36 sps:$4 sm:$0xff]   ;;  %v238_v30 = vpack.c.bf16 %v63_v26, %v4416_v25 }
  0x2f   :  { %v3795_v24 = vld [vmem:[#allocation7 + $0x204] ss:$36 sps:$4 sm:$0xff]   ;;  %v3798_v31 = vld [vmem:[#allocation7 + $0x1bc] ss:$36 sps:$4 sm:$0xff]   ;;  %v3799_v33 = vld [vmem:[#allocation7 + $0x170] ss:$36 sps:$4 sm:$0xff]  }
  0x30   :  { %v4420_v27 = vld [vmem:[#allocation5 + $0x10] sm:$0xff]  ;;  %v3801_v34 = vld [vmem:[#allocation7 + $0x174] ss:$36 sps:$4 sm:$0xff]   ;;  %v65_v36 = vld [vmem:[#allocation2 + $0x28] sm:$0xff] }
  0x31   :  { %3493 = vmatpush3.bf16.msra.mxu0 %v3781_v5  ;;  %3585 = vmatpush3.bf16.msra.mxu1 %v3782_v6  ;;  %v724_v32 = vpack.c.bf16 %v101_v28, %v4420_v27  ;;  %v64_v35 = vld [vmem:[#allocation2 + $0x20] sm:$0xff]  ;;  %v102_v37 = vld [vmem:[#allocation5 + $0x20] sm:$0xff]  ;;  %v103_v38 = vld [vmem:[#allocation5 + $0x28] sm:$0xff] }
  0x32   :  { %3494 = vmatprep.subr.bf16.mxu0 %v5611_v0  ;;  %3586 = vmatprep.subr.bf16.mxu1 %v5611_v0  ;;  %v3802_v39 = vld [vmem:[#allocation7 + $0x128] ss:$36 sps:$4 sm:$0xff]   ;;  %v239_v40 = vpack.c.bf16 %v65_v36, %v64_v35  ;;  %v725_v42 = vpack.c.bf16 %v103_v38, %v102_v37  ;;  %v66_v43 = vld [vmem:[#allocation2 + $0x30] sm:$0xff]  ;;  %v67_v44 = vld [vmem:[#allocation2 + $0x38] sm:$0xff] }
  0x33   :  { %v3804_v41 = vld [vmem:[#allocation7 + $0x12c] ss:$36 sps:$4 sm:$0xff]   ;;  %v104_v45 = vld [vmem:[#allocation5 + $0x30] sm:$0xff]  ;;  %v240_v50 = vpack.c.bf16 %v67_v44, %v66_v43  ;;  %v3808_v51 = vld [vmem:[#allocation7 + $0x98] ss:$36 sps:$4 sm:$0xff]  }
  0x34   :  { %v3805_v46 = vld [vmem:[#allocation7 + $0xe0] ss:$36 sps:$4 sm:$0xff]   ;;  %v105_v48 = vld [vmem:[#allocation5 + $0x38] sm:$0xff]  ;;  %v106_v55 = vld [vmem:[#allocation5 + $0x40] sm:$0xff] }
  0x35   :  { %3495 = vmatpush3.bf16.msra.mxu0 %v3783_v7  ;;  %3587 = vmatpush3.bf16.msra.mxu1 %v3784_v8  ;;  %v3807_v47 = vld [vmem:[#allocation7 + $0xe4] ss:$36 sps:$4 sm:$0xff]   ;;  %v3810_v49 = vld [vmem:[#allocation7 + $0x9c] ss:$36 sps:$4 sm:$0xff]   ;;  %v726_v52 = vpack.c.bf16 %v105_v48, %v104_v45  ;;  %v70_v59 = vld [vmem:[#allocation2 + $0x50] sm:$0xff] }
  0x36   :  { %3496 = vmatprep.subr.bf16.mxu0 %v5611_v0  ;;  %3588 = vmatprep.subr.bf16.mxu1 %v5611_v0  ;;  %v68_v53 = vld [vmem:[#allocation2 + $0x40] sm:$0xff]  ;;  %v69_v54 = vld [vmem:[#allocation2 + $0x48] sm:$0xff]  ;;  %v107_v56 = vld [vmem:[#allocation5 + $0x48] sm:$0xff] }
  0x37   :  { %v241_v57 = vpack.c.bf16 %v69_v54, %v68_v53  ;;  %v727_v58 = vpack.c.bf16 %v107_v56, %v106_v55  ;;  %v71_v60 = vld [vmem:[#allocation2 + $0x58] sm:$0xff]  ;;  %v108_v61 = vld [vmem:[#allocation5 + $0x50] sm:$0xff]  ;;  %v109_v62 = vld [vmem:[#allocation5 + $0x58] sm:$0xff] }
  0x38   :  { %v242_v63 = vpack.c.bf16 %v71_v60, %v70_v59  ;;  %v728_v1 = vpack.c.bf16 %v109_v62, %v108_v61  ;;  %v72_v2 = vld [vmem:[#allocation2 + $0x60] sm:$0xff]  ;;  %v73_v3 = vld [vmem:[#allocation2 + $0x68] sm:$0xff]  ;;  %v110_v4 = vld [vmem:[#allocation5 + $0x60] sm:$0xff] }
  0x39   :  { %3497 = vmatpush3.bf16.msra.mxu0 %v3785_v9  ;;  %3589 = vmatpush3.bf16.msra.mxu1 %v3786_v10  ;;  %v111_v5 = vld [vmem:[#allocation5 + $0x68] sm:$0xff]  ;;  %v243_v6 = vpack.c.bf16 %v73_v3, %v72_v2  ;;  %v74_v8 = vld [vmem:[#allocation2 + $0x70] sm:$0xff]  ;;  %v112_v10 = vld [vmem:[#allocation5 + $0x70] sm:$0xff] }
  0x3a   :  { %3498 = vmatprep.subr.bf16.mxu0 %v5611_v0  ;;  %3590 = vmatprep.subr.bf16.mxu1 %v5611_v0  ;;  %v729_v7 = vpack.c.bf16 %v111_v5, %v110_v4  ;;  %v75_v9 = vld [vmem:[#allocation2 + $0x78] sm:$0xff]  ;;  %v116_v28 = vld [vmem:[#allocation5 + $0x90] sm:$0xff]  ;;  %v3816_v37 = vld [vmem:[#allocation7 + $0x20c] ss:$36 sps:$4 sm:$0xff]  }
  0x3b   :  { %v79_v26 = vld [vmem:[#allocation2 + $0x98] sm:$0xff]  ;;  %v121_v43 = vld [vmem:[#allocation5 + $0xb8] sm:$0xff]  ;;  %v3817_v45 = vld [vmem:[#allocation7 + $0x1c0] ss:$36 sps:$4 sm:$0xff]  }
  0x3c   :  { %v119_v35 = vld [vmem:[#allocation5 + $0xa8] sm:$0xff]  ;;  %v3819_v44 = vld [vmem:[#allocation7 + $0x1c4] ss:$36 sps:$4 sm:$0xff]   ;;  %v3823_v55 = vld [vmem:[#allocation7 + $0x130] ss:$36 sps:$4 sm:$0xff]  }
  0x3d   :  { %3499 = vmatpush3.bf16.msra.mxu0 %v3787_v11  ;;  %3591 = vmatpush3.bf16.msra.mxu1 %v3788_v12  ;;  %v113_v11 = vld [vmem:[#allocation5 + $0x78] sm:$0xff]  ;;  %v244_v12 = vpack.c.bf16 %v75_v9, %v74_v8  ;;  %v3822_v48 = vld [vmem:[#allocation7 + $0x17c] ss:$36 sps:$4 sm:$0xff]   ;;  %v3825_v54 = vld [vmem:[#allocation7 + $0x134] ss:$36 sps:$4 sm:$0xff]  }
  0x3e   :  { %3500 = vmatprep.subr.bf16.mxu0 %v5611_v0  ;;  %3592 = vmatprep.subr.bf16.mxu1 %v5611_v0  ;;  %v123_v53 = vld [vmem:[#allocation5 + $0xc8] sm:$0xff]  ;;  %v3829_v59 = vld [vmem:[#allocation7 + $0xe8] ss:$36 sps:$4 sm:$0xff]   ;;  %v3811_v60 = vld [vmem:[#allocation7 + $0x50] ss:$36 sps:$4 sm:$0xff]  }
  0x3f   :  { %v3813_v61 = vld [vmem:[#allocation7 + $0x54] ss:$36 sps:$4 sm:$0xff]   ;;  %v125_v2 = vld [vmem:[#allocation5 + $0xd8] sm:$0xff]  ;;  %v3832_v4 = vld [vmem:[#allocation7 + $0xa0] ss:$36 sps:$4 sm:$0xff]  }
  0x40   :  { %v86_v62 = vld [vmem:[#allocation2 + $0xd0] sm:$0xff]  ;;  %v3834_v3 = vld [vmem:[#allocation7 + $0xa4] ss:$36 sps:$4 sm:$0xff]   ;;  %v3835_v8 = vld [vmem:[#allocation7 + $0x58] ss:$36 sps:$4 sm:$0xff]  }
  0x41   :  { %3501 = vmatpush3.bf16.msra.mxu0 %v3789_v13  ;;  %3593 = vmatpush3.bf16.msra.mxu1 %v3790_v14  ;;  %v730_v13 = vpack.c.bf16 %v113_v11, %v112_v10  ;;  %v76_v14 = vld [vmem:[#allocation2 + $0x80] sm:$0xff]  ;;  %v89_v10 = vld [vmem:[#allocation2 + $0xe8] sm:$0xff]  ;;  %v126_v11 = vld [vmem:[#allocation5 + $0xe0] sm:$0xff] }
  0x42   :  { %3502 = vmatprep.subr.bf16.mxu0 %v5611_v0  ;;  %3594 = vmatprep.subr.bf16.mxu1 %v5611_v0  ;;  %v88_v9 = vld [vmem:[#allocation2 + $0xe0] sm:$0xff] }
  0x45   :  { %3503 = vmatpush3.bf16.msra.mxu0 %v3791_v15  ;;  %3595 = vmatpush3.bf16.msra.mxu1 %v3792_v18  ;;  %v77_v15 = vld [vmem:[#allocation2 + $0x88] sm:$0xff]  ;;  %v114_v18 = vld [vmem:[#allocation5 + $0x80] sm:$0xff] }
  0x46   :  { %1422 = vmatprep.subr.bf16.mxu0 %v3795_v24  ;;  %v78_v24 = vld [vmem:[#allocation2 + $0x90] sm:$0xff]  ;;  %1744 = vmatprep.subr.bf16.mxu1 %v3816_v37 }
  0x47   :  { %v94_v37 = vld [vmem:[#allocation2 + $0x110] sm:$0xff] }
  0x48   :  { %3505 = vmatmul.mubr.bf16.vlgmr.msra.gmra.mxu0 %v237_v21  ;;  %3597 = vmatmul.mubr.bf16.vlgmr.msra.gmra.mxu1 %v723_v22  ;;  %v115_v21 = vld [vmem:[#allocation5 + $0x88] sm:$0xff]  ;;  %v245_v22 = vpack.c.bf16 %v77_v15, %v76_v14  ;;  %v3838_v14 = vld [vmem:[#allocation7 + $0x10] ss:$36 sps:$4 sm:$0xff]   ;;  %v251_v15 = vpack.c.bf16 %v89_v10, %v88_v9 }
  0x49   :  { %3508 = vmatprep.mubr.msk.bf16.mxu0 %vm4343_vm0, %v5611_v0  ;;  %3600 = vmatprep.mubr.msk.bf16.mxu1 %vm4343_vm0, %v5611_v0 }
  0x4a   :  { %1423 = vmatpush1.bf16.msra.mxu0 %v3793_v23  ;;  %v731_v23 = vpack.c.bf16 %v115_v21, %v114_v18  ;;  %v3828_v18 = vld [vmem:[#allocation7 + $0xc] ss:$36 sps:$4 sm:$0xff]  }
  0x4b   :  { %1424 = vmatprep.subr.bf16.mxu0 %v3798_v31 }
  0x4e   :  { %1425 = vmatpush1.bf16.msra.mxu0 %v3796_v29  ;;  %v117_v29 = vld [vmem:[#allocation5 + $0x98] sm:$0xff] }
  0x4f   :  { %1426 = vmatprep.subr.bf16.mxu0 %v3801_v34  ;;  %v732_v31 = vpack.c.bf16 %v117_v29, %v116_v28  ;;  %v118_v34 = vld [vmem:[#allocation5 + $0xa0] sm:$0xff]  ;;  %v129_v28 = vld [vmem:[#allocation5 + $0xf8] sm:$0xff] }
  0x50   :  { %3509 = vmatmul.mubr.bf16.gmra.mxu0 %v238_v30  ;;  %3601 = vmatmul.mubr.bf16.gmra.mxu1 %v724_v32  ;;  %v246_v30 = vpack.c.bf16 %v79_v26, %v78_v24  ;;  %v80_v32 = vld [vmem:[#allocation2 + $0xa0] sm:$0xff]  ;;  %v733_v38 = vpack.c.bf16 %v119_v35, %v118_v34  ;;  %v91_v24 = vld [vmem:[#allocation2 + $0xf8] sm:$0xff] }
  0x51   :  { %3512 = vmatprep.mubr.msk.bf16.mxu0 %vm4343_vm0, %v5611_v0  ;;  %3604 = vmatprep.mubr.msk.bf16.mxu1 %vm4343_vm0, %v5611_v0  ;;  %v128_v26 = vld [vmem:[#allocation5 + $0xf0] sm:$0xff]  ;;  %v131_v34 = vld [vmem:[#allocation5 + $0x108] sm:$0xff] }
  0x52   :  { %1427 = vmatpush1.bf16.msra.mxu0 %v3799_v33  ;;  %v81_v33 = vld [vmem:[#allocation2 + $0xa8] sm:$0xff] }
  0x53   :  { %1428 = vmatprep.subr.bf16.mxu0 %v3804_v41  ;;  %v247_v36 = vpack.c.bf16 %v81_v33, %v80_v32  ;;  %v83_v41 = vld [vmem:[#allocation2 + $0xb8] sm:$0xff]  ;;  %v93_v32 = vld [vmem:[#allocation2 + $0x108] sm:$0xff]  ;;  %v130_v33 = vld [vmem:[#allocation5 + $0x100] sm:$0xff] }
  0x56   :  { %1429 = vmatpush1.bf16.msra.mxu0 %v3802_v39  ;;  %v3814_v39 = vld [vmem:[#allocation7 + $0x208] ss:$36 sps:$4 sm:$0xff]  }
  0x57   :  { %1430 = vmatprep.subr.bf16.mxu0 %v3807_v47  ;;  %1745 = vmatpush1.bf16.msra.mxu1 %v3814_v39  ;;  %v132_v39 = vld [vmem:[#allocation5 + $0x110] sm:$0xff] }
  0x58   :  { %3513 = vmatmul.mubr.bf16.gmra.mxu0 %v239_v40  ;;  %3605 = vmatmul.mubr.bf16.gmra.mxu1 %v725_v42  ;;  %v82_v40 = vld [vmem:[#allocation2 + $0xb0] sm:$0xff]  ;;  %v120_v42 = vld [vmem:[#allocation5 + $0xb0] sm:$0xff] }
  0x59   :  { %3516 = vmatprep.mubr.msk.bf16.mxu0 %vm4343_vm0, %v5611_v0  ;;  %3608 = vmatprep.mubr.msk.bf16.mxu1 %vm4343_vm0, %v5611_v0  ;;  %v734_v47 = vpack.c.bf16 %v121_v43, %v120_v42  ;;  %v3843_v42 = vld [vmem:[#allocation7 + $0x214] ss:$36 sps:$4 sm:$0xff]  }
  0x5a   :  { %1431 = vmatpush1.bf16.msra.mxu0 %v3805_v46  ;;  %v248_v46 = vpack.c.bf16 %v83_v41, %v82_v40  ;;  %1746 = vmatprep.subr.bf16.mxu1 %v3819_v44  ;;  %v133_v40 = vld [vmem:[#allocation5 + $0x118] sm:$0xff]  ;;  %v96_v44 = vld [vmem:[#allocation2 + $0x120] sm:$0xff] }
  0x5b   :  { %1432 = vmatprep.subr.bf16.mxu0 %v3810_v49  ;;  %1747 = vmatpush1.bf16.msra.mxu1 %v3817_v45  ;;  %v3820_v49 = vld [vmem:[#allocation7 + $0x178] ss:$36 sps:$4 sm:$0xff]   ;;  %v740_v43 = vpack.c.bf16 %v133_v40, %v132_v39  ;;  %v97_v45 = vld [vmem:[#allocation2 + $0x128] sm:$0xf] }
  0x5c   :  { %1748 = vmatprep.subr.bf16.mxu1 %v3822_v48  ;;  %v255_v48 = vpack.c.bf16 %v97_v45, %v96_v44 }
  0x5e   :  { %1433 = vmatpush1.bf16.msra.mxu0 %v3808_v51  ;;  %v85_v51 = vld [vmem:[#allocation2 + $0xc8] sm:$0xff] }
  0x5f   :  { %1749 = vmatpush1.bf16.msra.mxu1 %v3820_v49  ;;  %1434 = vmatprep.subr.bf16.mxu0 %v3813_v61 }
  0x60   :  { %3517 = vmatmul.mubr.bf16.gmra.mxu0 %v240_v50  ;;  %3609 = vmatmul.mubr.bf16.gmra.mxu1 %v726_v52  ;;  %v84_v50 = vld [vmem:[#allocation2 + $0xc0] sm:$0xff]  ;;  %v122_v52 = vld [vmem:[#allocation5 + $0xc0] sm:$0xff] }
  0x61   :  { %3520 = vmatprep.mubr.msk.bf16.mxu0 %vm4343_vm0, %v5611_v0  ;;  %3612 = vmatprep.mubr.msk.bf16.mxu1 %vm4343_vm0, %v5611_v0  ;;  %v249_v56 = vpack.c.bf16 %v85_v51, %v84_v50  ;;  %v4344_v50 = vmov 0   ;;  %v4498_v51 = vld [vmem:[%s5609_s3] ss:$0 sm:$0xff] }
  0x62   :  { %1750 = vmatprep.subr.bf16.mxu1 %v3825_v54  ;;  %1435 = vmatpush1.bf16.msra.mxu0 %v3811_v60 }
  0x63   :  { %1751 = vmatpush1.bf16.msra.mxu1 %v3823_v55  ;;  %1436 = vmatprep.subr.bf16.mxu0 %v3828_v18 }
  0x68   :  { %3521 = vmatmul.mubr.bf16.gmra.mxu0 %v241_v57  ;;  %3613 = vmatmul.mubr.bf16.gmra.mxu1 %v727_v58  ;;  %v735_v57 = vpack.c.bf16 %v123_v53, %v122_v52  ;;  %v3831_v58 = vld [vmem:[#allocation7 + $0xec] ss:$36 sps:$4 sm:$0xff]   ;;  %v4503_v52 = vld [vmem:[%s5609_s3 + $0x1] ss:$0 sm:$0xff] }
  0x69   :  { %3524 = vmatprep.mubr.msk.bf16.mxu0 %vm4343_vm0, %v5611_v0  ;;  %3616 = vmatprep.mubr.msk.bf16.mxu1 %vm4343_vm0, %v5611_v0 }
  0x6a   :  { %1752 = vmatprep.subr.bf16.mxu1 %v3831_v58 }
  0x6b   :  { %1753 = vmatpush1.bf16.msra.mxu1 %v3829_v59 }
  0x6c   :  { %1754 = vmatprep.subr.bf16.mxu1 %v3834_v3 }
  0x6f   :  { %1755 = vmatpush1.bf16.msra.mxu1 %v3832_v4 }
  0x70   :  { %3525 = vmatmul.mubr.bf16.gmra.mxu0 %v242_v63  ;;  %3617 = vmatmul.mubr.bf16.gmra.mxu1 %v728_v1  ;;  %v87_v63 = vld [vmem:[#allocation2 + $0xd8] sm:$0xff]  ;;  %v124_v1 = vld [vmem:[#allocation5 + $0xd0] sm:$0xff] }
  0x71   :  { %3528 = vmatprep.mubr.msk.bf16.mxu0 %vm4343_vm0, %v5611_v0  ;;  %3620 = vmatprep.mubr.msk.bf16.mxu1 %vm4343_vm0, %v5611_v0  ;;  %v250_v5 = vpack.c.bf16 %v87_v63, %v86_v62 }
  0x78   :  { %3529 = vmatmul.mubr.bf16.gmra.mxu0 %v243_v6  ;;  %3621 = vmatmul.mubr.bf16.gmra.mxu1 %v729_v7  ;;  %v736_v6 = vpack.c.bf16 %v125_v2, %v124_v1  ;;  %v3837_v7 = vld [vmem:[#allocation7 + $0x5c] ss:$36 sps:$4 sm:$0xff]  }
  0x79   :  { %3532 = vmatprep.mubr.msk.bf16.mxu0 %vm4343_vm0, %v5611_v0  ;;  %3624 = vmatprep.mubr.msk.bf16.mxu1 %vm4343_vm0, %v5611_v0 }
  0x7a   :  { %1756 = vmatprep.subr.bf16.mxu1 %v3837_v7 }
  0x7b   :  { %1757 = vmatpush1.bf16.msra.mxu1 %v3835_v8 }
  0x80   :  { %3533 = vmatmul.mubr.bf16.gmra.mxu0 %v244_v12  ;;  %3625 = vmatmul.mubr.bf16.gmra.mxu1 %v730_v13  ;;  %v127_v12 = vld [vmem:[#allocation5 + $0xe8] sm:$0xff] }
  0x81   :  { %3536 = vmatprep.mubr.msk.bf16.mxu0 %vm4343_vm0, %v5611_v0  ;;  %3628 = vmatprep.mubr.msk.bf16.mxu1 %vm4343_vm0, %v5611_v0  ;;  %v3840_v13 = vld [vmem:[#allocation7 + $0x14] ss:$36 sps:$4 sm:$0xff]   ;;  %v737_v21 = vpack.c.bf16 %v127_v12, %v126_v11 }
  0x82   :  { %1758 = vmatprep.subr.bf16.mxu1 %v3840_v13 }
  0x83   :  { %1759 = vmatpush1.bf16.msra.mxu1 %v3838_v14 }
  0x84   :  { %3672 = vmatprep.subr.bf16.mxu1 %v5611_v0 }
  0x88   :  { %3537 = vmatmul.mubr.bf16.gmra.mxu0 %v245_v22  ;;  %3629 = vmatmul.mubr.bf16.gmra.mxu1 %v731_v23  ;;  %v3826_v22 = vld [vmem:[#allocation7 + $0x8] ss:$36 sps:$4 sm:$0xff]   ;;  %v90_v23 = vld [vmem:[#allocation2 + $0xf0] sm:$0xff] }
  0x89   :  { %3540 = vmatprep.mubr.msk.bf16.mxu0 %vm4343_vm0, %v5611_v0  ;;  %3632 = vmatprep.mubr.msk.bf16.mxu1 %vm4343_vm0, %v5611_v0  ;;  %v252_v29 = vpack.c.bf16 %v91_v24, %v90_v23 }
  0x8a   :  { %1437 = vmatpush1.bf16.msra.mxu0 %v3826_v22 }
  0x8b   :  { %2066 = vmatprep.subr.bf16.mxu0 %v3843_v42 }
  0x90   :  { %3541 = vmatmul.mubr.bf16.gmra.mxu0 %v246_v30  ;;  %3633 = vmatmul.mubr.bf16.gmra.mxu1 %v732_v31  ;;  %v738_v30 = vpack.c.bf16 %v129_v28, %v128_v26  ;;  %v92_v31 = vld [vmem:[#allocation2 + $0x100] sm:$0xff] }
  0x91   :  { %3544 = vmatprep.mubr.msk.bf16.mxu0 %vm4343_vm0, %v5611_v0  ;;  %3636 = vmatprep.mubr.msk.bf16.mxu1 %vm4343_vm0, %v5611_v0  ;;  %v253_v35 = vpack.c.bf16 %v93_v32, %v92_v31 }
  0x98   :  { %3545 = vmatmul.mubr.bf16.gmra.mxu0 %v247_v36  ;;  %3637 = vmatmul.mubr.bf16.gmra.mxu1 %v733_v38  ;;  %v739_v36 = vpack.c.bf16 %v131_v34, %v130_v33  ;;  %v95_v38 = vld [vmem:[#allocation2 + $0x118] sm:$0xff] }
  0x99   :  { %3548 = vmatprep.mubr.msk.bf16.mxu0 %vm4343_vm0, %v5611_v0  ;;  %3640 = vmatprep.mubr.msk.bf16.mxu1 %vm4343_vm0, %v5611_v0  ;;  %v254_v41 = vpack.c.bf16 %v95_v38, %v94_v37 }
  0xa0   :  { %3549 = vmatmul.mubr.bf16.gmra.mxu0 %v248_v46  ;;  %3641 = vmatmul.mubr.bf16.gmra.mxu1 %v734_v47  ;;  %v134_v46 = vld [vmem:[#allocation5 + $0x120] sm:$0xff]  ;;  %v135_v47 = vld [vmem:[#allocation5 + $0x128] sm:$0xf] }
  0xa1   :  { %3552 = vmatprep.mubr.msk.bf16.mxu0 %vm4343_vm0, %v5611_v0  ;;  %3644 = vmatprep.mubr.msk.bf16.mxu1 %vm4343_vm0, %v5611_v0  ;;  %v741_v49 = vpack.c.bf16 %v135_v47, %v134_v46 }
  0xa8   :  { %3553 = vmatmul.mubr.bf16.gmra.mxu0 %v249_v56  ;;  %3645 = vmatmul.mubr.bf16.gmra.mxu1 %v735_v57 }
  0xa9   :  { %3556 = vmatprep.mubr.msk.bf16.mxu0 %vm4343_vm0, %v5611_v0  ;;  %3648 = vmatprep.mubr.msk.bf16.mxu1 %vm4343_vm0, %v5611_v0 }
  0xb0   :  { %3557 = vmatmul.mubr.bf16.gmra.mxu0 %v250_v5  ;;  %3649 = vmatmul.mubr.bf16.gmra.mxu1 %v736_v6 }
  0xb1   :  { %3560 = vmatprep.mubr.msk.bf16.mxu0 %vm4343_vm0, %v5611_v0  ;;  %3652 = vmatprep.mubr.msk.bf16.mxu1 %vm4343_vm0, %v5611_v0 }
  0xb8   :  { %3561 = vmatmul.mubr.bf16.gmra.mxu0 %v251_v15  ;;  %3653 = vmatmul.mubr.bf16.gmra.mxu1 %v737_v21 }
  0xb9   :  { %3564 = vmatprep.mubr.msk.bf16.mxu0 %vm4343_vm0, %v5611_v0  ;;  %3656 = vmatprep.mubr.msk.bf16.mxu1 %vm4343_vm0, %v5611_v0 }
  0xc0   :  { %3565 = vmatmul.mubr.bf16.gmra.mxu0 %v252_v29  ;;  %3657 = vmatmul.mubr.bf16.gmra.mxu1 %v738_v30 }
  0xc1   :  { %3568 = vmatprep.mubr.msk.bf16.mxu0 %vm4343_vm0, %v5611_v0  ;;  %3660 = vmatprep.mubr.msk.bf16.mxu1 %vm4343_vm0, %v5611_v0 }
  0xc8   :  { %3569 = vmatmul.mubr.bf16.gmra.mxu0 %v253_v35  ;;  %3661 = vmatmul.mubr.bf16.gmra.mxu1 %v739_v36 }
  0xc9   :  { %3572 = vmatprep.mubr.msk.bf16.mxu0 %vm4343_vm0, %v5611_v0  ;;  %3664 = vmatprep.mubr.msk.bf16.mxu1 %vm4343_vm0, %v5611_v0 }
  0xd0   :  { %3573 = vmatmul.mubr.bf16.gmra.mxu0 %v254_v41  ;;  %3665 = vmatmul.mubr.bf16.gmra.mxu1 %v740_v43 }
  0xd1   :  { %3576 = vmatprep.mubr.msk.bf16.mxu0 %vm4343_vm0, %v5611_v0  ;;  %3668 = vmatprep.mubr.msk.bf16.mxu1 %vm4343_vm0, %v5611_v0 }
  0xd8   :  { %3577 = vmatmul.mubr.bf16.gmra.mxu0 %v255_v48  ;;  %3669 = vmatmul.mubr.bf16.gmra.mxu1 %v741_v49 }
  0xd9   :  { %1454 = vmatprep.mubr.bf16.mxu0 %v4344_v50  ;;  %1776 = vmatprep.mubr.bf16.mxu1 %v4344_v50 }
 0x108   :  { %v344_v53 = vpop.f32.mrf.mxu0  ;;  %v830_v55 = vpop.f32.mrf.mxu1 }
 0x109   :  { %v345_v54 = vadd.f32 %v4498_v51, %v344_v53  ;;  %v831_v56 = vadd.f32 %v4503_v52, %v830_v55 }
 0x10a   :  { %v3506_v57 = vpop.f32.mrf.mxu0  ;;  %v3598_v59 = vpop.f32.mrf.mxu1 }
 0x10b   :  { %v495_v58 = vsub.f32 0.0, %v345_v54  ;;  %v981_v60 = vsub.f32 0.0, %v831_v56 }
 0x10c   :  { %v347_v61 = vpop.f32.mrf.mxu0  ;;  %v833_v1 = vpop.f32.mrf.mxu1 }
 0x10d   :  { %v533_v62 = vmul.f32 1.442695, %v495_v58  ;;  %v348_v63 = vadd.f32 %v4498_v51, %v347_v61  ;;  %v1019_v2 = vmul.f32 1.442695, %v981_v60  ;;  %v834_v3 = vadd.f32 %v4503_v52, %v833_v1 }
 0x10e   :  { %v3507_v4 = vpop.f32.mrf.mxu0  ;;  %v3599_v6 = vpop.f32.mrf.mxu1 }
 0x10f   :  { %3873 = vpow2.f32 %v533_v62  ;;  %v496_v5 = vsub.f32 0.0, %v348_v63  ;;  %v982_v7 = vsub.f32 0.0, %v834_v3 }
 0x110   :  { %3875 = vpow2.f32 %v1019_v2  ;;  %v352_v8 = vpop.f32.mrf.mxu0  ;;  %v838_v11 = vpop.f32.mrf.mxu1 }
 0x111   :  { %v535_v9 = vmul.f32 1.442695, %v496_v5  ;;  %v353_v10 = vadd.f32 %v4498_v51, %v352_v8  ;;  %v1021_v12 = vmul.f32 1.442695, %v982_v7  ;;  %v839_v13 = vadd.f32 %v4503_v52, %v838_v11 }
 0x112   :  { %v3510_v14 = vpop.f32.mrf.mxu0  ;;  %v3602_v18 = vpop.f32.mrf.mxu1 }
 0x113   :  { %3877 = vpow2.f32 %v535_v9  ;;  %v497_v15 = vsub.f32 0.0, %v353_v10  ;;  %v983_v21 = vsub.f32 0.0, %v839_v13 }
 0x114   :  { %3879 = vpow2.f32 %v1021_v12  ;;  %v355_v22 = vpop.f32.mrf.mxu0  ;;  %v841_v26 = vpop.f32.mrf.mxu1 }
 0x115   :  { %v537_v23 = vmul.f32 1.442695, %v497_v15  ;;  %v356_v24 = vadd.f32 %v4498_v51, %v355_v22  ;;  %v1023_v28 = vmul.f32 1.442695, %v983_v21  ;;  %v842_v29 = vadd.f32 %v4503_v52, %v841_v26 }
 0x116   :  { %v3511_v30 = vpop.f32.mrf.mxu0  ;;  %v3603_v32 = vpop.f32.mrf.mxu1 }
 0x117   :  { %3881 = vpow2.f32 %v537_v23  ;;  %v498_v31 = vsub.f32 0.0, %v356_v24  ;;  %v984_v33 = vsub.f32 0.0, %v842_v29 }
 0x118   :  { %3883 = vpow2.f32 %v1023_v28  ;;  %v360_v34 = vpop.f32.mrf.mxu0  ;;  %v846_v37 = vpop.f32.mrf.mxu1 }
 0x119   :  { %v539_v35 = vmul.f32 1.442695, %v498_v31  ;;  %v361_v36 = vadd.f32 %v4498_v51, %v360_v34  ;;  %v1025_v38 = vmul.f32 1.442695, %v984_v33  ;;  %v847_v39 = vadd.f32 %v4503_v52, %v846_v37 }
 0x11a   :  { %v3514_v40 = vpop.f32.mrf.mxu0  ;;  %v3606_v42 = vpop.f32.mrf.mxu1 }
 0x11b   :  { %3885 = vpow2.f32 %v539_v35  ;;  %v499_v41 = vsub.f32 0.0, %v361_v36  ;;  %v985_v44 = vsub.f32 0.0, %v847_v39 }
 0x11c   :  { %v3874_v43 = vpop.eup %3873  ;;  %3887 = vpow2.f32 %v1025_v38  ;;  %v363_v45 = vpop.f32.mrf.mxu0 }
 0x11d   :  { %v3876_v46 = vpop.eup %3875  ;;  %v609_v47 = vadd.f32 1.0, %v3874_v43  ;;  %v541_v48 = vmul.f32 1.442695, %v499_v41  ;;  %v364_v49 = vadd.f32 %v4498_v51, %v363_v45  ;;  %v849_v53 = vpop.f32.mrf.mxu1  ;;  %v1027_v55 = vmul.f32 1.442695, %v985_v44 }
 0x11e   :  { %v1095_v54 = vadd.f32 1.0, %v3876_v46  ;;  %v850_v56 = vadd.f32 %v4503_v52, %v849_v53  ;;  %v3515_v57 = vpop.f32.mrf.mxu0 }
 0x11f   :  { %3889 = vrcp.f32 %v609_v47  ;;  %v500_v58 = vsub.f32 0.0, %v364_v49  ;;  %v3607_v59 = vpop.f32.mrf.mxu1 }
 0x120   :  { %v3878_v60 = vpop.eup %3877  ;;  %3891 = vrcp.f32 %v1095_v54  ;;  %v986_v61 = vsub.f32 0.0, %v850_v56  ;;  %v368_v62 = vpop.f32.mrf.mxu0 }
 0x121   :  { %v3880_v63 = vpop.eup %3879  ;;  %v610_v1 = vadd.f32 1.0, %v3878_v60  ;;  %3893 = vpow2.f32 %v541_v48  ;;  %v543_v2 = vmul.f32 1.442695, %v500_v58  ;;  %v369_v3 = vadd.f32 %v4498_v51, %v368_v62  ;;  %v854_v4 = vpop.f32.mrf.mxu1 }
 0x122   :  { %v1096_v5 = vadd.f32 1.0, %v3880_v63  ;;  %3895 = vpow2.f32 %v1027_v55  ;;  %v1029_v6 = vmul.f32 1.442695, %v986_v61  ;;  %v855_v7 = vadd.f32 %v4503_v52, %v854_v4  ;;  %v3518_v8 = vpop.f32.mrf.mxu0 }
 0x123   :  { %3897 = vrcp.f32 %v610_v1  ;;  %v501_v9 = vsub.f32 0.0, %v369_v3  ;;  %v3610_v10 = vpop.f32.mrf.mxu1 }
 0x124   :  { %v3882_v11 = vpop.eup %3881  ;;  %3899 = vrcp.f32 %v1096_v5  ;;  %v987_v12 = vsub.f32 0.0, %v855_v7  ;;  %v371_v13 = vpop.f32.mrf.mxu0 }
 0x125   :  { %v3884_v14 = vpop.eup %3883  ;;  %v611_v15 = vadd.f32 1.0, %v3882_v11  ;;  %3901 = vpow2.f32 %v543_v2  ;;  %v545_v18 = vmul.f32 1.442695, %v501_v9  ;;  %v372_v21 = vadd.f32 %v4498_v51, %v371_v13  ;;  %v857_v22 = vpop.f32.mrf.mxu1 }
 0x126   :  { %v1097_v23 = vadd.f32 1.0, %v3884_v14  ;;  %3903 = vpow2.f32 %v1029_v6  ;;  %v1031_v24 = vmul.f32 1.442695, %v987_v12  ;;  %v858_v26 = vadd.f32 %v4503_v52, %v857_v22  ;;  %v3519_v28 = vpop.f32.mrf.mxu0 }
 0x127   :  { %3905 = vrcp.f32 %v611_v15  ;;  %v502_v29 = vsub.f32 0.0, %v372_v21  ;;  %v3611_v30 = vpop.f32.mrf.mxu1 }
 0x128   :  { %v3886_v31 = vpop.eup %3885  ;;  %3907 = vrcp.f32 %v1097_v23  ;;  %v988_v32 = vsub.f32 0.0, %v858_v26  ;;  %v376_v33 = vpop.f32.mrf.mxu0 }
 0x129   :  { %v3888_v34 = vpop.eup %3887  ;;  %v612_v35 = vadd.f32 1.0, %v3886_v31  ;;  %3909 = vpow2.f32 %v545_v18  ;;  %v547_v36 = vmul.f32 1.442695, %v502_v29  ;;  %v377_v37 = vadd.f32 %v4498_v51, %v376_v33  ;;  %v862_v38 = vpop.f32.mrf.mxu1  ;;  %v3841_v33 = vld [vmem:[#allocation7 + $0x210] ss:$36 sps:$4 sm:$0xff]  }
 0x12a   :  { %v1098_v39 = vadd.f32 1.0, %v3888_v34  ;;  %3911 = vpow2.f32 %v1031_v24  ;;  %v1033_v40 = vmul.f32 1.442695, %v988_v32  ;;  %v863_v41 = vadd.f32 %v4503_v52, %v862_v38  ;;  %v3522_v42 = vpop.f32.mrf.mxu0 }
 0x12b   :  { %3913 = vrcp.f32 %v612_v35  ;;  %v503_v43 = vsub.f32 0.0, %v377_v37  ;;  %v3614_v44 = vpop.f32.mrf.mxu1 }
 0x12c   :  { %v3890_v45 = vpop.eup %3889  ;;  %3915 = vrcp.f32 %v1098_v39  ;;  %v989_v46 = vsub.f32 0.0, %v863_v41  ;;  %v379_v47 = vpop.f32.mrf.mxu0 }
 0x12d   :  { %v3892_v48 = vpop.eup %3891  ;;  %3917 = vpow2.f32 %v547_v36  ;;  %v549_v49 = vmul.f32 1.442695, %v503_v43  ;;  %v380_v53 = vadd.f32 %v4498_v51, %v379_v47  ;;  %v865_v54 = vpop.f32.mrf.mxu1  ;;  %v1209_v55 = vmul.f32 %v3890_v45, %v4400_v16 }
 0x12e   :  { %v3894_v56 = vpop.eup %3893  ;;  %3919 = vpow2.f32 %v1033_v40  ;;  %v1035_v57 = vmul.f32 1.442695, %v989_v46  ;;  %v866_v58 = vadd.f32 %v4503_v52, %v865_v54  ;;  %v3523_v59 = vpop.f32.mrf.mxu0  ;;  %v4527_v60 = vmul.f32 %v3892_v48, %v4405_v19  ;;  %v3846_v40 = vld [vmem:[#allocation7 + $0x1cc] ss:$36 sps:$4 sm:$0xff]  }
 0x12f   :  { %v3896_v61 = vpop.eup %3895  ;;  %v613_v62 = vadd.f32 1.0, %v3894_v56  ;;  %3921 = vpow2.f32 %v549_v49  ;;  %v504_v63 = vsub.f32 0.0, %v380_v53  ;;  %v3615_v1 = vpop.f32.mrf.mxu1 }
 0x130   :  { %v3898_v2 = vpop.eup %3897  ;;  %v1099_v3 = vadd.f32 1.0, %v3896_v61  ;;  %3923 = vpow2.f32 %v1035_v57  ;;  %v990_v4 = vsub.f32 0.0, %v866_v58  ;;  %v384_v5 = vpop.f32.mrf.mxu0  ;;  %v1285_v16 = vmul.f32 %v4527_v60, %v1209_v55  ;;  %v4177_v57 = vld [vmem:[#allocation2 + $0x18] sm:$0xff]  ;;  %v4178_v1 = vld [vmem:[#allocation5 + $0x18] sm:$0xff] }
 0x131   :  { %v3900_v6 = vpop.eup %3899  ;;  %3925 = vrcp.f32 %v613_v62  ;;  %v551_v7 = vmul.f32 1.442695, %v504_v63  ;;  %v385_v8 = vadd.f32 %v4498_v51, %v384_v5  ;;  %v870_v9 = vpop.f32.mrf.mxu1  ;;  %v1210_v19 = vmul.f32 %v3898_v2, %v4402_v17 }
 0x132   :  { %v3902_v10 = vpop.eup %3901  ;;  %3927 = vrcp.f32 %v1099_v3  ;;  %v1037_v11 = vmul.f32 1.442695, %v990_v4  ;;  %v871_v12 = vadd.f32 %v4503_v52, %v870_v9  ;;  %v3526_v13 = vpop.f32.mrf.mxu0  ;;  %v4534_v14 = vmul.f32 %v3900_v6, %v4407_v20  ;;  %v3849_v3 = vld [vmem:[#allocation7 + $0x184] ss:$36 sps:$4 sm:$0xff]  }
 0x133   :  { %v3904_v15 = vpop.eup %3903  ;;  %v614_v18 = vadd.f32 1.0, %v3902_v10  ;;  %3929 = vpow2.f32 %v551_v7  ;;  %v505_v21 = vsub.f32 0.0, %v385_v8  ;;  %v3618_v22 = vpop.f32.mrf.mxu1  ;;  %v1645_v23 = vpack.c.bf16 %v1210_v19, %v1209_v55 }
 0x134   :  { %v3906_v24 = vpop.eup %3905  ;;  %v1100_v26 = vadd.f32 1.0, %v3904_v15  ;;  %3931 = vpow2.f32 %v1037_v11  ;;  %v991_v28 = vsub.f32 0.0, %v871_v12  ;;  %v387_v17 = vpop.f32.mrf.mxu0  ;;  %v1286_v29 = vmul.f32 %v4534_v14, %v1210_v19  ;;  %v3847_v22 = vld [vmem:[#allocation7 + $0x180] ss:$36 sps:$4 sm:$0xff]  }
 0x135   :  { %v3908_v30 = vpop.eup %3907  ;;  %3933 = vrcp.f32 %v614_v18  ;;  %v553_v31 = vmul.f32 1.442695, %v505_v21  ;;  %v388_v32 = vadd.f32 %v4498_v51, %v387_v17  ;;  %v873_v20 = vpop.f32.mrf.mxu1  ;;  %1777 = vmatmul.mubr.bf16.vlgmr.msra.gmra.mxu1 %v1645_v23  ;;  %v1211_v34 = vmul.f32 %v3906_v24, %v4416_v25 }
 0x136   :  { %v3910_v35 = vpop.eup %3909  ;;  %3935 = vrcp.f32 %v1100_v26  ;;  %v1039_v36 = vmul.f32 1.442695, %v991_v28  ;;  %v874_v37 = vadd.f32 %v4503_v52, %v873_v20  ;;  %v3527_v38 = vpop.f32.mrf.mxu0  ;;  %v1323_v39 = vpack.c.bf16 %v1286_v29, %v1285_v16  ;;  %1786 = vmatprep.mubr.bf16.mxu1 %v4344_v50  ;;  %v3852_v29 = vld [vmem:[#allocation7 + $0x13c] ss:$36 sps:$4 sm:$0xff]  }
 0x137   :  { %v3912_v41 = vpop.eup %3911  ;;  %v615_v42 = vadd.f32 1.0, %v3910_v35  ;;  %3937 = vpow2.f32 %v553_v31  ;;  %v506_v43 = vsub.f32 0.0, %v388_v32  ;;  %v3619_v44 = vpop.f32.mrf.mxu1  ;;  %v4542_v45 = vmul.f32 %v3908_v30, %v4420_v27  ;;  %v3844_v27 = vld [vmem:[#allocation7 + $0x1c8] ss:$36 sps:$4 sm:$0xff]   ;;  %v4180_v38 = vld [vmem:[#allocation5 + $0x20] sm:$0xff] }
 0x138   :  { %v3914_v46 = vpop.eup %3913  ;;  %v1101_v25 = vadd.f32 1.0, %v3912_v41  ;;  %3939 = vpow2.f32 %v1039_v36  ;;  %v992_v47 = vsub.f32 0.0, %v874_v37  ;;  %1455 = vmatmul.mubr.bf16.vlgmr.msra.gmra.mxu0 %v1323_v39  ;;  %v392_v48 = vpop.f32.mrf.mxu0  ;;  %v1967_v49 = vpack.c.bf16 %v4534_v14, %v4527_v60  ;;  %v3870_v60 = vld [vmem:[#allocation7 + $0xb0] ss:$36 sps:$4 sm:$0xff]  }
 0x139   :  { %v3916_v53 = vpop.eup %3915  ;;  %3941 = vrcp.f32 %v615_v42  ;;  %v555_v54 = vmul.f32 1.442695, %v506_v43  ;;  %2067 = vmatpush1.bf16.msra.mxu0 %v3841_v33  ;;  %v393_v55 = vadd.f32 %v4498_v51, %v392_v48  ;;  %v878_v56 = vpop.f32.mrf.mxu1  ;;  %v1212_v58 = vmul.f32 %v4177_v57, %v3914_v46  ;;  %1464 = vmatprep.mubr.bf16.mxu0 %v4344_v50  ;;  %v4179_v33 = vld [vmem:[#allocation2 + $0x20] sm:$0xff] }
 0x13a   :  { %v3918_v59 = vpop.eup %3917  ;;  %3943 = vrcp.f32 %v1101_v25  ;;  %v1041_v61 = vmul.f32 1.442695, %v992_v47  ;;  %v879_v62 = vadd.f32 %v4503_v52, %v878_v56  ;;  %v3530_v63 = vpop.f32.mrf.mxu0  ;;  %v4549_v2 = vmul.f32 %v4178_v1, %v3916_v53  ;;  %2068 = vmatprep.subr.bf16.mxu0 %v3846_v40  ;;  %v3850_v25 = vld [vmem:[#allocation7 + $0x138] ss:$36 sps:$4 sm:$0xff]  }
 0x13b   :  { %v3920_v4 = vpop.eup %3919  ;;  %v616_v5 = vadd.f32 1.0, %v3918_v59  ;;  %3945 = vpow2.f32 %v555_v54  ;;  %v507_v16 = vsub.f32 0.0, %v393_v55  ;;  %v3622_v6 = vpop.f32.mrf.mxu1  ;;  %v1646_v7 = vpack.c.bf16 %v1212_v58, %v1211_v34  ;;  %v3855_v56 = vld [vmem:[#allocation7 + $0xf4] ss:$36 sps:$4 sm:$0xff]   ;;  %v4181_v59 = vld [vmem:[#allocation2 + $0x28] sm:$0xff] }
 0x13c   :  { %v3922_v8 = vpop.eup %3921  ;;  %v1102_v9 = vadd.f32 1.0, %v3920_v4  ;;  %3947 = vpow2.f32 %v1041_v61  ;;  %v993_v19 = vsub.f32 0.0, %v879_v62  ;;  %v395_v10 = vpop.f32.mrf.mxu0  ;;  %v1287_v11 = vmul.f32 %v4542_v45, %v1211_v34 }
 0x13d   :  { %v3924_v12 = vpop.eup %3923  ;;  %3949 = vrcp.f32 %v616_v5  ;;  %v617_v13 = vadd.f32 1.0, %v3922_v8  ;;  %v557_v15 = vmul.f32 1.442695, %v507_v16  ;;  %v396_v18 = vadd.f32 %v4498_v51, %v395_v10  ;;  %v881_v21 = vpop.f32.mrf.mxu1  ;;  %1787 = vmatmul.mubr.bf16.gmra.mxu1 %v1646_v7  ;;  %2069 = vmatpush1.bf16.msra.mxu0 %v3844_v27 }
 0x13e   :  { %v3926_v23 = vpop.eup %3925  ;;  %3951 = vrcp.f32 %v1102_v9  ;;  %v1103_v24 = vadd.f32 1.0, %v3924_v12  ;;  %v1043_v26 = vmul.f32 1.442695, %v993_v19  ;;  %v882_v28 = vadd.f32 %v4503_v52, %v881_v21  ;;  %v3531_v17 = vpop.f32.mrf.mxu0  ;;  %1796 = vmatprep.mubr.bf16.mxu1 %v4344_v50  ;;  %2070 = vmatprep.subr.bf16.mxu0 %v3849_v3  ;;  %v4182_v3 = vld [vmem:[#allocation5 + $0x28] sm:$0xff]  ;;  %v3853_v19 = vld [vmem:[#allocation7 + $0xf0] ss:$36 sps:$4 sm:$0xff]  }
 0x13f   :  { %v3928_v30 = vpop.eup %3927  ;;  %3953 = vrcp.f32 %v617_v13  ;;  %v508_v31 = vsub.f32 0.0, %v396_v18  ;;  %v3623_v32 = vpop.f32.mrf.mxu1  ;;  %v1288_v20 = vmul.f32 %v4549_v2, %v1212_v58  ;;  %v4556_v34 = vmul.f32 %v4179_v33, %v3926_v23  ;;  %v3858_v18 = vld [vmem:[#allocation7 + $0xac] ss:$36 sps:$4 sm:$0xff]  }
 0x140   :  { %v3930_v35 = vpop.eup %3929  ;;  %3955 = vrcp.f32 %v1103_v24  ;;  %v994_v36 = vsub.f32 0.0, %v882_v28  ;;  %v400_v37 = vpop.f32.mrf.mxu0  ;;  %v4558_v39 = vmul.f32 %v4180_v38, %v3928_v30  ;;  %v1968_v40 = vpack.c.bf16 %v4549_v2, %v4542_v45 }
 0x141   :  { %v3932_v41 = vpop.eup %3931  ;;  %v618_v42 = vadd.f32 1.0, %v3930_v35  ;;  %3957 = vpow2.f32 %v557_v15  ;;  %v559_v43 = vmul.f32 1.442695, %v508_v31  ;;  %v1324_v44 = vpack.c.bf16 %v1288_v20, %v1287_v11  ;;  %v886_v46 = vpop.f32.mrf.mxu1  ;;  %2071 = vmatpush1.bf16.msra.mxu0 %v3847_v22  ;;  %v4183_v31 = vld [vmem:[#allocation2 + $0x30] sm:$0xff] }
 0x142   :  { %v3934_v47 = vpop.eup %3933  ;;  %v1104_v48 = vadd.f32 1.0, %v3932_v41  ;;  %3959 = vpow2.f32 %v1043_v26  ;;  %v1045_v53 = vmul.f32 1.442695, %v994_v36  ;;  %v401_v54 = vadd.f32 %v4498_v51, %v400_v37  ;;  %v3534_v55 = vpop.f32.mrf.mxu0  ;;  %2072 = vmatprep.subr.bf16.mxu0 %v3852_v29 }
 0x143   :  { %v3936_v57 = vpop.eup %3935  ;;  %3961 = vrcp.f32 %v618_v42  ;;  %1465 = vmatmul.mubr.bf16.gmra.mxu0 %v1324_v44  ;;  %v887_v58 = vadd.f32 %v4503_v52, %v886_v46  ;;  %v3626_v27 = vpop.f32.mrf.mxu1  ;;  %v1214_v61 = vmul.f32 %v4181_v59, %v3934_v47  ;;  %v1289_v5 = vmul.f32 %v4558_v39, %v4556_v34  ;;  %v3861_v46 = vld [vmem:[#allocation7 + $0x64] ss:$36 sps:$4 sm:$0xff]  }
 0x144   :  { %v3938_v62 = vpop.eup %3937  ;;  %3963 = vrcp.f32 %v1104_v48  ;;  %v509_v63 = vsub.f32 0.0, %v401_v54  ;;  %v403_v1 = vpop.f32.mrf.mxu0  ;;  %1474 = vmatprep.mubr.bf16.mxu0 %v4344_v50  ;;  %v4565_v4 = vmul.f32 %v4182_v3, %v3936_v57  ;;  %v4184_v54 = vld [vmem:[#allocation2 + $0x38] sm:$0xff]  ;;  %v4186_v59 = vld [vmem:[#allocation5 + $0x38] sm:$0xff] }
 0x145   :  { %v3940_v16 = vpop.eup %3939  ;;  %v619_v6 = vadd.f32 1.0, %v3938_v62  ;;  %3965 = vpow2.f32 %v559_v43  ;;  %v995_v7 = vsub.f32 0.0, %v887_v58  ;;  %v404_v8 = vadd.f32 %v4498_v51, %v403_v1  ;;  %v889_v9 = vpop.f32.mrf.mxu1  ;;  %2073 = vmatpush1.bf16.msra.mxu0 %v3850_v25  ;;  %v4185_v58 = vld [vmem:[#allocation5 + $0x30] sm:$0xff] }
 0x146   :  { %v3942_v10 = vpop.eup %3941  ;;  %v1105_v11 = vadd.f32 1.0, %v3940_v16  ;;  %3967 = vpow2.f32 %v1045_v53  ;;  %v561_v12 = vmul.f32 1.442695, %v509_v63  ;;  %v890_v13 = vadd.f32 %v4503_v52, %v889_v9  ;;  %v3535_v15 = vpop.f32.mrf.mxu0  ;;  %2074 = vmatprep.subr.bf16.mxu0 %v3855_v56 }
 0x147   :  { %v3944_v21 = vpop.eup %3943  ;;  %3969 = vrcp.f32 %v619_v6  ;;  %v1047_v22 = vmul.f32 1.442695, %v995_v7  ;;  %v510_v23 = vsub.f32 0.0, %v404_v8  ;;  %v1647_v24 = vpack.c.bf16 %v1214_v61, %v4556_v34  ;;  %v3627_v26 = vpop.f32.mrf.mxu1  ;;  %v3856_v34 = vld [vmem:[#allocation7 + $0xa8] ss:$36 sps:$4 sm:$0xff]  }
 0x148   :  { %v3946_v28 = vpop.eup %3945  ;;  %3971 = vrcp.f32 %v1105_v11  ;;  %v996_v17 = vsub.f32 0.0, %v890_v13  ;;  %v1290_v29 = vmul.f32 %v4565_v4, %v1214_v61  ;;  %v408_v30 = vpop.f32.mrf.mxu0  ;;  %v4573_v32 = vmul.f32 %v4183_v31, %v3942_v10  ;;  %v3859_v6 = vld [vmem:[#allocation7 + $0x60] ss:$36 sps:$4 sm:$0xff]  }
 0x149   :  { %v3948_v20 = vpop.eup %3947  ;;  %v620_v33 = vadd.f32 1.0, %v3946_v28  ;;  %3973 = vpow2.f32 %v561_v12  ;;  %v563_v35 = vmul.f32 1.442695, %v510_v23  ;;  %1797 = vmatmul.mubr.bf16.gmra.mxu1 %v1647_v24  ;;  %v409_v36 = vadd.f32 %v4498_v51, %v408_v30  ;;  %v894_v37 = vpop.f32.mrf.mxu1  ;;  %2075 = vmatpush1.bf16.msra.mxu0 %v3853_v19  ;;  %v3864_v11 = vld [vmem:[#allocation7 + $0x1c] ss:$36 sps:$4 sm:$0xff]  }
 0x14a   :  { %v3950_v38 = vpop.eup %3949  ;;  %v1106_v41 = vadd.f32 1.0, %v3948_v20  ;;  %3975 = vpow2.f32 %v1047_v22  ;;  %v1049_v42 = vmul.f32 1.442695, %v996_v17  ;;  %v1325_v43 = vpack.c.bf16 %v1290_v29, %v1289_v5  ;;  %v3538_v44 = vpop.f32.mrf.mxu0  ;;  %1806 = vmatprep.mubr.bf16.mxu1 %v4344_v50  ;;  %2076 = vmatprep.subr.bf16.mxu0 %v3858_v18  ;;  %v4187_v17 = vld [vmem:[#allocation2 + $0x40] sm:$0xff] }
 0x14b   :  { %v3952_v25 = vpop.eup %3951  ;;  %3977 = vrcp.f32 %v620_v33  ;;  %v511_v47 = vsub.f32 0.0, %v409_v36  ;;  %v895_v48 = vadd.f32 %v4503_v52, %v894_v37  ;;  %v3630_v53 = vpop.f32.mrf.mxu1  ;;  %v1216_v55 = vmul.f32 %v4184_v54, %v3950_v38  ;;  %v4188_v33 = vld [vmem:[#allocation2 + $0x48] sm:$0xff]  ;;  %v3862_v36 = vld [vmem:[#allocation7 + $0x18] ss:$36 sps:$4 sm:$0xff]  }
 0x14c   :  { %v3954_v56 = vpop.eup %3953  ;;  %3979 = vrcp.f32 %v1106_v41  ;;  %1475 = vmatmul.mubr.bf16.gmra.mxu0 %v1325_v43  ;;  %v411_v57 = vpop.f32.mrf.mxu0  ;;  %v4578_v27 = vmul.f32 %v4185_v58, %v3944_v21  ;;  %v4580_v61 = vmul.f32 %v4186_v59, %v3952_v25  ;;  %v1969_v62 = vpack.c.bf16 %v4565_v4, %v4558_v39 }
 0x14d   :  { %v3956_v63 = vpop.eup %3955  ;;  %3981 = vpow2.f32 %v563_v35  ;;  %v565_v1 = vmul.f32 1.442695, %v511_v47  ;;  %v997_v3 = vsub.f32 0.0, %v895_v48  ;;  %v412_v5 = vadd.f32 %v4498_v51, %v411_v57  ;;  %v897_v16 = vpop.f32.mrf.mxu1  ;;  %1484 = vmatprep.mubr.bf16.mxu0 %v4344_v50  ;;  %2077 = vmatpush1.bf16.msra.mxu0 %v3856_v34 }
 0x14e   :  { %v3958_v7 = vpop.eup %3957  ;;  %3983 = vpow2.f32 %v1049_v42  ;;  %v898_v8 = vadd.f32 %v4503_v52, %v897_v16  ;;  %v1648_v9 = vpack.c.bf16 %v1216_v55, %v4573_v32  ;;  %v3539_v19 = vpop.f32.mrf.mxu0  ;;  %v1291_v10 = vmul.f32 %v4578_v27, %v4573_v32  ;;  %2078 = vmatprep.subr.bf16.mxu0 %v3861_v46 }
 0x14f   :  { %v3960_v12 = vpop.eup %3959  ;;  %v621_v13 = vadd.f32 1.0, %v3958_v7  ;;  %3985 = vpow2.f32 %v565_v1  ;;  %v1051_v15 = vmul.f32 1.442695, %v997_v3  ;;  %v512_v18 = vsub.f32 0.0, %v412_v5  ;;  %v3631_v21 = vpop.f32.mrf.mxu1  ;;  %v4190_v5 = vld [vmem:[#allocation5 + $0x48] sm:$0xff] }
 0x150   :  { %v3962_v22 = vpop.eup %3961  ;;  %v1107_v23 = vadd.f32 1.0, %v3960_v12  ;;  %v998_v24 = vsub.f32 0.0, %v898_v8  ;;  %v1292_v26 = vmul.f32 %v4580_v61, %v1216_v55  ;;  %v416_v28 = vpop.f32.mrf.mxu0  ;;  %v4591_v29 = vmul.f32 %v4187_v17, %v3954_v56  ;;  %v4189_v56 = vld [vmem:[#allocation5 + $0x40] sm:$0xff] }
 0x151   :  { %v3964_v30 = vpop.eup %3963  ;;  %3987 = vrcp.f32 %v621_v13  ;;  %v567_v31 = vmul.f32 1.442695, %v512_v18  ;;  %1807 = vmatmul.mubr.bf16.gmra.mxu1 %v1648_v9  ;;  %v417_v32 = vadd.f32 %v4498_v51, %v416_v28  ;;  %v902_v20 = vpop.f32.mrf.mxu1  ;;  %v1218_v35 = vmul.f32 %v4188_v33, %v3962_v22  ;;  %2079 = vmatpush1.bf16.msra.mxu0 %v3859_v6 }
 0x152   :  { %v3966_v37 = vpop.eup %3965  ;;  %3989 = vrcp.f32 %v1107_v23  ;;  %v1053_v34 = vmul.f32 1.442695, %v998_v24  ;;  %v1326_v38 = vpack.c.bf16 %v1292_v26, %v1291_v10  ;;  %v903_v41 = vadd.f32 %v4503_v52, %v902_v20  ;;  %v3542_v42 = vpop.f32.mrf.mxu0  ;;  %1816 = vmatprep.mubr.bf16.mxu1 %v4344_v50  ;;  %2080 = vmatprep.subr.bf16.mxu0 %v3864_v11  ;;  %v4191_v23 = vld [vmem:[#allocation2 + $0x50] sm:$0xff] }
 0x153   :  { %v3968_v43 = vpop.eup %3967  ;;  %v622_v44 = vadd.f32 1.0, %v3966_v37  ;;  %3991 = vpow2.f32 %v1051_v15  ;;  %v513_v46 = vsub.f32 0.0, %v417_v32  ;;  %v3634_v25 = vpop.f32.mrf.mxu1  ;;  %v1649_v47 = vpack.c.bf16 %v1218_v35, %v4591_v29  ;;  %v4193_v42 = vld [vmem:[#allocation5 + $0x50] sm:$0xff] }
 0x154   :  { %v3970_v48 = vpop.eup %3969  ;;  %v1108_v53 = vadd.f32 1.0, %v3968_v43  ;;  %3993 = vpow2.f32 %v567_v31  ;;  %1485 = vmatmul.mubr.bf16.gmra.mxu0 %v1326_v38  ;;  %v999_v54 = vsub.f32 0.0, %v903_v41  ;;  %v419_v55 = vpop.f32.mrf.mxu0  ;;  %v4597_v57 = vmul.f32 %v4189_v56, %v3956_v63 }
 0x155   :  { %v3972_v58 = vpop.eup %3971  ;;  %3995 = vrcp.f32 %v622_v44  ;;  %v569_v59 = vmul.f32 1.442695, %v513_v46  ;;  %v420_v1 = vadd.f32 %v4498_v51, %v419_v55  ;;  %v905_v3 = vpop.f32.mrf.mxu1  ;;  %1494 = vmatprep.mubr.bf16.mxu0 %v4344_v50  ;;  %v4601_v16 = vmul.f32 %v4190_v5, %v3964_v30  ;;  %2081 = vmatpush1.bf16.msra.mxu0 %v3862_v36  ;;  %v4194_v5 = vld [vmem:[#allocation5 + $0x58] sm:$0xff] }
 0x156   :  { %v3974_v6 = vpop.eup %3973  ;;  %3997 = vrcp.f32 %v1108_v53  ;;  %v1055_v7 = vmul.f32 1.442695, %v999_v54  ;;  %v906_v8 = vadd.f32 %v4503_v52, %v905_v3  ;;  %v3543_v9 = vpop.f32.mrf.mxu0  ;;  %v1293_v63 = vmul.f32 %v4597_v57, %v4591_v29 }
 0x157   :  { %v3976_v19 = vpop.eup %3975  ;;  %v623_v10 = vadd.f32 1.0, %v3974_v6  ;;  %3999 = vpow2.f32 %v1053_v34  ;;  %v514_v11 = vsub.f32 0.0, %v420_v1  ;;  %v3635_v12 = vpop.f32.mrf.mxu1  ;;  %v1294_v13 = vmul.f32 %v4601_v16, %v1218_v35  ;;  %v4192_v35 = vld [vmem:[#allocation2 + $0x58] sm:$0xff] }
 0x158   :  { %v3978_v15 = vpop.eup %3977  ;;  %v1109_v18 = vadd.f32 1.0, %v3976_v19  ;;  %4001 = vpow2.f32 %v569_v59  ;;  %v1000_v21 = vsub.f32 0.0, %v906_v8  ;;  %v424_v22 = vpop.f32.mrf.mxu0  ;;  %v1219_v24 = vmul.f32 %v4191_v23, %v3970_v48  ;;  %v4195_v19 = vld [vmem:[#allocation2 + $0x60] sm:$0xff] }
 0x159   :  { %v3980_v26 = vpop.eup %3979  ;;  %4003 = vrcp.f32 %v623_v10  ;;  %v571_v28 = vmul.f32 1.442695, %v514_v11  ;;  %1817 = vmatmul.mubr.bf16.gmra.mxu1 %v1649_v47  ;;  %v1327_v17 = vpack.c.bf16 %v1294_v13, %v1293_v63  ;;  %v425_v29 = vadd.f32 %v4498_v51, %v424_v22  ;;  %v910_v30 = vpop.f32.mrf.mxu1 }
 0x15a   :  { %v3982_v31 = vpop.eup %3981  ;;  %4005 = vrcp.f32 %v1109_v18  ;;  %v1057_v32 = vmul.f32 1.442695, %v1000_v21  ;;  %v911_v20 = vadd.f32 %v4503_v52, %v910_v30  ;;  %v3546_v33 = vpop.f32.mrf.mxu0  ;;  %1826 = vmatprep.mubr.bf16.mxu1 %v4344_v50  ;;  %v1220_v36 = vmul.f32 %v4192_v35, %v3978_v15  ;;  %v4196_v18 = vld [vmem:[#allocation5 + $0x60] sm:$0xff] }
 0x15b   :  { %v3984_v37 = vpop.eup %3983  ;;  %v624_v34 = vadd.f32 1.0, %v3982_v31  ;;  %4007 = vpow2.f32 %v1055_v7  ;;  %v515_v38 = vsub.f32 0.0, %v425_v29  ;;  %v3638_v41 = vpop.f32.mrf.mxu1  ;;  %v4610_v43 = vmul.f32 %v4193_v42, %v3972_v58 }
 0x15c   :  { %v3986_v44 = vpop.eup %3985  ;;  %v1110_v46 = vadd.f32 1.0, %v3984_v37  ;;  %4009 = vpow2.f32 %v571_v28  ;;  %1495 = vmatmul.mubr.bf16.gmra.mxu0 %v1327_v17  ;;  %v1001_v25 = vsub.f32 0.0, %v911_v20  ;;  %v427_v47 = vpop.f32.mrf.mxu0  ;;  %v1650_v48 = vpack.c.bf16 %v1220_v36, %v1219_v24  ;;  %v4197_v37 = vld [vmem:[#allocation2 + $0x68] sm:$0xff]  ;;  %v4198_v41 = vld [vmem:[#allocation5 + $0x68] sm:$0xff] }
 0x15d   :  { %4011 = vrcp.f32 %v624_v34  ;;  %v625_v53 = vadd.f32 1.0, %v3986_v44  ;;  %v573_v54 = vmul.f32 1.442695, %v515_v38  ;;  %v428_v55 = vadd.f32 %v4498_v51, %v427_v47  ;;  %v913_v56 = vpop.f32.mrf.mxu1  ;;  %1504 = vmatprep.mubr.bf16.mxu0 %v4344_v50 }
 0x15e   :  { %v3988_v59 = vpop.eup %3987  ;;  %4013 = vrcp.f32 %v1110_v46  ;;  %v1059_v1 = vmul.f32 1.442695, %v1001_v25  ;;  %v914_v58 = vadd.f32 %v4503_v52, %v913_v56  ;;  %v3547_v3 = vpop.f32.mrf.mxu0  ;;  %v4615_v6 = vmul.f32 %v4194_v5, %v3980_v26  ;;  %v4636_v56 = vld [vmem:[%s5609_s3] ss:$0 sm:$0xff] }
 0x15f   :  { %v3990_v7 = vpop.eup %3989  ;;  %4015 = vrcp.f32 %v625_v53  ;;  %v516_v8 = vsub.f32 0.0, %v428_v55  ;;  %v3639_v9 = vpop.f32.mrf.mxu1  ;;  %v1295_v63 = vmul.f32 %v4610_v43, %v1219_v24  ;;  %v4618_v10 = vmul.f32 %v4195_v19, %v3988_v59 }
 0x160   :  { %v3992_v11 = vpop.eup %3991  ;;  %4017 = vpow2.f32 %v1057_v32  ;;  %v1002_v12 = vsub.f32 0.0, %v914_v58  ;;  %v1296_v13 = vmul.f32 %v4615_v6, %v1220_v36  ;;  %v432_v15 = vpop.f32.mrf.mxu0  ;;  %v4621_v21 = vmul.f32 %v4196_v18, %v3990_v7 }
 0x161   :  { %v3994_v22 = vpop.eup %3993  ;;  %v1111_v23 = vadd.f32 1.0, %v3992_v11  ;;  %4019 = vpow2.f32 %v573_v54  ;;  %v575_v26 = vmul.f32 1.442695, %v516_v8  ;;  %1827 = vmatmul.mubr.bf16.gmra.mxu1 %v1650_v48  ;;  %v433_v28 = vadd.f32 %v4498_v51, %v432_v15  ;;  %v918_v24 = vpop.f32.mrf.mxu1  ;;  %v4201_v15 = vld [vmem:[#allocation2 + $0x70] sm:$0xff] }
 0x162   :  { %v3996_v17 = vpop.eup %3995  ;;  %v626_v29 = vadd.f32 1.0, %v3994_v22  ;;  %4021 = vpow2.f32 %v1059_v1  ;;  %v1061_v30 = vmul.f32 1.442695, %v1002_v12  ;;  %v1328_v31 = vpack.c.bf16 %v1296_v13, %v1295_v63  ;;  %v3550_v32 = vpop.f32.mrf.mxu0  ;;  %1836 = vmatprep.mubr.bf16.mxu1 %v4344_v50  ;;  %v4642_v1 = vld [vmem:[%s5609_s3 + $0x1] ss:$0 sm:$0xff] }
 0x163   :  { %v3998_v20 = vpop.eup %3997  ;;  %4023 = vrcp.f32 %v1111_v23  ;;  %v517_v33 = vsub.f32 0.0, %v433_v28  ;;  %v919_v35 = vadd.f32 %v4503_v52, %v918_v24  ;;  %v3642_v36 = vpop.f32.mrf.mxu1  ;;  %v1222_v34 = vmul.f32 %v4197_v37, %v3996_v17 }
 0x164   :  { %v4000_v38 = vpop.eup %3999  ;;  %4025 = vrcp.f32 %v626_v29  ;;  %1505 = vmatmul.mubr.bf16.gmra.mxu0 %v1328_v31  ;;  %v435_v51 = vpop.f32.mrf.mxu0  ;;  %v4626_v42 = vmul.f32 %v4198_v41, %v3998_v20  ;;  %v1297_v44 = vmul.f32 %v4621_v21, %v4618_v10  ;;  %v1970_v46 = vpack.c.bf16 %v4580_v61, %v4578_v27  ;;  %v4202_v36 = vld [vmem:[#allocation2 + $0x78] sm:$0xff]  ;;  %v3871_v61 = vld [vmem:[#allocation7 + $0x68] ss:$36 sps:$4 sm:$0xff]  }
 0x165   :  { %v4002_v25 = vpop.eup %4001  ;;  %v1112_v47 = vadd.f32 1.0, %v4000_v38  ;;  %4027 = vpow2.f32 %v575_v26  ;;  %v577_v52 = vmul.f32 1.442695, %v517_v33  ;;  %v1003_v48 = vsub.f32 0.0, %v919_v35  ;;  %v921_v53 = vpop.f32.mrf.mxu1  ;;  %1514 = vmatprep.mubr.bf16.mxu0 %v4344_v50 }
 0x166   :  { %v4004_v54 = vpop.eup %4003  ;;  %v627_v55 = vadd.f32 1.0, %v4002_v25  ;;  %4029 = vpow2.f32 %v1061_v30  ;;  %v436_v59 = vadd.f32 %v4636_v56, %v435_v51  ;;  %v922_v58 = vadd.f32 %v4642_v1, %v921_v53  ;;  %v3551_v3 = vpop.f32.mrf.mxu0  ;;  %v4203_v51 = vld [vmem:[#allocation5 + $0x70] sm:$0xff] }
 0x167   :  { %v4006_v5 = vpop.eup %4005  ;;  %4031 = vrcp.f32 %v1112_v47  ;;  %v1063_v7 = vmul.f32 1.442695, %v1003_v48  ;;  %v1651_v8 = vpack.c.bf16 %v1222_v34, %v4618_v10  ;;  %v3643_v9 = vpop.f32.mrf.mxu1  ;;  %v1298_v63 = vmul.f32 %v4626_v42, %v1222_v34 }
 0x168   :  { %v4008_v19 = vpop.eup %4007  ;;  %4033 = vrcp.f32 %v627_v55  ;;  %v518_v11 = vsub.f32 0.0, %v436_v59  ;;  %v1004_v12 = vsub.f32 0.0, %v922_v58  ;;  %v440_v13 = vpop.f32.mrf.mxu0  ;;  %v1223_v18 = vmul.f32 %v4201_v15, %v4004_v54 }
 0x169   :  { %v4010_v22 = vpop.eup %4009  ;;  %v1113_v23 = vadd.f32 1.0, %v4008_v19  ;;  %4035 = vpow2.f32 %v577_v52  ;;  %1837 = vmatmul.mubr.bf16.gmra.mxu1 %v1651_v8  ;;  %v1329_v26 = vpack.c.bf16 %v1298_v63, %v1297_v44  ;;  %v441_v28 = vadd.f32 %v4636_v56, %v440_v13  ;;  %v926_v24 = vpop.f32.mrf.mxu1  ;;  %v4204_v44 = vld [vmem:[#allocation5 + $0x78] sm:$0xff] }
 0x16a   :  { %v4012_v17 = vpop.eup %4011  ;;  %v628_v10 = vadd.f32 1.0, %v4010_v22  ;;  %4037 = vpow2.f32 %v1063_v7  ;;  %v579_v29 = vmul.f32 1.442695, %v518_v11  ;;  %v1065_v30 = vmul.f32 1.442695, %v1004_v12  ;;  %v3554_v31 = vpop.f32.mrf.mxu0  ;;  %1846 = vmatprep.mubr.bf16.mxu1 %v4344_v50 }
 0x16b   :  { %v4014_v32 = vpop.eup %4013  ;;  %4039 = vrcp.f32 %v1113_v23  ;;  %v519_v20 = vsub.f32 0.0, %v441_v28  ;;  %v927_v33 = vadd.f32 %v4642_v1, %v926_v24  ;;  %v3646_v35 = vpop.f32.mrf.mxu1  ;;  %v1224_v37 = vmul.f32 %v4202_v36, %v4012_v17 }
 0x16c   :  { %v4016_v34 = vpop.eup %4015  ;;  %4041 = vrcp.f32 %v628_v10  ;;  %1515 = vmatmul.mubr.bf16.gmra.mxu0 %v1329_v26  ;;  %v443_v38 = vpop.f32.mrf.mxu0  ;;  %v4650_v41 = vmul.f32 %v4203_v51, %v4006_v5  ;;  %v4652_v25 = vmul.f32 %v4204_v44, %v4014_v32  ;;  %v1971_v47 = vpack.c.bf16 %v4601_v16, %v4597_v57 }
 0x16d   :  { %v4018_v52 = vpop.eup %4017  ;;  %4043 = vpow2.f32 %v579_v29  ;;  %v581_v48 = vmul.f32 1.442695, %v519_v20  ;;  %v1005_v53 = vsub.f32 0.0, %v927_v33  ;;  %v444_v54 = vadd.f32 %v4636_v56, %v443_v38  ;;  %v929_v55 = vpop.f32.mrf.mxu1  ;;  %1524 = vmatprep.mubr.bf16.mxu0 %v4344_v50  ;;  %v4205_v20 = vld [vmem:[#allocation2 + $0x80] sm:$0xff] }
 0x16e   :  { %v4020_v59 = vpop.eup %4019  ;;  %v1114_v58 = vadd.f32 1.0, %v4018_v52  ;;  %4045 = vpow2.f32 %v1065_v30  ;;  %v930_v3 = vadd.f32 %v4642_v1, %v929_v55  ;;  %v1652_v5 = vpack.c.bf16 %v1224_v37, %v1223_v18  ;;  %v3555_v7 = vpop.f32.mrf.mxu0 }
 0x16f   :  { %v4022_v8 = vpop.eup %4021  ;;  %v629_v9 = vadd.f32 1.0, %v4020_v59  ;;  %4047 = vpow2.f32 %v581_v48  ;;  %v1067_v63 = vmul.f32 1.442695, %v1005_v53  ;;  %v520_v19 = vsub.f32 0.0, %v444_v54  ;;  %v3647_v11 = vpop.f32.mrf.mxu1  ;;  %v4206_v53 = vld [vmem:[#allocation2 + $0x88] sm:$0xff] }
 0x170   :  { %v4024_v12 = vpop.eup %4023  ;;  %4049 = vrcp.f32 %v1114_v58  ;;  %v1115_v13 = vadd.f32 1.0, %v4022_v8  ;;  %v1006_v15 = vsub.f32 0.0, %v930_v3  ;;  %v1299_v22 = vmul.f32 %v4650_v41, %v1223_v18  ;;  %v448_v23 = vpop.f32.mrf.mxu0  ;;  %v4207_v3 = vld [vmem:[#allocation5 + $0x80] sm:$0xff] }
 0x171   :  { %v4026_v26 = vpop.eup %4025  ;;  %4051 = vrcp.f32 %v629_v9  ;;  %v583_v28 = vmul.f32 1.442695, %v520_v19  ;;  %1847 = vmatmul.mubr.bf16.gmra.mxu1 %v1652_v5  ;;  %v1300_v24 = vmul.f32 %v4652_v25, %v1224_v37  ;;  %v449_v17 = vadd.f32 %v4636_v56, %v448_v23  ;;  %v934_v10 = vpop.f32.mrf.mxu1  ;;  %v4208_v23 = vld [vmem:[#allocation5 + $0x88] sm:$0xff] }
 0x172   :  { %v4028_v29 = vpop.eup %4027  ;;  %4053 = vrcp.f32 %v1115_v13  ;;  %v1069_v30 = vmul.f32 1.442695, %v1006_v15  ;;  %v935_v31 = vadd.f32 %v4642_v1, %v934_v10  ;;  %v3558_v32 = vpop.f32.mrf.mxu0  ;;  %1856 = vmatprep.mubr.bf16.mxu1 %v4344_v50  ;;  %v1225_v18 = vmul.f32 %v4205_v20, %v4016_v34 }
 0x173   :  { %v4030_v33 = vpop.eup %4029  ;;  %v630_v35 = vadd.f32 1.0, %v4028_v29  ;;  %4055 = vpow2.f32 %v1067_v63  ;;  %v1330_v36 = vpack.c.bf16 %v1300_v24, %v1299_v22  ;;  %v521_v38 = vsub.f32 0.0, %v449_v17  ;;  %v3650_v51 = vpop.f32.mrf.mxu1 }
 0x174   :  { %v4032_v37 = vpop.eup %4031  ;;  %v1116_v44 = vadd.f32 1.0, %v4030_v33  ;;  %4057 = vpow2.f32 %v583_v28  ;;  %v1007_v52 = vsub.f32 0.0, %v935_v31  ;;  %v451_v48 = vpop.f32.mrf.mxu0  ;;  %v1226_v54 = vmul.f32 %v4206_v53, %v4026_v26  ;;  %v4209_v51 = vld [vmem:[#allocation2 + $0x90] sm:$0xff] }
 0x175   :  { %v4034_v55 = vpop.eup %4033  ;;  %4059 = vrcp.f32 %v630_v35  ;;  %1525 = vmatmul.mubr.bf16.gmra.mxu0 %v1330_v36  ;;  %v585_v59 = vmul.f32 1.442695, %v521_v38  ;;  %v452_v58 = vadd.f32 %v4636_v56, %v451_v48  ;;  %v937_v34 = vpop.f32.mrf.mxu1  ;;  %v4665_v5 = vmul.f32 %v4207_v3, %v4024_v12  ;;  %v4210_v3 = vld [vmem:[#allocation2 + $0x98] sm:$0xff] }
 0x176   :  { %v4036_v7 = vpop.eup %4035  ;;  %4061 = vrcp.f32 %v1116_v44  ;;  %v1071_v8 = vmul.f32 1.442695, %v1007_v52  ;;  %v938_v9 = vadd.f32 %v4642_v1, %v937_v34  ;;  %v1653_v63 = vpack.c.bf16 %v1226_v54, %v1225_v18  ;;  %v3559_v19 = vpop.f32.mrf.mxu0  ;;  %1534 = vmatprep.mubr.bf16.mxu0 %v4344_v50 }
 0x177   :  { %v4038_v11 = vpop.eup %4037  ;;  %v631_v13 = vadd.f32 1.0, %v4036_v7  ;;  %4063 = vpow2.f32 %v1069_v30  ;;  %v522_v15 = vsub.f32 0.0, %v452_v58  ;;  %v3651_v22 = vpop.f32.mrf.mxu1  ;;  %v4669_v26 = vmul.f32 %v4208_v23, %v4032_v37 }
 0x178   :  { %v4040_v28 = vpop.eup %4039  ;;  %v1117_v12 = vadd.f32 1.0, %v4038_v11  ;;  %4065 = vpow2.f32 %v585_v59  ;;  %v1008_v24 = vsub.f32 0.0, %v938_v9  ;;  %v1301_v17 = vmul.f32 %v4665_v5, %v1225_v18  ;;  %v456_v10 = vpop.f32.mrf.mxu0 }
 0x179   :  { %v4042_v29 = vpop.eup %4041  ;;  %4067 = vrcp.f32 %v631_v13  ;;  %v587_v31 = vmul.f32 1.442695, %v522_v15  ;;  %1857 = vmatmul.mubr.bf16.gmra.mxu1 %v1653_v63  ;;  %v1302_v32 = vmul.f32 %v4669_v26, %v1226_v54  ;;  %v457_v30 = vadd.f32 %v4636_v56, %v456_v10  ;;  %v942_v20 = vpop.f32.mrf.mxu1  ;;  %v4211_v10 = vld [vmem:[#allocation5 + $0x90] sm:$0xff] }
 0x17a   :  { %v4044_v33 = vpop.eup %4043  ;;  %4069 = vrcp.f32 %v1117_v12  ;;  %v1073_v35 = vmul.f32 1.442695, %v1008_v24  ;;  %v943_v36 = vadd.f32 %v4642_v1, %v942_v20  ;;  %v3562_v38 = vpop.f32.mrf.mxu0  ;;  %1866 = vmatprep.mubr.bf16.mxu1 %v4344_v50  ;;  %v1227_v18 = vmul.f32 %v4209_v51, %v4034_v55  ;;  %v4214_v51 = vld [vmem:[#allocation5 + $0xa0] sm:$0xff] }
 0x17b   :  { %v4046_v37 = vpop.eup %4045  ;;  %v632_v44 = vadd.f32 1.0, %v4044_v33  ;;  %4071 = vpow2.f32 %v1071_v8  ;;  %v1331_v52 = vpack.c.bf16 %v1302_v32, %v1301_v17  ;;  %v523_v48 = vsub.f32 0.0, %v457_v30  ;;  %v3654_v53 = vpop.f32.mrf.mxu1 }
 0x17c   :  { %v4048_v54 = vpop.eup %4047  ;;  %v1118_v59 = vadd.f32 1.0, %v4046_v37  ;;  %4073 = vpow2.f32 %v587_v31  ;;  %v1009_v58 = vsub.f32 0.0, %v943_v36  ;;  %v459_v34 = vpop.f32.mrf.mxu0  ;;  %v1228_v7 = vmul.f32 %v4210_v3, %v4042_v29  ;;  %v4212_v31 = vld [vmem:[#allocation5 + $0x98] sm:$0xff]  ;;  %v4213_v36 = vld [vmem:[#allocation2 + $0xa0] sm:$0xff] }
 0x17d   :  { %v4050_v9 = vpop.eup %4049  ;;  %4075 = vrcp.f32 %v632_v44  ;;  %v633_v63 = vadd.f32 1.0, %v4048_v54  ;;  %1535 = vmatmul.mubr.bf16.gmra.mxu0 %v1331_v52  ;;  %v589_v19 = vmul.f32 1.442695, %v523_v48  ;;  %v460_v55 = vadd.f32 %v4636_v56, %v459_v34  ;;  %v945_v11 = vpop.f32.mrf.mxu1 }
 0x17e   :  { %v4052_v13 = vpop.eup %4051  ;;  %4077 = vrcp.f32 %v1118_v59  ;;  %v1075_v8 = vmul.f32 1.442695, %v1009_v58  ;;  %v946_v15 = vadd.f32 %v4642_v1, %v945_v11  ;;  %v1654_v22 = vpack.c.bf16 %v1228_v7, %v1227_v18  ;;  %v3563_v23 = vpop.f32.mrf.mxu0  ;;  %1544 = vmatprep.mubr.bf16.mxu0 %v4344_v50 }
 0x17f   :  { %v4054_v12 = vpop.eup %4053  ;;  %4079 = vrcp.f32 %v633_v63  ;;  %v524_v24 = vsub.f32 0.0, %v460_v55  ;;  %v3655_v17 = vpop.f32.mrf.mxu1  ;;  %v4679_v29 = vmul.f32 %v4211_v10, %v4040_v28  ;;  %v4681_v32 = vmul.f32 %v4212_v31, %v4050_v9  ;;  %v4215_v55 = vld [vmem:[#allocation2 + $0xa8] sm:$0xff] }
 0x180   :  { %v4056_v30 = vpop.eup %4055  ;;  %4081 = vpow2.f32 %v1073_v35  ;;  %v1010_v20 = vsub.f32 0.0, %v946_v15  ;;  %v464_v33 = vpop.f32.mrf.mxu0  ;;  %v1229_v38 = vmul.f32 %v4213_v36, %v4052_v13  ;;  %v4683_v37 = vmul.f32 %v4214_v51, %v4054_v12 }
 0x181   :  { %v4058_v44 = vpop.eup %4057  ;;  %v1119_v52 = vadd.f32 1.0, %v4056_v30  ;;  %4083 = vpow2.f32 %v589_v19  ;;  %v591_v48 = vmul.f32 1.442695, %v524_v24  ;;  %1867 = vmatmul.mubr.bf16.gmra.mxu1 %v1654_v22  ;;  %v1303_v28 = vmul.f32 %v4679_v29, %v1227_v18  ;;  %v950_v53 = vpop.f32.mrf.mxu1 }
 0x182   :  { %v4060_v54 = vpop.eup %4059  ;;  %v634_v59 = vadd.f32 1.0, %v4058_v44  ;;  %4085 = vpow2.f32 %v1075_v8  ;;  %v1077_v58 = vmul.f32 1.442695, %v1010_v20  ;;  %v1304_v35 = vmul.f32 %v4681_v32, %v1228_v7  ;;  %v3566_v34 = vpop.f32.mrf.mxu0  ;;  %1876 = vmatprep.mubr.bf16.mxu1 %v4344_v50  ;;  %v4216_v8 = vld [vmem:[#allocation5 + $0xa8] sm:$0xff] }
 0x183   :  { %v4062_v3 = vpop.eup %4061  ;;  %4087 = vrcp.f32 %v1119_v52  ;;  %v465_v9 = vadd.f32 %v4636_v56, %v464_v33  ;;  %v951_v63 = vadd.f32 %v4642_v1, %v950_v53  ;;  %v3658_v19 = vpop.f32.mrf.mxu1  ;;  %v1230_v11 = vmul.f32 %v4215_v55, %v4060_v54 }
 0x184   :  { %v4064_v18 = vpop.eup %4063  ;;  %4089 = vrcp.f32 %v634_v59  ;;  %v1332_v13 = vpack.c.bf16 %v1304_v35, %v1303_v28  ;;  %v467_v15 = vpop.f32.mrf.mxu0  ;;  %v4690_v22 = vmul.f32 %v4216_v8, %v4062_v3  ;;  %v4693_v7 = vmul.f32 %v4683_v37, %v1229_v38  ;;  %v4217_v19 = vld [vmem:[#allocation2 + $0xb0] sm:$0xff] }
 0x185   :  { %v4066_v23 = vpop.eup %4065  ;;  %v1120_v12 = vadd.f32 1.0, %v4064_v18  ;;  %4091 = vpow2.f32 %v591_v48  ;;  %v525_v24 = vsub.f32 0.0, %v465_v9  ;;  %v1011_v17 = vsub.f32 0.0, %v951_v63  ;;  %v953_v10 = vpop.f32.mrf.mxu1 }
 0x186   :  { %v4068_v31 = vpop.eup %4067  ;;  %v635_v30 = vadd.f32 1.0, %v4066_v23  ;;  %4093 = vpow2.f32 %v1077_v58  ;;  %1545 = vmatmul.mubr.bf16.gmra.mxu0 %v1332_v13  ;;  %v468_v20 = vadd.f32 %v4636_v56, %v467_v15  ;;  %v954_v33 = vadd.f32 %v4642_v1, %v953_v10  ;;  %v3567_v36 = vpop.f32.mrf.mxu0 }
 0x187   :  { %v4070_v51 = vpop.eup %4069  ;;  %4095 = vrcp.f32 %v1120_v12  ;;  %v593_v44 = vmul.f32 1.442695, %v525_v24  ;;  %v1079_v52 = vmul.f32 1.442695, %v1011_v17  ;;  %v1655_v28 = vpack.c.bf16 %v1230_v11, %v1229_v38  ;;  %v3659_v53 = vpop.f32.mrf.mxu1  ;;  %1554 = vmatprep.mubr.bf16.mxu0 %v4344_v50 }
 0x188   :  { %v4072_v48 = vpop.eup %4071  ;;  %4097 = vrcp.f32 %v635_v30  ;;  %v526_v54 = vsub.f32 0.0, %v468_v20  ;;  %v1012_v59 = vsub.f32 0.0, %v954_v33  ;;  %v1306_v58 = vmul.f32 %v4690_v22, %v1230_v11  ;;  %v472_v35 = vpop.f32.mrf.mxu0  ;;  %v4219_v33 = vld [vmem:[#allocation5 + $0xb0] sm:$0xff] }
 0x189   :  { %v4074_v34 = vpop.eup %4073  ;;  %v1121_v3 = vadd.f32 1.0, %v4072_v48  ;;  %4099 = vpow2.f32 %v593_v44  ;;  %1877 = vmatmul.mubr.bf16.gmra.mxu1 %v1655_v28  ;;  %v473_v9 = vadd.f32 %v4636_v56, %v472_v35  ;;  %v958_v63 = vpop.f32.mrf.mxu1  ;;  %v1231_v55 = vmul.f32 %v4217_v19, %v4068_v31  ;;  %v4218_v31 = vld [vmem:[#allocation2 + $0xb8] sm:$0xff]  ;;  %v4220_v44 = vld [vmem:[#allocation5 + $0xb8] sm:$0xff] }
 0x18a   :  { %v4076_v38 = vpop.eup %4075  ;;  %v636_v18 = vadd.f32 1.0, %v4074_v34  ;;  %4101 = vpow2.f32 %v1079_v52  ;;  %v595_v13 = vmul.f32 1.442695, %v526_v54  ;;  %v1081_v15 = vmul.f32 1.442695, %v1012_v59  ;;  %v3570_v8 = vpop.f32.mrf.mxu0  ;;  %1886 = vmatprep.mubr.bf16.mxu1 %v4344_v50 }
 0x18b   :  { %v4078_v23 = vpop.eup %4077  ;;  %4103 = vrcp.f32 %v1121_v3  ;;  %v1333_v11 = vpack.c.bf16 %v1306_v58, %v4693_v7  ;;  %v527_v12 = vsub.f32 0.0, %v473_v9  ;;  %v959_v24 = vadd.f32 %v4642_v1, %v958_v63  ;;  %v3662_v17 = vpop.f32.mrf.mxu1  ;;  %v3865_v28 = vld [vmem:[#allocation7 + $0x218] ss:$36 sps:$4 sm:$0xff]  }
 0x18c   :  { %v4080_v10 = vpop.eup %4079  ;;  %4105 = vrcp.f32 %v636_v18  ;;  %v475_v30 = vpop.f32.mrf.mxu0  ;;  %v1232_v20 = vmul.f32 %v4218_v31, %v4076_v38  ;;  %v4703_v36 = vmul.f32 %v4219_v33, %v4070_v51  ;;  %v4705_v52 = vmul.f32 %v4220_v44, %v4078_v23  ;;  %3673 = vmatpush3.bf16.msra.mxu1 %v3865_v28 }
 0x18d   :  { %v4082_v53 = vpop.eup %4081  ;;  %4107 = vpow2.f32 %v595_v13  ;;  %v597_v48 = vmul.f32 1.442695, %v527_v12  ;;  %v1013_v7 = vsub.f32 0.0, %v959_v24  ;;  %v476_v54 = vadd.f32 %v4636_v56, %v475_v30  ;;  %v961_v59 = vpop.f32.mrf.mxu1  ;;  %3674 = vmatprep.subr.bf16.mxu1 %v5611_v0 }
 0x18e   :  { %v4084_v58 = vpop.eup %4083  ;;  %v1122_v35 = vadd.f32 1.0, %v4082_v53  ;;  %4109 = vpow2.f32 %v1081_v15  ;;  %1555 = vmatmul.mubr.bf16.gmra.mxu0 %v1333_v11  ;;  %v962_v34 = vadd.f32 %v4642_v1, %v961_v59  ;;  %v1656_v3 = vpack.c.bf16 %v1232_v20, %v1231_v55  ;;  %v3571_v51 = vpop.f32.mrf.mxu0 }
 0x18f   :  { %v4086_v9 = vpop.eup %4085  ;;  %v637_v63 = vadd.f32 1.0, %v4084_v58  ;;  %4111 = vpow2.f32 %v597_v48  ;;  %v1083_v19 = vmul.f32 1.442695, %v1013_v7  ;;  %v528_v38 = vsub.f32 0.0, %v476_v54  ;;  %v3663_v18 = vpop.f32.mrf.mxu1  ;;  %1564 = vmatprep.mubr.bf16.mxu0 %v4344_v50  ;;  %v4221_v48 = vld [vmem:[#allocation2 + $0xc0] sm:$0xff] }
 0x190   :  { %v4088_v13 = vpop.eup %4087  ;;  %4113 = vrcp.f32 %v1122_v35  ;;  %v1123_v8 = vadd.f32 1.0, %v4086_v9  ;;  %v1014_v15 = vsub.f32 0.0, %v962_v34  ;;  %v1307_v23 = vmul.f32 %v4703_v36, %v1231_v55  ;;  %v480_v11 = vpop.f32.mrf.mxu0  ;;  %v4222_v9 = vld [vmem:[#allocation2 + $0xc8] sm:$0xff] }
 0x191   :  { %v4090_v12 = vpop.eup %4089  ;;  %4115 = vrcp.f32 %v637_v63  ;;  %v599_v24 = vmul.f32 1.442695, %v528_v38  ;;  %1887 = vmatmul.mubr.bf16.gmra.mxu1 %v1656_v3  ;;  %v1308_v17 = vmul.f32 %v4705_v52, %v1232_v20  ;;  %v481_v30 = vadd.f32 %v4636_v56, %v480_v11  ;;  %v966_v31 = vpop.f32.mrf.mxu1 }
 0x192   :  { %v4092_v33 = vpop.eup %4091  ;;  %4117 = vrcp.f32 %v1123_v8  ;;  %v1085_v44 = vmul.f32 1.442695, %v1014_v15  ;;  %v967_v28 = vadd.f32 %v4642_v1, %v966_v31  ;;  %v3574_v53 = vpop.f32.mrf.mxu0  ;;  %1896 = vmatprep.mubr.bf16.mxu1 %v4344_v50  ;;  %v1233_v55 = vmul.f32 %v4221_v48, %v4080_v10  ;;  %v4223_v10 = vld [vmem:[#allocation5 + $0xc0] sm:$0xff] }
 0x193   :  { %v4094_v7 = vpop.eup %4093  ;;  %v638_v54 = vadd.f32 1.0, %v4092_v33  ;;  %4119 = vpow2.f32 %v1083_v19  ;;  %v1334_v59 = vpack.c.bf16 %v1308_v17, %v1307_v23  ;;  %v529_v58 = vsub.f32 0.0, %v481_v30  ;;  %v3666_v35 = vpop.f32.mrf.mxu1  ;;  %v4224_v53 = vld [vmem:[#allocation5 + $0xc8] sm:$0xff] }
 0x194   :  { %v4096_v20 = vpop.eup %4095  ;;  %v1124_v34 = vadd.f32 1.0, %v4094_v7  ;;  %4121 = vpow2.f32 %v599_v24  ;;  %v1015_v3 = vsub.f32 0.0, %v967_v28  ;;  %v483_v51 = vpop.f32.mrf.mxu0  ;;  %v1234_v63 = vmul.f32 %v4222_v9, %v4090_v12 }
 0x195   :  { %v4098_v38 = vpop.eup %4097  ;;  %4123 = vrcp.f32 %v638_v54  ;;  %v601_v18 = vmul.f32 1.442695, %v529_v58  ;;  %v484_v8 = vadd.f32 %v4636_v56, %v483_v51  ;;  %v969_v15 = vpop.f32.mrf.mxu1  ;;  %v4717_v11 = vmul.f32 %v4223_v10, %v4088_v13 }
 0x196   :  { %v4100_v19 = vpop.eup %4099  ;;  %4125 = vrcp.f32 %v1124_v34  ;;  %1565 = vmatmul.mubr.bf16.gmra.mxu0 %v1334_v59  ;;  %v1087_v23 = vmul.f32 1.442695, %v1015_v3  ;;  %v970_v17 = vadd.f32 %v4642_v1, %v969_v15  ;;  %v1657_v24 = vpack.c.bf16 %v1234_v63, %v1233_v55  ;;  %v3575_v30 = vpop.f32.mrf.mxu0 }
 0x197   :  { %v4102_v31 = vpop.eup %4101  ;;  %v639_v33 = vadd.f32 1.0, %v4100_v19  ;;  %4127 = vpow2.f32 %v1085_v44  ;;  %v530_v12 = vsub.f32 0.0, %v484_v8  ;;  %v3667_v28 = vpop.f32.mrf.mxu1  ;;  %1574 = vmatprep.mubr.bf16.mxu0 %v4344_v50  ;;  %v4721_v48 = vmul.f32 %v4224_v53, %v4096_v20 }
 0x198   :  { %v4104_v13 = vpop.eup %4103  ;;  %v1125_v7 = vadd.f32 1.0, %v4102_v31  ;;  %4129 = vpow2.f32 %v601_v18  ;;  %v1016_v54 = vsub.f32 0.0, %v970_v17  ;;  %v1309_v59 = vmul.f32 %v4717_v11, %v1233_v55  ;;  %v488_v58 = vpop.f32.mrf.mxu0  ;;  %v4225_v18 = vld [vmem:[#allocation2 + $0xd0] sm:$0xff]  ;;  %v4226_v28 = vld [vmem:[#allocation2 + $0xd8] sm:$0xff] }
 0x199   :  { %v4106_v35 = vpop.eup %4105  ;;  %4131 = vrcp.f32 %v639_v33  ;;  %v603_v34 = vmul.f32 1.442695, %v530_v12  ;;  %1897 = vmatmul.mubr.bf16.gmra.mxu1 %v1657_v24  ;;  %v1310_v44 = vmul.f32 %v4721_v48, %v1234_v63  ;;  %v489_v3 = vadd.f32 %v4636_v56, %v488_v58  ;;  %v974_v51 = vpop.f32.mrf.mxu1 }
 0x19a   :  { %v4108_v9 = vpop.eup %4107  ;;  %4133 = vrcp.f32 %v1125_v7  ;;  %v1089_v20 = vmul.f32 1.442695, %v1016_v54  ;;  %v975_v8 = vadd.f32 %v4642_v1, %v974_v51  ;;  %v3578_v15 = vpop.f32.mrf.mxu0  ;;  %1906 = vmatprep.mubr.bf16.mxu1 %v4344_v50  ;;  %v1235_v55 = vmul.f32 %v4225_v18, %v4098_v38 }
 0x19b   :  { %v4110_v10 = vpop.eup %4109  ;;  %v640_v19 = vadd.f32 1.0, %v4108_v9  ;;  %4135 = vpow2.f32 %v1087_v23  ;;  %v1335_v17 = vpack.c.bf16 %v1310_v44, %v1309_v59  ;;  %v531_v24 = vsub.f32 0.0, %v489_v3  ;;  %v3670_v30 = vpop.f32.mrf.mxu1 }
 0x19c   :  { %v4112_v63 = vpop.eup %4111  ;;  %v1126_v31 = vadd.f32 1.0, %v4110_v10  ;;  %4137 = vpow2.f32 %v603_v34  ;;  %v1017_v33 = vsub.f32 0.0, %v975_v8  ;;  %v491_v12 = vpop.f32.mrf.mxu0  ;;  %v1236_v53 = vmul.f32 %v4226_v28, %v4106_v35  ;;  %v4227_v35 = vld [vmem:[#allocation5 + $0xd0] sm:$0xff]  ;;  %v4228_v10 = vld [vmem:[#allocation5 + $0xd8] sm:$0xff] }
 0x19d   :  { %v4114_v7 = vpop.eup %4113  ;;  %4139 = vrcp.f32 %v640_v19  ;;  %v641_v54 = vadd.f32 1.0, %v4112_v63  ;;  %v605_v58 = vmul.f32 1.442695, %v531_v24  ;;  %v492_v51 = vadd.f32 %v4636_v56, %v491_v12  ;;  %v977_v38 = vpop.f32.mrf.mxu1 }
 0x19e   :  { %v4116_v15 = vpop.eup %4115  ;;  %4141 = vrcp.f32 %v1126_v31  ;;  %1575 = vmatmul.mubr.bf16.gmra.mxu0 %v1335_v17  ;;  %v1091_v23 = vmul.f32 1.442695, %v1017_v33  ;;  %v978_v59 = vadd.f32 %v4642_v1, %v977_v38  ;;  %v1658_v44 = vpack.c.bf16 %v1236_v53, %v1235_v55  ;;  %v3579_v3 = vpop.f32.mrf.mxu0  ;;  %v3866_v31 = vld [vmem:[#allocation7 + $0x1d0] ss:$36 sps:$4 sm:$0xff]  }
 0x19f   :  { %v4118_v34 = vpop.eup %4117  ;;  %4143 = vrcp.f32 %v641_v54  ;;  %v532_v9 = vsub.f32 0.0, %v492_v51  ;;  %v3671_v8 = vpop.f32.mrf.mxu1  ;;  %1584 = vmatprep.mubr.bf16.mxu0 %v4344_v50  ;;  %v4731_v18 = vmul.f32 %v4227_v35, %v4104_v13  ;;  %v4733_v56 = vmul.f32 %v4228_v10, %v4114_v7  ;;  %v4230_v51 = vld [vmem:[#allocation2 + $0xe8] sm:$0xff]  ;;  %3675 = vmatpush3.bf16.msra.mxu1 %v3866_v31  ;;  %v4232_v3 = vld [vmem:[#allocation5 + $0xe8] sm:$0xff] }
 0x1a0   :  { %v4120_v19 = vpop.eup %4119  ;;  %4145 = vpow2.f32 %v1089_v20  ;;  %v1018_v17 = vsub.f32 0.0, %v978_v59  ;;  %v4229_v20 = vld [vmem:[#allocation2 + $0xe0] sm:$0xff]  ;;  %3676 = vmatprep.subr.bf16.mxu1 %v5611_v0 }
 0x1a1   :  { %v4122_v24 = vpop.eup %4121  ;;  %v1127_v30 = vadd.f32 1.0, %v4120_v19  ;;  %4147 = vpow2.f32 %v605_v58  ;;  %v607_v1 = vmul.f32 1.442695, %v532_v9  ;;  %1907 = vmatmul.mubr.bf16.gmra.mxu1 %v1658_v44  ;;  %v1311_v63 = vmul.f32 %v4731_v18, %v1235_v55  ;;  %v4231_v58 = vld [vmem:[#allocation5 + $0xe0] sm:$0xff] }
 0x1a2   :  { %v4124_v33 = vpop.eup %4123  ;;  %v642_v12 = vadd.f32 1.0, %v4122_v24  ;;  %4149 = vpow2.f32 %v1091_v23  ;;  %v1093_v28 = vmul.f32 1.442695, %v1018_v17  ;;  %v1312_v13 = vmul.f32 %v4733_v56, %v1236_v53  ;;  %1916 = vmatprep.mubr.bf16.mxu1 %v4344_v50 }
 0x1a3   :  { %v4126_v7 = vpop.eup %4125  ;;  %4151 = vrcp.f32 %v1127_v30  ;;  %v1237_v54 = vmul.f32 %v4229_v20, %v4116_v15  ;;  %v1238_v38 = vmul.f32 %v4230_v51, %v4124_v33  ;;  %v4738_v59 = vmul.f32 %v4231_v58, %v4118_v34 }
 0x1a4   :  { %v4128_v55 = vpop.eup %4127  ;;  %4153 = vrcp.f32 %v642_v12  ;;  %v1336_v44 = vpack.c.bf16 %v1312_v13, %v1311_v63  ;;  %v4740_v23 = vmul.f32 %v4232_v3, %v4126_v7  ;;  %v1973_v53 = vpack.c.bf16 %v4626_v42, %v4621_v21  ;;  %v4234_v3 = vld [vmem:[#allocation2 + $0xf8] sm:$0xff]  ;;  %v4236_v7 = vld [vmem:[#allocation5 + $0xf8] sm:$0xff] }
 0x1a5   :  { %v4130_v9 = vpop.eup %4129  ;;  %v1128_v8 = vadd.f32 1.0, %v4128_v55  ;;  %4155 = vpow2.f32 %v607_v1  ;;  %v1659_v15 = vpack.c.bf16 %v1238_v38, %v1237_v54  ;;  %v1974_v34 = vpack.c.bf16 %v4652_v25, %v4650_v41  ;;  %v4233_v55 = vld [vmem:[#allocation2 + $0xf0] sm:$0xff]  ;;  %v3872_v25 = vld [vmem:[#allocation7 + $0x20] ss:$36 sps:$4 sm:$0xff]  }
 0x1a6   :  { %v4132_v35 = vpop.eup %4131  ;;  %v643_v10 = vadd.f32 1.0, %v4130_v9  ;;  %4157 = vpow2.f32 %v1093_v28  ;;  %1585 = vmatmul.mubr.bf16.gmra.mxu0 %v1336_v44  ;;  %v1314_v19 = vmul.f32 %v4740_v23, %v1238_v38  ;;  %v1975_v17 = vpack.c.bf16 %v4669_v26, %v4665_v5 }
 0x1a7   :  { %v4134_v24 = vpop.eup %4133  ;;  %4159 = vrcp.f32 %v1128_v8  ;;  %1594 = vmatprep.mubr.bf16.mxu0 %v4344_v50  ;;  %v1313_v31 = vmul.f32 %v4738_v59, %v1237_v54  ;;  %v1239_v44 = vmul.f32 %v4233_v55, %v4132_v35  ;;  %v4238_v35 = vld [vmem:[#allocation2 + $0x100] sm:$0xff]  ;;  %v5617_v5 = vpack.c.bf16 %v4681_v32, %v4679_v29 }
 0x1a8   :  { %v4136_v63 = vpop.eup %4135  ;;  %4161 = vrcp.f32 %v643_v10 }
 0x1a9   :  { %v4138_v12 = vpop.eup %4137  ;;  %v1129_v28 = vadd.f32 1.0, %v4136_v63  ;;  %1917 = vmatmul.mubr.bf16.gmra.mxu1 %v1659_v15  ;;  %v1337_v58 = vpack.c.bf16 %v1314_v19, %v1313_v31  ;;  %v4235_v15 = vld [vmem:[#allocation5 + $0xf0] sm:$0xff] }
 0x1aa   :  { %v4140_v51 = vpop.eup %4139  ;;  %v644_v38 = vadd.f32 1.0, %v4138_v12  ;;  %1926 = vmatprep.mubr.bf16.mxu1 %v4344_v50  ;;  %v4765_v63 = vmul.f32 %v4235_v15, %v4134_v24 }
 0x1ab   :  { %v4142_v54 = vpop.eup %4141  ;;  %4163 = vrcp.f32 %v1129_v28  ;;  %v1240_v9 = vmul.f32 %v4234_v3, %v4140_v51 }
 0x1ac   :  { %v4144_v8 = vpop.eup %4143  ;;  %4165 = vrcp.f32 %v644_v38  ;;  %v4767_v13 = vmul.f32 %v4236_v7, %v4142_v54  ;;  %v1315_v7 = vmul.f32 %v4765_v63, %v1239_v44 }
 0x1ad   :  { %v4146_v20 = vpop.eup %4145  ;;  %v1660_v10 = vpack.c.bf16 %v1240_v9, %v1239_v44 }
 0x1ae   :  { %v4148_v12 = vpop.eup %4147  ;;  %v1130_v19 = vadd.f32 1.0, %v4146_v20  ;;  %1595 = vmatmul.mubr.bf16.gmra.mxu0 %v1337_v58  ;;  %v1316_v31 = vmul.f32 %v4767_v13, %v1240_v9  ;;  %v4237_v20 = vld [vmem:[#allocation2 + $0x108] sm:$0xff] }
 0x1af   :  { %v4150_v28 = vpop.eup %4149  ;;  %v645_v51 = vadd.f32 1.0, %v4148_v12  ;;  %1604 = vmatprep.mubr.bf16.mxu0 %v4344_v50  ;;  %v1241_v12 = vmul.f32 %v4238_v35, %v4144_v8 }
 0x1b0   :  { %v4152_v38 = vpop.eup %4151  ;;  %4167 = vrcp.f32 %v1130_v19  ;;  %v1131_v24 = vadd.f32 1.0, %v4150_v28  ;;  %v1338_v3 = vpack.c.bf16 %v1316_v31, %v1315_v7  ;;  %v4239_v19 = vld [vmem:[#allocation5 + $0x100] sm:$0xff]  ;;  %v3867_v31 = vld [vmem:[#allocation7 + $0x188] ss:$36 sps:$4 sm:$0xff]  }
 0x1b1   :  { %v4154_v54 = vpop.eup %4153  ;;  %1927 = vmatmul.mubr.bf16.gmra.mxu1 %v1660_v10  ;;  %4169 = vrcp.f32 %v645_v51  ;;  %v4775_v28 = vmul.f32 %v4239_v19, %v4152_v38  ;;  %v4240_v10 = vld [vmem:[#allocation5 + $0x108] sm:$0xff]  ;;  %v4244_v19 = vld [vmem:[#allocation5 + $0x118] sm:$0xff] }
 0x1b2   :  { %v4156_v55 = vpop.eup %4155  ;;  %1936 = vmatprep.mubr.bf16.mxu1 %v4344_v50  ;;  %v1242_v58 = vmul.f32 %v4237_v20, %v4154_v54  ;;  %4171 = vrcp.f32 %v1131_v24  ;;  %3677 = vmatpush3.bf16.msra.mxu1 %v3867_v31  ;;  %v4243_v20 = vld [vmem:[#allocation5 + $0x110] sm:$0xff] }
 0x1b3   :  { %v4158_v9 = vpop.eup %4157  ;;  %v646_v15 = vadd.f32 1.0, %v4156_v55  ;;  %v1317_v38 = vmul.f32 %v4775_v28, %v1241_v12  ;;  %3678 = vmatprep.subr.bf16.mxu1 %v5611_v0  ;;  %v4242_v55 = vld [vmem:[#allocation2 + $0x110] sm:$0xff] }
 0x1b4   :  { %v4160_v33 = vpop.eup %4159  ;;  %v1132_v1 = vadd.f32 1.0, %v4158_v9  ;;  %v1661_v44 = vpack.c.bf16 %v1242_v58, %v1241_v12 }
 0x1b5   :  { %4173 = vrcp.f32 %v646_v15  ;;  %v4777_v30 = vmul.f32 %v4240_v10, %v4160_v33  ;;  %v4162_v7 = vpop.eup %4161 }
 0x1b6   :  { %4175 = vrcp.f32 %v1132_v1  ;;  %1605 = vmatmul.mubr.bf16.gmra.mxu0 %v1338_v3  ;;  %v4241_v1 = vld [vmem:[#allocation2 + $0x118] sm:$0xff]  ;;  %v1243_v3 = vmul.f32 %v4242_v55, %v4162_v7  ;;  %v4246_v55 = vld [vmem:[#allocation2 + $0x128] sm:$0xf] }
 0x1b7   :  { %1614 = vmatprep.mubr.bf16.mxu0 %v4344_v50  ;;  %v1318_v51 = vmul.f32 %v4777_v30, %v1242_v58 }
 0x1b8   :  { %v4164_v35 = vpop.eup %4163 }
 0x1b9   :  { %v4166_v24 = vpop.eup %4165  ;;  %1937 = vmatmul.mubr.bf16.gmra.mxu1 %v1661_v44  ;;  %v1339_v33 = vpack.c.bf16 %v1318_v51, %v1317_v38  ;;  %v4786_v58 = vmul.f32 %v4243_v20, %v4164_v35 }
 0x1ba   :  { %1946 = vmatprep.mubr.bf16.mxu1 %v4344_v50  ;;  %v1244_v54 = vmul.f32 %v4241_v1, %v4166_v24 }
 0x1bb   :  { %v1319_v44 = vmul.f32 %v4786_v58, %v1243_v3 }
 0x1bc   :  { %v1662_v15 = vpack.c.bf16 %v1244_v54, %v1243_v3  ;;  %v4248_v3 = vld [vmem:[#allocation5 + $0x128] sm:$0xf] }
 0x1bd   :  { %v4168_v9 = vpop.eup %4167 }
 0x1be   :  { %1615 = vmatmul.mubr.bf16.gmra.mxu0 %v1339_v33  ;;  %v4788_v10 = vmul.f32 %v4244_v19, %v4168_v9  ;;  %v4170_v12 = vpop.eup %4169  ;;  %v4245_v33 = vld [vmem:[#allocation2 + $0x120] sm:$0xff]  ;;  %v4247_v9 = vld [vmem:[#allocation5 + $0x120] sm:$0xff] }
 0x1bf   :  { %1624 = vmatprep.mubr.bf16.mxu0 %v4344_v50  ;;  %v4172_v7 = vpop.eup %4171  ;;  %v1245_v1 = vmul.f32 %v4245_v33, %v4170_v12 }
 0x1c0   :  { %v1320_v31 = vmul.f32 %v4788_v10, %v1244_v54  ;;  %v4796_v19 = vmul.f32 %v4247_v9, %v4172_v7  ;;  %v3869_v7 = vld [vmem:[#allocation7 + $0xf8] ss:$36 sps:$4 sm:$0xff]  }
 0x1c1   :  { %1947 = vmatmul.mubr.bf16.gmra.mxu1 %v1662_v15 }
 0x1c2   :  { %v4174_v35 = vpop.eup %4173  ;;  %v1340_v38 = vpack.c.bf16 %v1320_v31, %v1319_v44  ;;  %1956 = vmatprep.mubr.bf16.mxu1 %v4344_v50  ;;  %v1321_v44 = vmul.f32 %v4796_v19, %v1245_v1  ;;  %v3868_v31 = vld [vmem:[#allocation7 + $0x140] ss:$36 sps:$4 sm:$0xff]  }
 0x1c3   :  { %v4176_v24 = vpop.eup %4175  ;;  %v1246_v20 = vmul.f32 %v4246_v55, %v4174_v35  ;;  %3679 = vmatpush3.bf16.msra.mxu1 %v3868_v31 }
 0x1c4   :  { %v4798_v8 = vmul.f32 %v4248_v3, %v4176_v24  ;;  %3680 = vmatprep.subr.bf16.mxu1 %v5611_v0 }
 0x1c5   :  { %v1663_v54 = vpack.c.bf16 %v1246_v20, %v1245_v1 }
 0x1c6   :  { %1625 = vmatmul.mubr.bf16.gmra.mxu0 %v1340_v38  ;;  %v1322_v51 = vmul.f32 %v4798_v8, %v1246_v20 }
 0x1c7   :  { %1634 = vmatprep.mubr.bf16.mxu0 %v4344_v50  ;;  %3681 = vmatpush3.bf16.msra.mxu1 %v3869_v7 }
 0x1c8   :  { %v1341_v12 = vpack.c.bf16 %v1322_v51, %v1321_v44  ;;  %3682 = vmatprep.subr.bf16.mxu1 %v5611_v0  ;;  %v5619_v44 = vpack.c.bf16 %v4690_v22, %v4683_v37 }
 0x1c9   :  { %1957 = vmatmul.mubr.bf16.gmra.mxu1 %v1663_v54 }
 0x1ca   :  { %3688 = vmatprep.mubr.msk.bf16.mxu1 %vm4343_vm0, %v5611_v0 }
 0x1cb   :  { %3683 = vmatpush3.bf16.msra.mxu1 %v3870_v60 }
 0x1cc   :  { %3684 = vmatprep.subr.bf16.mxu1 %v5611_v0 }
 0x1ce   :  { %1635 = vmatmul.mubr.bf16.gmra.mxu0 %v1341_v12 }
 0x1cf   :  { %2098 = vmatprep.mubr.bf16.mxu0 %v4344_v50  ;;  %3685 = vmatpush3.bf16.msra.mxu1 %v3871_v61 }
 0x1d0   :  { %3686 = vmatprep.subr.bf16.mxu1 %v5611_v0  ;;  %v5623_v0 = vpack.c.bf16 %v4721_v48, %v4717_v11 }
 0x1d3   :  { %3687 = vmatpush3.bf16.msra.mxu1 %v3872_v25 }
 0x1d6   :  { %2099 = vmatmul.mubr.bf16.vlgmr.msra.gmra.mxu0 %v1967_v49  ;;  %v1972_v49 = vpack.c.bf16 %v4615_v6, %v4610_v43 }
 0x1d7   :  { %2108 = vmatprep.mubr.bf16.mxu0 %v4344_v50 }
 0x1de   :  { %2109 = vmatmul.mubr.bf16.gmra.mxu0 %v1968_v40 }
 0x1df   :  { %2118 = vmatprep.mubr.bf16.mxu0 %v4344_v50 }
 0x1e6   :  { %2119 = vmatmul.mubr.bf16.gmra.mxu0 %v1969_v62 }
 0x1e7   :  { %2128 = vmatprep.mubr.bf16.mxu0 %v4344_v50 }
 0x1ee   :  { %2129 = vmatmul.mubr.bf16.gmra.mxu0 %v1970_v46 }
 0x1ef   :  { %2138 = vmatprep.mubr.bf16.mxu0 %v4344_v50 }
 0x1f5   :  { %v4839_v39 = vpop.f32.mrf.mxu1 }
 0x1f6   :  { %2139 = vmatmul.mubr.bf16.gmra.mxu0 %v1971_v47 }
 0x1f7   :  { %2148 = vmatprep.mubr.bf16.mxu0 %v4344_v50  ;;  %v4844_v4 = vpop.f32.mrf.mxu1 }
 0x1f8   :  { %v4831_v14 = vpop.f32.mrf.mxu0  ;;  %5613 = vst [vmem:[#allocation12_spill] sm:$0xff] %v4844_v4 }
 0x1f9   :  { %v4850_v57 = vpop.f32.mrf.mxu1 }
 0x1fa   :  { %v4833_v45 = vpop.f32.mrf.mxu0 }
 0x1fb   :  { %v4861_v6 = vpop.f32.mrf.mxu1 }
 0x1fc   :  { %v4837_v2 = vpop.f32.mrf.mxu0  ;;  %5614 = vst [vmem:[#allocation13_spill] sm:$0xff] %v4861_v6  ;;  %v5630_v6 = vpack.c.bf16 %v4740_v23, %v4738_v59 }
 0x1fd   :  { %v4865_v47 = vpop.f32.mrf.mxu1 }
 0x1fe   :  { %2149 = vmatmul.mubr.bf16.gmra.mxu0 %v1972_v49  ;;  %v4841_v40 = vpop.f32.mrf.mxu0  ;;  %v5621_v49 = vpack.c.bf16 %v4705_v52, %v4703_v36 }
 0x1ff   :  { %2158 = vmatprep.mubr.bf16.mxu0 %v4344_v50 }
 0x203   :  { %v4846_v27 = vpop.f32.mrf.mxu0 }
 0x205   :  { %v4848_v62 = vpop.f32.mrf.mxu0 }
 0x206   :  { %2159 = vmatmul.mubr.bf16.gmra.mxu0 %v1973_v53  ;;  %v4875_v53 = vpop.f32.mrf.mxu1 }
 0x207   :  { %v4856_v16 = vpop.f32.mrf.mxu0  ;;  %2168 = vmatprep.mubr.bf16.mxu0 %v4344_v50  ;;  %5615 = vst [vmem:[#allocation14_spill] sm:$0xff] %v4875_v53 }
 0x208   :  { %v4881_v38 = vpop.f32.mrf.mxu1 }
 0x209   :  { %v4859_v43 = vpop.f32.mrf.mxu0 }
 0x20a   :  { %v4891_v24 = vpop.f32.mrf.mxu1 }
 0x20b   :  { %5616 = vst [vmem:[#allocation15_spill] sm:$0xff] %v4891_v24 }
 0x20c   :  { %v4863_v46 = vpop.f32.mrf.mxu0  ;;  %v4897_v55 = vpop.f32.mrf.mxu1 }
 0x20e   :  { %2169 = vmatmul.mubr.bf16.gmra.mxu0 %v1974_v34  ;;  %v4870_v21 = vpop.f32.mrf.mxu0  ;;  %v4907_v20 = vpop.f32.mrf.mxu1 }
 0x20f   :  { %2178 = vmatprep.mubr.bf16.mxu0 %v4344_v50  ;;  %5618 = vst [vmem:[#allocation16_spill] sm:$0xff] %v4907_v20  ;;  %v5625_v20 = vpack.c.bf16 %v4733_v56, %v4731_v18 }
 0x210   :  { %v4873_v42 = vpop.f32.mrf.mxu0  ;;  %v4913_v54 = vpop.f32.mrf.mxu1 }
 0x212   :  { %v4877_v51 = vpop.f32.mrf.mxu0  ;;  %v4923_v12 = vpop.f32.mrf.mxu1 }
 0x213   :  { %5620 = vst [vmem:[#allocation17_spill] sm:$0xff] %v4923_v12 }
 0x214   :  { %v4879_v35 = vpop.f32.mrf.mxu0  ;;  %v4929_v60 = vpop.f32.mrf.mxu1 }
 0x216   :  { %2179 = vmatmul.mubr.bf16.gmra.mxu0 %v1975_v17  ;;  %v4886_v41 = vpop.f32.mrf.mxu0  ;;  %v4939_v61 = vpop.f32.mrf.mxu1 }
 0x217   :  { %2188 = vmatprep.mubr.bf16.mxu0 %v4344_v50  ;;  %5622 = vst [vmem:[#allocation18_spill] sm:$0xff] %v4939_v61 }
 0x218   :  { %v4889_v34 = vpop.f32.mrf.mxu0 }
 0x21a   :  { %v4893_v33 = vpop.f32.mrf.mxu0 }
 0x21c   :  { %v4895_v1 = vpop.f32.mrf.mxu0 }
 0x21e   :  { %2189 = vmatmul.mubr.bf16.gmra.mxu0 %v5617_v5  ;;  %v4902_v26 = vpop.f32.mrf.mxu0 }
 0x21f   :  { %2198 = vmatprep.mubr.bf16.mxu0 %v4344_v50 }
 0x220   :  { %v4905_v17 = vpop.f32.mrf.mxu0 }
 0x222   :  { %v4909_v9 = vpop.f32.mrf.mxu0 }
 0x224   :  { %v4911_v3 = vpop.f32.mrf.mxu0 }
 0x226   :  { %2199 = vmatmul.mubr.bf16.gmra.mxu0 %v5619_v44  ;;  %v4918_v29 = vpop.f32.mrf.mxu0  ;;  %v4945_v44 = vpop.f32.mrf.mxu1 }
 0x227   :  { %2208 = vmatprep.mubr.bf16.mxu0 %v4344_v50 }
 0x228   :  { %v4921_v32 = vpop.f32.mrf.mxu0 }
 0x22a   :  { %v4925_v31 = vpop.f32.mrf.mxu0 }
 0x22c   :  { %v4927_v7 = vpop.f32.mrf.mxu0 }
 0x22e   :  { %2209 = vmatmul.mubr.bf16.gmra.mxu0 %v5621_v49  ;;  %v4934_v37 = vpop.f32.mrf.mxu0  ;;  %v4955_v49 = vpop.f32.mrf.mxu1 }
 0x22f   :  { %2218 = vmatprep.mubr.bf16.mxu0 %v4344_v50  ;;  %5624 = vst [vmem:[#allocation19_spill] sm:$0xff] %v4955_v49 }
 0x230   :  { %v4937_v22 = vpop.f32.mrf.mxu0  ;;  %v4961_v12 = vpop.f32.mrf.mxu1 }
 0x232   :  { %v4941_v25 = vpop.f32.mrf.mxu0  ;;  %v4971_v48 = vpop.f32.mrf.mxu1 }
 0x233   :  { %5627 = vst [vmem:[#allocation21_spill] sm:$0xff] %v4971_v48 }
 0x234   :  { %v4975_v49 = vpop.f32.mrf.mxu1 }
 0x235   :  { %v4943_v5 = vpop.f32.mrf.mxu0 }
 0x236   :  { %2219 = vmatmul.mubr.bf16.gmra.mxu0 %v5623_v0  ;;  %v4985_v56 = vpop.f32.mrf.mxu1 }
 0x237   :  { %v4950_v36 = vpop.f32.mrf.mxu0  ;;  %2228 = vmatprep.mubr.bf16.mxu0 %v4344_v50  ;;  %5632 = vst [vmem:[#allocation25_spill] sm:$0xff] %v4985_v56 }
 0x238   :  { %v4991_v48 = vpop.f32.mrf.mxu1 }
 0x239   :  { %v4953_v52 = vpop.f32.mrf.mxu0 }
 0x23a   :  { %v5001_v23 = vpop.f32.mrf.mxu1 }
 0x23b   :  { %v4957_v15 = vpop.f32.mrf.mxu0  ;;  %5638 = vst [vmem:[#allocation30_spill] sm:$0xff] %v5001_v23 }
 0x23d   :  { %v4959_v61 = vpop.f32.mrf.mxu0 }
 0x23e   :  { %2229 = vmatmul.mubr.bf16.gmra.mxu0 %v5625_v20 }
 0x23f   :  { %v4966_v11 = vpop.f32.mrf.mxu0  ;;  %2238 = vmatprep.mubr.bf16.mxu0 %v4344_v50 }
 0x240   :  { %5626 = vst [vmem:[#allocation20_spill] sm:$0xff] %v4966_v11 }
 0x241   :  { %v4969_v0 = vpop.f32.mrf.mxu0 }
 0x243   :  { %v4973_v24 = vpop.f32.mrf.mxu0 }
 0x244   :  { %5628 = vst [vmem:[#allocation22_spill] sm:$0xff] %v4973_v24 }
 0x246   :  { %v4977_v53 = vpop.f32.mrf.mxu0  ;;  %2239 = vmatmul.mubr.bf16.gmra.mxu0 %v5630_v6 }
 0x247   :  { %5629 = vst [vmem:[#allocation23_spill] sm:$0xff] %v4977_v53  ;;  %2248 = vmatprep.mubr.bf16.mxu0 %v4344_v50  ;;  %v5636_v53 = vpack.c.bf16 %v4767_v13, %v4765_v63 }
 0x248   :  { %v4983_v18 = vpop.f32.mrf.mxu0 }
 0x249   :  { %5631 = vst [vmem:[#allocation24_spill] sm:$0xff] %v4983_v18  ;;  %v5007_v18 = vpop.f32.mrf.mxu1 }
 0x24a   :  { %v4987_v20 = vpop.f32.mrf.mxu0 }
 0x24b   :  { %5633 = vst [vmem:[#allocation26_spill] sm:$0xff] %v4987_v20  ;;  %v5017_v63 = vpop.f32.mrf.mxu1 }
 0x24c   :  { %v4989_v4 = vpop.f32.mrf.mxu0  ;;  %5644 = vst [vmem:[#allocation35_spill] sm:$0xff] %v5017_v63 }
 0x24d   :  { %5634 = vst [vmem:[#allocation27_spill] sm:$0xff] %v4989_v4 }
 0x24e   :  { %v4993_v24 = vpop.f32.mrf.mxu0  ;;  %2249 = vmatmul.mubr.bf16.gmra.mxu0 %v5636_v53 }
 0x24f   :  { %5635 = vst [vmem:[#allocation28_spill] sm:$0xff] %v4993_v24  ;;  %2258 = vmatprep.mubr.bf16.mxu0 %v4344_v50  ;;  %v5642_v24 = vpack.c.bf16 %v4777_v30, %v4775_v28 }
 0x250   :  { %v4999_v59 = vpop.f32.mrf.mxu0 }
 0x251   :  { %5637 = vst [vmem:[#allocation29_spill] sm:$0xff] %v4999_v59  ;;  %v5023_v59 = vpop.f32.mrf.mxu1 }
 0x252   :  { %v5003_v6 = vpop.f32.mrf.mxu0 }
 0x253   :  { %5639 = vst [vmem:[#allocation31_spill] sm:$0xff] %v5003_v6  ;;  %v5033_v28 = vpop.f32.mrf.mxu1 }
 0x254   :  { %v5005_v56 = vpop.f32.mrf.mxu0  ;;  %5650 = vst [vmem:[#allocation40_spill] sm:$0xff] %v5033_v28 }
 0x255   :  { %5640 = vst [vmem:[#allocation32_spill] sm:$0xff] %v5005_v56 }
 0x256   :  { %v5009_v4 = vpop.f32.mrf.mxu0  ;;  %2259 = vmatmul.mubr.bf16.gmra.mxu0 %v5642_v24 }
 0x257   :  { %5641 = vst [vmem:[#allocation33_spill] sm:$0xff] %v5009_v4  ;;  %2268 = vmatprep.mubr.bf16.mxu0 %v4344_v50  ;;  %v5648_v4 = vpack.c.bf16 %v4788_v10, %v4786_v58 }
 0x258   :  { %v5015_v13 = vpop.f32.mrf.mxu0 }
 0x259   :  { %5643 = vst [vmem:[#allocation34_spill] sm:$0xff] %v5015_v13  ;;  %v5039_v13 = vpop.f32.mrf.mxu1 }
 0x25a   :  { %v5019_v53 = vpop.f32.mrf.mxu0 }
 0x25b   :  { %5645 = vst [vmem:[#allocation36_spill] sm:$0xff] %v5019_v53  ;;  %v5048_v10 = vpop.f32.mrf.mxu1 }
 0x25c   :  { %v5021_v23 = vpop.f32.mrf.mxu0  ;;  %5656 = vst [vmem:[#allocation45_spill] sm:$0xff] %v5048_v10 }
 0x25d   :  { %5646 = vst [vmem:[#allocation37_spill] sm:$0xff] %v5021_v23  ;;  %v5054_v28 = vpop.f32.mrf.mxu1 }
 0x25e   :  { %v5025_v56 = vpop.f32.mrf.mxu0  ;;  %2269 = vmatmul.mubr.bf16.gmra.mxu0 %v5648_v4 }
 0x25f   :  { %5647 = vst [vmem:[#allocation38_spill] sm:$0xff] %v5025_v56  ;;  %2278 = vmatprep.mubr.bf16.mxu0 %v4344_v50  ;;  %v5654_v56 = vpack.c.bf16 %v4798_v8, %v4796_v19 }
 0x260   :  { %v5031_v30 = vpop.f32.mrf.mxu0 }
 0x261   :  { %5649 = vst [vmem:[#allocation39_spill] sm:$0xff] %v5031_v30 }
 0x262   :  { %v5035_v24 = vpop.f32.mrf.mxu0 }
 0x263   :  { %5651 = vst [vmem:[#allocation41_spill] sm:$0xff] %v5035_v24  ;;  %v5060_v24 = vpop.f32.mrf.mxu1 }
 0x264   :  { %v5037_v63 = vpop.f32.mrf.mxu0  ;;  %5661 = vst [vmem:[#allocation50_spill] sm:$0xff] %v5060_v24 }
 0x265   :  { %5652 = vst [vmem:[#allocation42_spill] sm:$0xff] %v5037_v63  ;;  %v5066_v19 = vpop.f32.mrf.mxu1 }
 0x266   :  { %v5041_v23 = vpop.f32.mrf.mxu0  ;;  %2279 = vmatmul.mubr.bf16.gmra.mxu0 %v5654_v56 }
 0x267   :  { %5653 = vst [vmem:[#allocation43_spill] sm:$0xff] %v5041_v23 }
 0x268   :  { %v5046_v58 = vpop.f32.mrf.mxu0 }
 0x269   :  { %5655 = vst [vmem:[#allocation44_spill] sm:$0xff] %v5046_v58  ;;  %v5072_v58 = vpop.f32.mrf.mxu1 }
 0x26a   :  { %v5050_v50 = vpop.f32.mrf.mxu0  ;;  %5666 = vst [vmem:[#allocation55_spill] sm:$0xff] %v5072_v58 }
 0x26b   :  { %5657 = vst [vmem:[#allocation46_spill] sm:$0xff] %v5050_v50 }
 0x26c   :  { %v5052_v4 = vpop.f32.mrf.mxu0 }
 0x26d   :  { %5658 = vst [vmem:[#allocation47_spill] sm:$0xff] %v5052_v4 }
 0x26e   :  { %v5056_v30 = vpop.f32.mrf.mxu0 }
 0x26f   :  { %5659 = vst [vmem:[#allocation48_spill] sm:$0xff] %v5056_v30  ;;  %v5078_v30 = vpop.f32.mrf.mxu1 }
 0x270   :  { %v5058_v63 = vpop.f32.mrf.mxu0 }
 0x271   :  { %5660 = vst [vmem:[#allocation49_spill] sm:$0xff] %v5058_v63 }
 0x272   :  { %v5062_v23 = vpop.f32.mrf.mxu0 }
 0x273   :  { %5662 = vst [vmem:[#allocation51_spill] sm:$0xff] %v5062_v23  ;;  %v5084_v23 = vpop.f32.mrf.mxu1 }
 0x274   :  { %v5064_v8 = vpop.f32.mrf.mxu0  ;;  %5671 = vst [vmem:[#allocation60_spill] sm:$0xff] %v5084_v23 }
 0x275   :  { %5663 = vst [vmem:[#allocation52_spill] sm:$0xff] %v5064_v8 }
 0x276   :  { %v5068_v56 = vpop.f32.mrf.mxu0 }
 0x277   :  { %5664 = vst [vmem:[#allocation53_spill] sm:$0xff] %v5068_v56  ;;  %v5090_v56 = vpop.f32.mrf.mxu1 }
 0x278   :  { %v5070_v10 = vpop.f32.mrf.mxu0  ;;  %5674 = vst [vmem:[#allocation63_spill] sm:$0xff] %v5090_v56 }
 0x279   :  { %5665 = vst [vmem:[#allocation54_spill] sm:$0xff] %v5070_v10 }
 0x27a   :  { %v5074_v4 = vpop.f32.mrf.mxu0 }
 0x27b   :  { %5667 = vst [vmem:[#allocation56_spill] sm:$0xff] %v5074_v4  ;;  %v5096_v4 = vpop.f32.mrf.mxu1 }
 0x27c   :  { %v5076_v50 = vpop.f32.mrf.mxu0  ;;  %5677 = vst [vmem:[#allocation66_spill] sm:$0xff] %v5096_v4  ;;  %v5119_v4 = vld [vmem:[%s5609_s3 + $0x3] ss:$0 sm:$0xff] }
 0x27d   :  { %5668 = vst [vmem:[#allocation57_spill] sm:$0xff] %v5076_v50 }
 0x27e   :  { %v5080_v63 = vpop.f32.mrf.mxu0 }
 0x27f   :  { %5669 = vst [vmem:[#allocation58_spill] sm:$0xff] %v5080_v63  ;;  %v5102_v63 = vpop.f32.mrf.mxu1 }
 0x280   :  { %v5082_v24 = vpop.f32.mrf.mxu0  ;;  %5680 = vst [vmem:[#allocation69_spill] sm:$0xff] %v5102_v63 }
 0x281   :  { %5670 = vst [vmem:[#allocation59_spill] sm:$0xff] %v5082_v24 }
 0x282   :  { %v5086_v8 = vpop.f32.mrf.mxu0 }
 0x283   :  { %5672 = vst [vmem:[#allocation61_spill] sm:$0xff] %v5086_v8  ;;  %v5108_v8 = vpop.f32.mrf.mxu1 }
 0x284   :  { %v5088_v53 = vpop.f32.mrf.mxu0  ;;  %5683 = vst [vmem:[#allocation72_spill] sm:$0xff] %v5108_v8 }
 0x285   :  { %5673 = vst [vmem:[#allocation62_spill] sm:$0xff] %v5088_v53 }
 0x286   :  { %v5092_v10 = vpop.f32.mrf.mxu0 }
 0x287   :  { %5675 = vst [vmem:[#allocation64_spill] sm:$0xff] %v5092_v10  ;;  %v5114_v10 = vpop.f32.mrf.mxu1 }
 0x288   :  { %v5094_v58 = vpop.f32.mrf.mxu0  ;;  %5686 = vst [vmem:[#allocation75_spill] sm:$0xff] %v5114_v10 }
 0x289   :  { %5676 = vst [vmem:[#allocation65_spill] sm:$0xff] %v5094_v58  ;;  %v2289_v58 = vadd.f32 %v4839_v39, %v4831_v14 }
 0x28a   :  { %v5098_v50 = vpop.f32.mrf.mxu0 }
 0x28b   :  { %5678 = vst [vmem:[#allocation67_spill] sm:$0xff] %v5098_v50  ;;  %v5134_v50 = vpop.f32.mrf.mxu1 }
 0x28c   :  { %v5100_v6 = vpop.f32.mrf.mxu0  ;;  %5688 = vst [vmem:[#allocation77_spill] sm:$0xff] %v5134_v50 }
 0x28d   :  { %5679 = vst [vmem:[#allocation68_spill] sm:$0xff] %v5100_v6 }
 0x28e   :  { %v5104_v24 = vpop.f32.mrf.mxu0 }
 0x28f   :  { %5681 = vst [vmem:[#allocation70_spill] sm:$0xff] %v5104_v24 }
 0x290   :  { %v5106_v23 = vpop.f32.mrf.mxu0 }
 0x291   :  { %5682 = vst [vmem:[#allocation71_spill] sm:$0xff] %v5106_v23  ;;  %v2290_v23 = vadd.f32 %v4850_v57, %v4837_v2 }
 0x292   :  { %v5110_v53 = vpop.f32.mrf.mxu0 }
 0x293   :  { %5684 = vst [vmem:[#allocation73_spill] sm:$0xff] %v5110_v53 }
 0x294   :  { %v5112_v20 = vpop.f32.mrf.mxu0 }
 0x295   :  { %5685 = vst [vmem:[#allocation74_spill] sm:$0xff] %v5112_v20  ;;  %v5129_v20 = vld [vmem:[%s5609_s3 + $0x2] ss:$0 sm:$0xff] }
 0x296   :  { %v2100_v6 = vpop.f32.mrf.mxu0  ;;  %v2333_v63 = vadd.f32 %v5129_v20, %v2289_v58  ;;  %v2334_v14 = vadd.f32 %v5129_v20, %v2290_v23 }
 0x297   :  { %v2409_v8 = vadd.f32 %v2100_v6, %v4833_v45  ;;  %v2291_v6 = vadd.f32 %v4865_v47, %v4846_v27 }
 0x298   :  { %v5131_v53 = vpop.f32.mrf.mxu0  ;;  %v2371_v11 = vmax.f32 %v2333_v63, 0.0  ;;  %v2372_v58 = vmax.f32 %v2334_v14, 0.0 }
 0x299   :  { %5687 = vst [vmem:[#allocation76_spill] sm:$0xff] %v5131_v53  ;;  %v2453_v24 = vadd.f32 %v5119_v4, %v2409_v8  ;;  %v2292_v8 = vadd.f32 %v4881_v38, %v4856_v16  ;;  %v5146_v53 = vpop.f32.mrf.mxu1 }
 0x29a   :  { %v2104_v10 = vpop.f32.mrf.mxu0 }
 0x29b   :  { %v2410_v2 = vadd.f32 %v2104_v10, %v4841_v40  ;;  %v2491_v45 = vmax.f32 %v2453_v24, 0.0  ;;  %v2336_v27 = vadd.f32 %v5129_v20, %v2292_v8  ;;  %v5154_v47 = vpop.f32.mrf.mxu1  ;;  %v2293_v8 = vadd.f32 %v4897_v55, %v4863_v46 }
 0x29c   :  { %v5139_v39 = vpop.f32.mrf.mxu0 }
 0x29d   :  { %5689 = vst [vmem:[#allocation78_spill] sm:$0xff] %v5139_v39  ;;  %v2454_v57 = vadd.f32 %v5119_v4, %v2410_v2  ;;  %v2611_v10 = vsub.f32 %v2491_v45, %v2371_v11  ;;  %v2335_v39 = vadd.f32 %v5129_v20, %v2291_v6  ;;  %v5690_v6 = vmov 0.0  }
 0x29e   :  { %v2110_v50 = vpop.f32.mrf.mxu0 }
 0x29f   :  { %v2492_v56 = vmax.f32 %v2454_v57, 0.0  ;;  %v2411_v23 = vadd.f32 %v2110_v50, %v4848_v62  ;;  %v2373_v11 = vmax.f32 %v2335_v39, 0.0  ;;  %v2374_v50 = vmax.f32 %v2336_v27, 0.0 }
 0x2a0   :  { %v5149_v40 = vpop.f32.mrf.mxu0 }
 0x2a1   :  { %v2612_v24 = vsub.f32 %v2492_v56, %v2372_v58  ;;  %v2455_v2 = vadd.f32 %v5119_v4, %v2411_v23  ;;  %v5160_v56 = vpop.f32.mrf.mxu1 }
 0x2a2   :  { %v2114_v16 = vpop.f32.mrf.mxu0 }
 0x2a3   :  { %v2649_v38 = vpack.c.bf16 %v2612_v24, %v2611_v10  ;;  %v2412_v63 = vadd.f32 %v2114_v16, %v4859_v43  ;;  %v2493_v57 = vmax.f32 %v2455_v2, 0.0  ;;  %v2294_v43 = vadd.f32 %v4913_v54, %v4873_v42  ;;  %v5172_v27 = vpop.f32.mrf.mxu1 }
 0x2a4   :  { %v5157_v14 = vpop.f32.mrf.mxu0 }
 0x2a5   :  { %v2456_v62 = vadd.f32 %v5119_v4, %v2412_v63  ;;  %3689 = vmatmul.mubr.bf16.vlgmr.msra.gmra.mxu1 %v2649_v38  ;;  %v2613_v24 = vsub.f32 %v2493_v57, %v2373_v11  ;;  %v2337_v38 = vadd.f32 %v5129_v20, %v2293_v8  ;;  %v2338_v63 = vadd.f32 %v5129_v20, %v2294_v43  ;;  %v5184_v11 = vpop.f32.mrf.mxu1 }
 0x2a6   :  { %v2120_v45 = vpop.f32.mrf.mxu0  ;;  %3692 = vmatprep.mubr.msk.bf16.mxu1 %vm4343_vm0, %v5690_v6  ;;  %v2295_v57 = vadd.f32 %v4929_v60, %v4879_v35 }
 0x2a7   :  { %v2494_v58 = vmax.f32 %v2456_v62, 0.0  ;;  %v2413_v23 = vadd.f32 %v2120_v45, %v4870_v21  ;;  %v2296_v62 = vadd.f32 %v4945_v44, %v4889_v34  ;;  %v2375_v45 = vmax.f32 %v2337_v38, 0.0  ;;  %v5194_v44 = vpop.f32.mrf.mxu1 }
 0x2a8   :  { %v5169_v10 = vpop.f32.mrf.mxu0  ;;  %v2339_v60 = vadd.f32 %v5129_v20, %v2295_v57  ;;  %v2297_v57 = vadd.f32 %v4961_v12, %v4895_v1 }
 0x2a9   :  { %v2614_v39 = vsub.f32 %v2494_v58, %v2374_v50  ;;  %v2457_v2 = vadd.f32 %v5119_v4, %v2413_v23  ;;  %v2340_v34 = vadd.f32 %v5129_v20, %v2296_v62 }
 0x2aa   :  { %v2124_v16 = vpop.f32.mrf.mxu0 }
 0x2ab   :  { %v2650_v46 = vpack.c.bf16 %v2614_v39, %v2613_v24  ;;  %v2414_v55 = vadd.f32 %v2124_v16, %v4877_v51  ;;  %v2495_v54 = vmax.f32 %v2457_v2, 0.0  ;;  %v2376_v51 = vmax.f32 %v2338_v63, 0.0 }
 0x2ac   :  { %v5177_v42 = vpop.f32.mrf.mxu0 }
 0x2ad   :  { %v2458_v21 = vadd.f32 %v5119_v4, %v2414_v55  ;;  %3693 = vmatmul.mubr.bf16.gmra.mxu1 %v2650_v46  ;;  %v2615_v23 = vsub.f32 %v2495_v54, %v2375_v45  ;;  %v2377_v46 = vmax.f32 %v2339_v60, 0.0  ;;  %v2378_v55 = vmax.f32 %v2340_v34, 0.0  ;;  %v5200_v54 = vpop.f32.mrf.mxu1 }
 0x2ae   :  { %v2130_v50 = vpop.f32.mrf.mxu0  ;;  %3696 = vmatprep.mubr.msk.bf16.mxu1 %vm4343_vm0, %v5690_v6  ;;  %v2299_v34 = vadd.f32 %v4991_v48, %v4911_v3 }
 0x2af   :  { %v2496_v8 = vmax.f32 %v2458_v21, 0.0  ;;  %v2415_v43 = vadd.f32 %v2130_v50, %v4886_v41 }
 0x2b0   :  { %v5189_v58 = vpop.f32.mrf.mxu0  ;;  %v2343_v48 = vadd.f32 %v5129_v20, %v2299_v34 }
 0x2b1   :  { %v2616_v24 = vsub.f32 %v2496_v8, %v2376_v51  ;;  %v2459_v35 = vadd.f32 %v5119_v4, %v2415_v43 }
 0x2b2   :  { %v2134_v39 = vpop.f32.mrf.mxu0 }
 0x2b3   :  { %v2651_v2 = vpack.c.bf16 %v2616_v24, %v2615_v23  ;;  %v2416_v16 = vadd.f32 %v2134_v39, %v4893_v33  ;;  %v2497_v63 = vmax.f32 %v2459_v35, 0.0  ;;  %v2298_v33 = vadd.f32 %v4975_v49, %v4905_v17  ;;  %v5212_v23 = vpop.f32.mrf.mxu1 }
 0x2b4   :  { %v5197_v38 = vpop.f32.mrf.mxu0  ;;  %v2341_v35 = vadd.f32 %v5129_v20, %v2297_v57  ;;  %v2300_v39 = vadd.f32 %v5007_v18, %v4921_v32 }
 0x2b5   :  { %v2460_v41 = vadd.f32 %v5119_v4, %v2416_v16  ;;  %3697 = vmatmul.mubr.bf16.gmra.mxu1 %v2651_v2  ;;  %v2617_v51 = vsub.f32 %v2497_v63, %v2377_v46  ;;  %v2342_v60 = vadd.f32 %v5129_v20, %v2298_v33  ;;  %v5224_v2 = vpop.f32.mrf.mxu1 }
 0x2b6   :  { %v2140_v21 = vpop.f32.mrf.mxu0  ;;  %3700 = vmatprep.mubr.msk.bf16.mxu1 %vm4343_vm0, %v5690_v6  ;;  %v2379_v63 = vmax.f32 %v2341_v35, 0.0  ;;  %v2344_v32 = vadd.f32 %v5129_v20, %v2300_v39 }
 0x2b7   :  { %v2498_v62 = vmax.f32 %v2460_v41, 0.0  ;;  %v2417_v50 = vadd.f32 %v2140_v21, %v4902_v26  ;;  %v5234_v18 = vpop.f32.mrf.mxu1 }
 0x2b8   :  { %v5209_v45 = vpop.f32.mrf.mxu0 }
 0x2b9   :  { %v2618_v8 = vsub.f32 %v2498_v62, %v2378_v55  ;;  %v2461_v43 = vadd.f32 %v5119_v4, %v2417_v50  ;;  %v5240_v35 = vpop.f32.mrf.mxu1 }
 0x2ba   :  { %v2144_v24 = vpop.f32.mrf.mxu0 }
 0x2bb   :  { %v2652_v1 = vpack.c.bf16 %v2618_v8, %v2617_v51  ;;  %v2418_v12 = vadd.f32 %v2144_v24, %v4909_v9  ;;  %v2499_v49 = vmax.f32 %v2461_v43, 0.0  ;;  %v2380_v9 = vmax.f32 %v2342_v60, 0.0 }
 0x2bc   :  { %v5217_v17 = vpop.f32.mrf.mxu0  ;;  %v2381_v43 = vmax.f32 %v2343_v48, 0.0  ;;  %v2382_v24 = vmax.f32 %v2344_v32, 0.0 }
 0x2bd   :  { %v2462_v26 = vadd.f32 %v5119_v4, %v2418_v12  ;;  %3701 = vmatmul.mubr.bf16.gmra.mxu1 %v2652_v1  ;;  %v2619_v21 = vsub.f32 %v2499_v49, %v2379_v63  ;;  %v2301_v1 = vadd.f32 %v5023_v59, %v4927_v7  ;;  %v5252_v63 = vpop.f32.mrf.mxu1 }
 0x2be   :  { %v2150_v16 = vpop.f32.mrf.mxu0  ;;  %3704 = vmatprep.mubr.msk.bf16.mxu1 %vm4343_vm0, %v5690_v6 }
 0x2bf   :  { %v2500_v41 = vmax.f32 %v2462_v26, 0.0  ;;  %v2419_v46 = vadd.f32 %v2150_v16, %v4918_v29 }
 0x2c0   :  { %v5229_v55 = vpop.f32.mrf.mxu0 }
 0x2c1   :  { %v2620_v57 = vsub.f32 %v2500_v41, %v2380_v9  ;;  %v2463_v3 = vadd.f32 %v5119_v4, %v2419_v46  ;;  %v2345_v41 = vadd.f32 %v5129_v20, %v2301_v1 }
 0x2c2   :  { %v2154_v33 = vpop.f32.mrf.mxu0 }
 0x2c3   :  { %v2653_v62 = vpack.c.bf16 %v2620_v57, %v2619_v21  ;;  %v2420_v50 = vadd.f32 %v2154_v33, %v4925_v31  ;;  %v2501_v8 = vmax.f32 %v2463_v3, 0.0  ;;  %v2302_v31 = vadd.f32 %v5039_v13, %v4937_v22  ;;  %v5264_v3 = vpop.f32.mrf.mxu1 }
 0x2c4   :  { %v5237_v51 = vpop.f32.mrf.mxu0  ;;  %v2303_v21 = vadd.f32 %v5054_v28, %v4943_v5  ;;  %v2304_v57 = vadd.f32 %v5066_v19, %v4953_v52  ;;  %v2383_v32 = vmax.f32 %v2345_v41, 0.0 }
 0x2c5   :  { %v2464_v29 = vadd.f32 %v5119_v4, %v2420_v50  ;;  %3705 = vmatmul.mubr.bf16.gmra.mxu1 %v2653_v62  ;;  %v2621_v34 = vsub.f32 %v2501_v8, %v2381_v43  ;;  %v2346_v46 = vadd.f32 %v5129_v20, %v2302_v31  ;;  %v5274_v19 = vpop.f32.mrf.mxu1 }
 0x2c6   :  { %v2160_v60 = vpop.f32.mrf.mxu0  ;;  %3708 = vmatprep.mubr.msk.bf16.mxu1 %vm4343_vm0, %v5690_v6  ;;  %v2347_v28 = vadd.f32 %v5129_v20, %v2303_v21  ;;  %v2348_v52 = vadd.f32 %v5129_v20, %v2304_v57 }
 0x2c7   :  { %v2502_v12 = vmax.f32 %v2464_v29, 0.0  ;;  %v2421_v49 = vadd.f32 %v2160_v60, %v4934_v37 }
 0x2c8   :  { %v5249_v26 = vpop.f32.mrf.mxu0 }
 0x2c9   :  { %v2622_v39 = vsub.f32 %v2502_v12, %v2382_v24  ;;  %v2465_v16 = vadd.f32 %v5119_v4, %v2421_v49  ;;  %v2385_v12 = vmax.f32 %v2347_v28, 0.0  ;;  %v2386_v49 = vmax.f32 %v2348_v52, 0.0  ;;  %v5696_v52 = vld [vmem:[#allocation26_spill] sm:$0xff] }
 0x2ca   :  { %v2164_v9 = vpop.f32.mrf.mxu0 }
 0x2cb   :  { %v2654_v7 = vpack.c.bf16 %v2622_v39, %v2621_v34  ;;  %v2422_v59 = vadd.f32 %v2164_v9, %v4941_v25  ;;  %v2503_v13 = vmax.f32 %v2465_v16, 0.0  ;;  %v2384_v25 = vmax.f32 %v2346_v46, 0.0  ;;  %v5280_v34 = vpop.f32.mrf.mxu1  ;;  %v5691_v9 = vld [vmem:[#allocation63_spill] sm:$0xff]  ;;  %v5692_v46 = vld [vmem:[#allocation20_spill] sm:$0xff] }
 0x2cc   :  { %v5257_v22 = vpop.f32.mrf.mxu0  ;;  %v2305_v16 = vadd.f32 %v5078_v30, %v4959_v61  ;;  %v5693_v30 = vld [vmem:[#allocation22_spill] sm:$0xff] }
 0x2cd   :  { %v2466_v37 = vadd.f32 %v5119_v4, %v2422_v59  ;;  %3709 = vmatmul.mubr.bf16.gmra.mxu1 %v2654_v7  ;;  %v2623_v8 = vsub.f32 %v2503_v13, %v2383_v32  ;;  %v5292_v57 = vpop.f32.mrf.mxu1 }
 0x2ce   :  { %v2170_v48 = vpop.f32.mrf.mxu0  ;;  %3712 = vmatprep.mubr.msk.bf16.mxu1 %vm4343_vm0, %v5690_v6  ;;  %v2349_v32 = vadd.f32 %v5129_v20, %v2305_v16 }
 0x2cf   :  { %v2504_v33 = vmax.f32 %v2466_v37, 0.0  ;;  %v2423_v62 = vadd.f32 %v2170_v48, %v4950_v36 }
 0x2d0   :  { %v5269_v50 = vpop.f32.mrf.mxu0 }
 0x2d1   :  { %v2624_v29 = vsub.f32 %v2504_v33, %v2384_v25  ;;  %v2467_v5 = vadd.f32 %v5119_v4, %v2423_v62 }
 0x2d2   :  { %v2174_v43 = vpop.f32.mrf.mxu0 }
 0x2d3   :  { %v2655_v24 = vpack.c.bf16 %v2624_v29, %v2623_v8  ;;  %v2424_v60 = vadd.f32 %v2174_v43, %v4957_v15  ;;  %v2505_v31 = vmax.f32 %v2467_v5, 0.0  ;;  %v2306_v15 = vadd.f32 %v5691_v9, %v4969_v0  ;;  %v5694_v29 = vld [vmem:[#allocation23_spill] sm:$0xff]  ;;  %v5695_v5 = vld [vmem:[#allocation69_spill] sm:$0xff] }
 0x2d4   :  { %v5277_v1 = vpop.f32.mrf.mxu0  ;;  %v2307_v28 = vadd.f32 %v5695_v5, %v5694_v29  ;;  %v5697_v43 = vld [vmem:[#allocation75_spill] sm:$0xff] }
 0x2d5   :  { %v2468_v36 = vadd.f32 %v5119_v4, %v2424_v60  ;;  %3713 = vmatmul.mubr.bf16.gmra.mxu1 %v2655_v24  ;;  %v2625_v13 = vsub.f32 %v2505_v31, %v2385_v12  ;;  %v2350_v25 = vadd.f32 %v5129_v20, %v2306_v15  ;;  %v2308_v24 = vadd.f32 %v5697_v43, %v5696_v52  ;;  %v5304_v60 = vpop.f32.mrf.mxu1  ;;  %v5702_v43 = vld [vmem:[#allocation31_spill] sm:$0xff] }
 0x2d6   :  { %v2180_v39 = vpop.f32.mrf.mxu0  ;;  %3716 = vmatprep.mubr.msk.bf16.mxu1 %vm4343_vm0, %v5690_v6 }
 0x2d7   :  { %v2506_v41 = vmax.f32 %v2468_v36, 0.0  ;;  %v2425_v7 = vadd.f32 %v2180_v39, %v5692_v46  ;;  %v2387_v36 = vmax.f32 %v2349_v32, 0.0  ;;  %v2388_v12 = vmax.f32 %v2350_v25, 0.0  ;;  %v5698_v39 = vld [vmem:[#allocation24_spill] sm:$0xff] }
 0x2d8   :  { %v5289_v59 = vpop.f32.mrf.mxu0 }
 0x2d9   :  { %v2626_v37 = vsub.f32 %v2506_v41, %v2386_v49  ;;  %v2469_v21 = vadd.f32 %v5119_v4, %v2425_v7  ;;  %v2351_v7 = vadd.f32 %v5129_v20, %v2307_v28  ;;  %v5701_v28 = vld [vmem:[#allocation28_spill] sm:$0xff] }
 0x2da   :  { %v2184_v48 = vpop.f32.mrf.mxu0  ;;  %v2309_v52 = vadd.f32 %v5146_v53, %v5701_v28 }
 0x2db   :  { %v2656_v61 = vpack.c.bf16 %v2626_v37, %v2625_v13  ;;  %v2426_v33 = vadd.f32 %v2184_v48, %v5693_v30  ;;  %v2507_v62 = vmax.f32 %v2469_v21, 0.0  ;;  %v2352_v13 = vadd.f32 %v5129_v20, %v2308_v24  ;;  %v5314_v37 = vpop.f32.mrf.mxu1 }
 0x2dc   :  { %v5297_v0 = vpop.f32.mrf.mxu0  ;;  %5699 = vst [vmem:[#allocation63_spill] sm:$0xff] %v5314_v37  ;;  %v2310_v24 = vadd.f32 %v5160_v56, %v5702_v43 }
 0x2dd   :  { %v2470_v8 = vadd.f32 %v5119_v4, %v2426_v33  ;;  %3717 = vmatmul.mubr.bf16.gmra.mxu1 %v2656_v61  ;;  %v2627_v15 = vsub.f32 %v2507_v62, %v2387_v36  ;;  %v5700_v61 = vld [vmem:[#allocation27_spill] sm:$0xff]  ;;  %v2389_v62 = vmax.f32 %v2351_v7, 0.0  ;;  %v5320_v29 = vpop.f32.mrf.mxu1  ;;  %v5703_v36 = vld [vmem:[#allocation29_spill] sm:$0xff]  ;;  %v2353_v7 = vadd.f32 %v5129_v20, %v2309_v52 }
 0x2de   :  { %v2190_v31 = vpop.f32.mrf.mxu0  ;;  %3720 = vmatprep.mubr.msk.bf16.mxu1 %vm4343_vm0, %v5690_v6 }
 0x2df   :  { %v2508_v49 = vmax.f32 %v2470_v8, 0.0  ;;  %v2427_v16 = vadd.f32 %v2190_v31, %v5698_v39  ;;  %v2390_v8 = vmax.f32 %v2352_v13, 0.0  ;;  %v2354_v13 = vadd.f32 %v5129_v20, %v2310_v24 }
 0x2e0   :  { %v5309_v9 = vpop.f32.mrf.mxu0  ;;  %v2391_v52 = vmax.f32 %v2353_v7, 0.0 }
 0x2e1   :  { %v2628_v41 = vsub.f32 %v2508_v49, %v2388_v12  ;;  %v2471_v46 = vadd.f32 %v5119_v4, %v2427_v16  ;;  %v2392_v43 = vmax.f32 %v2354_v13, 0.0 }
 0x2e2   :  { %v2194_v21 = vpop.f32.mrf.mxu0 }
 0x2e3   :  { %v2657_v48 = vpack.c.bf16 %v2628_v41, %v2627_v15  ;;  %v2428_v32 = vadd.f32 %v2194_v21, %v5700_v61  ;;  %v2509_v30 = vmax.f32 %v2471_v46, 0.0  ;;  %v5332_v41 = vpop.f32.mrf.mxu1  ;;  %v5705_v21 = vld [vmem:[#allocation32_spill] sm:$0xff] }
 0x2e4   :  { %v5317_v25 = vpop.f32.mrf.mxu0  ;;  %5704 = vst [vmem:[#allocation20_spill] sm:$0xff] %v5332_v41 }
 0x2e5   :  { %v2472_v33 = vadd.f32 %v5119_v4, %v2428_v32  ;;  %3721 = vmatmul.mubr.bf16.gmra.mxu1 %v2657_v48  ;;  %v2629_v39 = vsub.f32 %v2509_v30, %v2389_v62  ;;  %v5706_v30 = vld [vmem:[#allocation33_spill] sm:$0xff]  ;;  %v5707_v62 = vld [vmem:[#allocation36_spill] sm:$0xff] }
 0x2e6   :  { %v2200_v5 = vpop.f32.mrf.mxu0  ;;  %3724 = vmatprep.mubr.msk.bf16.mxu1 %vm4343_vm0, %v5690_v6 }
 0x2e7   :  { %v2510_v31 = vmax.f32 %v2472_v33, 0.0  ;;  %v2429_v12 = vadd.f32 %v2200_v5, %v5703_v36  ;;  %v2311_v33 = vadd.f32 %v5184_v11, %v5706_v30  ;;  %v5344_v5 = vpop.f32.mrf.mxu1 }
 0x2e8   :  { %v5329_v49 = vpop.f32.mrf.mxu0 }
 0x2e9   :  { %v2630_v16 = vsub.f32 %v2510_v31, %v2390_v8  ;;  %v2473_v15 = vadd.f32 %v5119_v4, %v2429_v12  ;;  %v2312_v8 = vadd.f32 %v5200_v54, %v5707_v62  ;;  %v5708_v31 = vld [vmem:[#allocation34_spill] sm:$0xff] }
 0x2ea   :  { %v2204_v46 = vpop.f32.mrf.mxu0 }
 0x2eb   :  { %v2658_v53 = vpack.c.bf16 %v2630_v16, %v2629_v39  ;;  %v2430_v48 = vadd.f32 %v2204_v46, %v5705_v21  ;;  %v2511_v61 = vmax.f32 %v2473_v15, 0.0  ;;  %v2355_v15 = vadd.f32 %v5129_v20, %v2311_v33  ;;  %v5354_v46 = vpop.f32.mrf.mxu1  ;;  %v5711_v33 = vld [vmem:[#allocation38_spill] sm:$0xff] }
 0x2ec   :  { %v5337_v56 = vpop.f32.mrf.mxu0  ;;  %v2356_v54 = vadd.f32 %v5129_v20, %v2312_v8  ;;  %5709 = vst [vmem:[#allocation22_spill] sm:$0xff] %v5354_v46  ;;  %v2313_v8 = vadd.f32 %v5224_v2, %v5711_v33  ;;  %v5715_v33 = vld [vmem:[#allocation42_spill] sm:$0xff] }
 0x2ed   :  { %v2474_v32 = vadd.f32 %v5119_v4, %v2430_v48  ;;  %3725 = vmatmul.mubr.bf16.gmra.mxu1 %v2658_v53  ;;  %v2631_v39 = vsub.f32 %v2511_v61, %v2391_v52  ;;  %v5710_v48 = vld [vmem:[#allocation37_spill] sm:$0xff]  ;;  %v2393_v61 = vmax.f32 %v2355_v15, 0.0 }
 0x2ee   :  { %v2210_v28 = vpop.f32.mrf.mxu0  ;;  %3728 = vmatprep.mubr.msk.bf16.mxu1 %vm4343_vm0, %v5690_v6  ;;  %v2394_v62 = vmax.f32 %v2356_v54, 0.0 }
 0x2ef   :  { %v2512_v24 = vmax.f32 %v2474_v32, 0.0  ;;  %v2431_v36 = vadd.f32 %v2210_v28, %v5708_v31  ;;  %v5360_v28 = vpop.f32.mrf.mxu1 }
 0x2f0   :  { %v5349_v12 = vpop.f32.mrf.mxu0 }
 0x2f1   :  { %v2632_v16 = vsub.f32 %v2512_v24, %v2392_v43  ;;  %v2475_v11 = vadd.f32 %v5119_v4, %v2431_v36  ;;  %v5712_v43 = vld [vmem:[#allocation41_spill] sm:$0xff]  ;;  %v5713_v36 = vld [vmem:[#allocation39_spill] sm:$0xff] }
 0x2f2   :  { %v2214_v53 = vpop.f32.mrf.mxu0  ;;  %v2314_v24 = vadd.f32 %v5240_v35, %v5712_v43 }
 0x2f3   :  { %v2659_v21 = vpack.c.bf16 %v2632_v16, %v2631_v39  ;;  %v2432_v7 = vadd.f32 %v2214_v53, %v5710_v48  ;;  %v2513_v32 = vmax.f32 %v2475_v11, 0.0  ;;  %v5372_v53 = vpop.f32.mrf.mxu1  ;;  %v2357_v48 = vadd.f32 %v5129_v20, %v2313_v8 }
 0x2f4   :  { %v5357_v13 = vpop.f32.mrf.mxu0  ;;  %5714 = vst [vmem:[#allocation23_spill] sm:$0xff] %v5372_v53  ;;  %v5720_v53 = vld [vmem:[#allocation47_spill] sm:$0xff] }
 0x2f5   :  { %v2476_v30 = vadd.f32 %v5119_v4, %v2432_v7  ;;  %3729 = vmatmul.mubr.bf16.gmra.mxu1 %v2659_v21  ;;  %v2633_v11 = vsub.f32 %v2513_v32, %v2393_v61  ;;  %v2358_v7 = vadd.f32 %v5129_v20, %v2314_v24  ;;  %v5716_v32 = vld [vmem:[#allocation43_spill] sm:$0xff]  ;;  %v2395_v24 = vmax.f32 %v2357_v48, 0.0 }
 0x2f6   :  { %v2220_v52 = vpop.f32.mrf.mxu0  ;;  %3732 = vmatprep.mubr.msk.bf16.mxu1 %vm4343_vm0, %v5690_v6  ;;  %v2315_v61 = vadd.f32 %v5264_v3, %v5716_v32 }
 0x2f7   :  { %v2514_v31 = vmax.f32 %v2476_v30, 0.0  ;;  %v2433_v39 = vadd.f32 %v2220_v52, %v5713_v36  ;;  %v2396_v36 = vmax.f32 %v2358_v7, 0.0 }
 0x2f8   :  { %v5369_v16 = vpop.f32.mrf.mxu0 }
 0x2f9   :  { %v2634_v15 = vsub.f32 %v2514_v31, %v2394_v62  ;;  %v2477_v54 = vadd.f32 %v5119_v4, %v2433_v39  ;;  %v5717_v62 = vld [vmem:[#allocation46_spill] sm:$0xff]  ;;  %v5384_v31 = vpop.f32.mrf.mxu1 }
 0x2fa   :  { %v2224_v21 = vpop.f32.mrf.mxu0  ;;  %v2316_v43 = vadd.f32 %v5280_v34, %v5717_v62 }
 0x2fb   :  { %v2660_v2 = vpack.c.bf16 %v2634_v15, %v2633_v11  ;;  %v2434_v46 = vadd.f32 %v2224_v21, %v5715_v33  ;;  %v2515_v30 = vmax.f32 %v2477_v54, 0.0  ;;  %v5718_v11 = vld [vmem:[#allocation44_spill] sm:$0xff]  ;;  %v5394_v33 = vpop.f32.mrf.mxu1 }
 0x2fc   :  { %v5377_v35 = vpop.f32.mrf.mxu0  ;;  %v2360_v34 = vadd.f32 %v5129_v20, %v2316_v43  ;;  %5719 = vst [vmem:[#allocation69_spill] sm:$0xff] %v5394_v33 }
 0x2fd   :  { %v2478_v52 = vadd.f32 %v5119_v4, %v2434_v46  ;;  %3733 = vmatmul.mubr.bf16.gmra.mxu1 %v2660_v2  ;;  %v2635_v46 = vsub.f32 %v2515_v30, %v2395_v24  ;;  %v2359_v2 = vadd.f32 %v5129_v20, %v2315_v61  ;;  %v5721_v61 = vld [vmem:[#allocation48_spill] sm:$0xff] }
 0x2fe   :  { %v2230_v8 = vpop.f32.mrf.mxu0  ;;  %3736 = vmatprep.mubr.msk.bf16.mxu1 %vm4343_vm0, %v5690_v6  ;;  %v2398_v24 = vmax.f32 %v2360_v34, 0.0  ;;  %v2317_v43 = vadd.f32 %v5304_v60, %v5721_v61  ;;  %v5725_v61 = vld [vmem:[#allocation52_spill] sm:$0xff] }
 0x2ff   :  { %v2516_v39 = vmax.f32 %v2478_v52, 0.0  ;;  %v2435_v15 = vadd.f32 %v2230_v8, %v5718_v11  ;;  %v2397_v30 = vmax.f32 %v2359_v2, 0.0  ;;  %v5722_v11 = vld [vmem:[#allocation51_spill] sm:$0xff] }
 0x300   :  { %v5389_v54 = vpop.f32.mrf.mxu0  ;;  %v2361_v33 = vadd.f32 %v5129_v20, %v2317_v43 }
 0x301   :  { %v2636_v21 = vsub.f32 %v2516_v39, %v2396_v36  ;;  %v2479_v3 = vadd.f32 %v5119_v4, %v2435_v15  ;;  %v1942_v36 = vpop.f32.mrf.mxu1  ;;  %v2318_v15 = vadd.f32 %v5320_v29, %v5722_v11 }
 0x302   :  { %v2234_v32 = vpop.f32.mrf.mxu0  ;;  %v2399_v43 = vmax.f32 %v2361_v33, 0.0 }
 0x303   :  { %v2661_v62 = vpack.c.bf16 %v2636_v21, %v2635_v46  ;;  %v2436_v48 = vadd.f32 %v2234_v32, %v5720_v53  ;;  %v2517_v52 = vmax.f32 %v2479_v3, 0.0  ;;  %v5723_v46 = vld [vmem:[#allocation49_spill] sm:$0xff]  ;;  %v5410_v34 = vpop.f32.mrf.mxu1  ;;  %v2362_v41 = vadd.f32 %v5129_v20, %v2318_v15 }
 0x304   :  { %v5397_v7 = vpop.f32.mrf.mxu0  ;;  %5724 = vst [vmem:[#allocation26_spill] sm:$0xff] %v5410_v34  ;;  %v5731_v34 = vld [vmem:[#allocation57_spill] sm:$0xff] }
 0x305   :  { %v2480_v8 = vadd.f32 %v5119_v4, %v2436_v48  ;;  %3737 = vmatmul.mubr.bf16.gmra.mxu1 %v2661_v62  ;;  %v2637_v32 = vsub.f32 %v2517_v52, %v2397_v30  ;;  %v5726_v52 = vld [vmem:[#allocation53_spill] sm:$0xff]  ;;  %v2400_v15 = vmax.f32 %v2362_v41, 0.0 }
 0x306   :  { %v2240_v39 = vpop.f32.mrf.mxu0  ;;  %3740 = vmatprep.mubr.msk.bf16.mxu1 %vm4343_vm0, %v5690_v6  ;;  %v2319_v30 = vadd.f32 %v5344_v5, %v5726_v52 }
 0x307   :  { %v2518_v53 = vmax.f32 %v2480_v8, 0.0  ;;  %v2437_v21 = vadd.f32 %v2240_v39, %v5723_v46 }
 0x308   :  { %v5407_v3 = vpop.f32.mrf.mxu0  ;;  %v2363_v5 = vadd.f32 %v5129_v20, %v2319_v30  ;;  %v5733_v30 = vld [vmem:[#allocation58_spill] sm:$0xff] }
 0x309   :  { %v2638_v62 = vsub.f32 %v2518_v53, %v2398_v24  ;;  %v2481_v2 = vadd.f32 %v5119_v4, %v2437_v21  ;;  %v5727_v24 = vld [vmem:[#allocation56_spill] sm:$0xff]  ;;  %v1948_v53 = vpop.f32.mrf.mxu1 }
 0x30a   :  { %v2244_v48 = vpop.f32.mrf.mxu0  ;;  %v2320_v11 = vadd.f32 %v5360_v28, %v5727_v24 }
 0x30b   :  { %v2662_v60 = vpack.c.bf16 %v2638_v62, %v2637_v32  ;;  %v2438_v37 = vadd.f32 %v2244_v48, %v5725_v61  ;;  %v2519_v8 = vmax.f32 %v2481_v2, 0.0  ;;  %v5728_v32 = vld [vmem:[#allocation54_spill] sm:$0xff]  ;;  %v5430_v61 = vpop.f32.mrf.mxu1 }
 0x30c   :  { %v5415_v29 = vpop.f32.mrf.mxu0  ;;  %v2364_v28 = vadd.f32 %v5129_v20, %v2320_v11  ;;  %5730 = vst [vmem:[#allocation24_spill] sm:$0xff] %v5430_v61  ;;  %v2321_v11 = vadd.f32 %v5384_v31, %v5733_v30  ;;  %v5737_v31 = vld [vmem:[#allocation62_spill] sm:$0xff] }
 0x30d   :  { %v2482_v39 = vadd.f32 %v5119_v4, %v2438_v37  ;;  %3741 = vmatmul.mubr.bf16.gmra.mxu1 %v2662_v60  ;;  %v2639_v37 = vsub.f32 %v2519_v8, %v2399_v43  ;;  %v2401_v8 = vmax.f32 %v2363_v5, 0.0 }
 0x30e   :  { %v2250_v46 = vpop.f32.mrf.mxu0  ;;  %3744 = vmatprep.mubr.msk.bf16.mxu1 %vm4343_vm0, %v5690_v6  ;;  %v2402_v43 = vmax.f32 %v2364_v28, 0.0  ;;  %v2365_v61 = vadd.f32 %v5129_v20, %v2321_v11 }
 0x30f   :  { %v2520_v21 = vmax.f32 %v2482_v39, 0.0  ;;  %v2439_v62 = vadd.f32 %v2250_v46, %v5728_v32  ;;  %v5734_v32 = vld [vmem:[#allocation61_spill] sm:$0xff] }
 0x310   :  { %v5425_v2 = vpop.f32.mrf.mxu0  ;;  %v2403_v11 = vmax.f32 %v2365_v61, 0.0 }
 0x311   :  { %5729 = vst [vmem:[#allocation75_spill] sm:$0xff] %v5425_v2  ;;  %v2640_v48 = vsub.f32 %v2520_v21, %v2400_v15  ;;  %v2483_v60 = vadd.f32 %v5119_v4, %v2439_v62  ;;  %v1952_v15 = vpop.f32.mrf.mxu1  ;;  %v2322_v62 = vadd.f32 %v1942_v36, %v5734_v32 }
 0x312   :  { %v2254_v52 = vpop.f32.mrf.mxu0 }
 0x313   :  { %v2663_v24 = vpack.c.bf16 %v2640_v48, %v2639_v37  ;;  %v2440_v33 = vadd.f32 %v2254_v52, %v5731_v34  ;;  %v2521_v39 = vmax.f32 %v2483_v60, 0.0  ;;  %v5735_v34 = vld [vmem:[#allocation59_spill] sm:$0xff]  ;;  %v5445_v28 = vpop.f32.mrf.mxu1 }
 0x314   :  { %v5433_v41 = vpop.f32.mrf.mxu0  ;;  %5736 = vst [vmem:[#allocation28_spill] sm:$0xff] %v5445_v28  ;;  %v5744_v28 = vld [vmem:[#allocation68_spill] sm:$0xff] }
 0x315   :  { %5732 = vst [vmem:[#allocation27_spill] sm:$0xff] %v5433_v41  ;;  %v2484_v46 = vadd.f32 %v5119_v4, %v2440_v33  ;;  %3745 = vmatmul.mubr.bf16.gmra.mxu1 %v2663_v24  ;;  %v2641_v60 = vsub.f32 %v2521_v39, %v2401_v8  ;;  %v2366_v41 = vadd.f32 %v5129_v20, %v2322_v62  ;;  %v5739_v39 = vld [vmem:[#allocation64_spill] sm:$0xff] }
 0x316   :  { %v2260_v21 = vpop.f32.mrf.mxu0  ;;  %3748 = vmatprep.mubr.msk.bf16.mxu1 %vm4343_vm0, %v5690_v6  ;;  %v2323_v8 = vadd.f32 %v1948_v53, %v5739_v39 }
 0x317   :  { %v2522_v37 = vmax.f32 %v2484_v46, 0.0  ;;  %v2441_v48 = vadd.f32 %v2260_v21, %v5735_v34  ;;  %v2404_v62 = vmax.f32 %v2366_v41, 0.0 }
 0x318   :  { %v5442_v52 = vpop.f32.mrf.mxu0  ;;  %v2367_v53 = vadd.f32 %v5129_v20, %v2323_v8  ;;  %v5746_v8 = vld [vmem:[#allocation70_spill] sm:$0xff] }
 0x319   :  { %v2642_v33 = vsub.f32 %v2522_v37, %v2402_v43  ;;  %v2485_v5 = vadd.f32 %v5119_v4, %v2441_v48  ;;  %v5740_v43 = vld [vmem:[#allocation67_spill] sm:$0xff]  ;;  %v1958_v37 = vpop.f32.mrf.mxu1 }
 0x31a   :  { %v2264_v24 = vpop.f32.mrf.mxu0  ;;  %v2324_v32 = vadd.f32 %v1952_v15, %v5740_v43 }
 0x31b   :  { %v2664_v2 = vpack.c.bf16 %v2642_v33, %v2641_v60  ;;  %v2442_v30 = vadd.f32 %v2264_v24, %v5737_v31  ;;  %v2523_v46 = vmax.f32 %v2485_v5, 0.0  ;;  %v5741_v60 = vld [vmem:[#allocation65_spill] sm:$0xff] }
 0x31c   :  { %v5450_v36 = vpop.f32.mrf.mxu0  ;;  %v2368_v15 = vadd.f32 %v5129_v20, %v2324_v32  ;;  %v2325_v32 = vadd.f32 %v1958_v37, %v5746_v8 }
 0x31d   :  { %5738 = vst [vmem:[#allocation31_spill] sm:$0xff] %v5450_v36  ;;  %v2486_v21 = vadd.f32 %v5119_v4, %v2442_v30  ;;  %3749 = vmatmul.mubr.bf16.gmra.mxu1 %v2664_v2  ;;  %v2643_v5 = vsub.f32 %v2523_v46, %v2403_v11  ;;  %v5463_v30 = vpop.f32.mrf.mxu1  ;;  %v2405_v46 = vmax.f32 %v2367_v53, 0.0 }
 0x31e   :  { %v2270_v34 = vpop.f32.mrf.mxu0  ;;  %3752 = vmatprep.mubr.msk.bf16.mxu1 %vm4343_vm0, %v5690_v6  ;;  %5743 = vst [vmem:[#allocation32_spill] sm:$0xff] %v5463_v30  ;;  %v2406_v11 = vmax.f32 %v2368_v15, 0.0  ;;  %v2369_v15 = vadd.f32 %v5129_v20, %v2325_v32  ;;  %v5750_v32 = vld [vmem:[#allocation12_spill] sm:$0xff] }
 0x31f   :  { %v2524_v48 = vmax.f32 %v2486_v21, 0.0  ;;  %v2443_v33 = vadd.f32 %v2270_v34, %v5741_v60  ;;  %v5747_v60 = vld [vmem:[#allocation73_spill] sm:$0xff] }
 0x320   :  { %v5458_v24 = vpop.f32.mrf.mxu0 }
 0x321   :  { %5742 = vst [vmem:[#allocation29_spill] sm:$0xff] %v5458_v24  ;;  %v2644_v31 = vsub.f32 %v2524_v48, %v2404_v62  ;;  %v2487_v2 = vadd.f32 %v5119_v4, %v2443_v33  ;;  %v1962_v62 = vpop.f32.mrf.mxu1  ;;  %v5749_v24 = vld [vmem:[#allocation74_spill] sm:$0xff] }
 0x322   :  { %v2274_v39 = vpop.f32.mrf.mxu0  ;;  %v2326_v33 = vadd.f32 %v1962_v62, %v5747_v60  ;;  %v5751_v60 = vld [vmem:[#allocation76_spill] sm:$0xff] }
 0x323   :  { %v2665_v43 = vpack.c.bf16 %v2644_v31, %v2643_v5  ;;  %v2444_v61 = vadd.f32 %v2274_v39, %v5744_v28  ;;  %v2525_v21 = vmax.f32 %v2487_v2, 0.0  ;;  %v5748_v31 = vld [vmem:[#allocation71_spill] sm:$0xff] }
 0x324   :  { %v5466_v41 = vpop.f32.mrf.mxu0 }
 0x325   :  { %5745 = vst [vmem:[#allocation33_spill] sm:$0xff] %v5466_v41  ;;  %v2488_v34 = vadd.f32 %v5119_v4, %v2444_v61  ;;  %3753 = vmatmul.mubr.bf16.gmra.mxu1 %v2665_v43  ;;  %v2645_v2 = vsub.f32 %v2525_v21, %v2405_v46  ;;  %v2370_v61 = vadd.f32 %v5129_v20, %v2326_v33 }
 0x326   :  { %v2280_v48 = vpop.f32.mrf.mxu0  ;;  %3756 = vmatprep.mubr.msk.bf16.mxu1 %vm4343_vm0, %v5690_v6  ;;  %v2529_v20 = vadd.f32 %v5751_v60, %v5750_v32 }
 0x327   :  { %v2526_v5 = vmax.f32 %v2488_v34, 0.0  ;;  %v2445_v28 = vadd.f32 %v2280_v48, %v5748_v31  ;;  %v2407_v34 = vmax.f32 %v2369_v15, 0.0  ;;  %v2408_v21 = vmax.f32 %v2370_v61, 0.0 }
 0x328   :  { %v5474_v39 = vpop.f32.mrf.mxu0 }
 0x329   :  { %v2646_v30 = vsub.f32 %v2526_v5, %v2406_v11  ;;  %v2489_v43 = vadd.f32 %v5119_v4, %v2445_v28 }
 0x32a   :  { %v2284_v53 = vpop.f32.mrf.mxu0 }
 0x32b   :  { %v2666_v41 = vpack.c.bf16 %v2646_v30, %v2645_v2  ;;  %v2446_v36 = vadd.f32 %v2284_v53, %v5749_v24  ;;  %v2527_v37 = vmax.f32 %v2489_v43, 0.0  ;;  %v5485_v30 = vpop.f32.mrf.mxu1  ;;  %v5753_v24 = vld [vmem:[#allocation78_spill] sm:$0xff] }
 0x32c   :  { %v5754_v43 = vld [vmem:[#allocation14_spill] sm:$0xff] }
 0x32d   :  { %v2490_v62 = vadd.f32 %v5119_v4, %v2446_v36  ;;  %3757 = vmatmul.mubr.bf16.gmra.mxu1 %v2666_v41  ;;  %v2647_v11 = vsub.f32 %v2527_v37, %v2407_v34  ;;  %v5490_v4 = vld [vmem:[%s5609_s3 + $0x4] ss:$0 sm:$0xff]  ;;  %v2531_v53 = vadd.f32 %v5149_v40, %v5754_v43  ;;  %v5755_v37 = vld [vmem:[#allocation15_spill] sm:$0xff]  ;;  %s4345_s3 = smov [#allocation8]  }
 0x32e   :  { %3760 = vmatprep.mubr.msk.bf16.mxu1 %vm4343_vm0, %v5690_v6  ;;  %v5752_v36 = vld [vmem:[#allocation13_spill] sm:$0xff]  ;;  %v2573_v33 = vadd.f32 %v5490_v4, %v2529_v20  ;;  %s3134_s19 = sshll.u32 %s4345_s3, 4  ;;  %s3135_s19 = int_to_ptr.vmem [resolvable:$true] %s3134_s19 }
 0x32f   :  { %v2528_v46 = vmax.f32 %v2490_v62, 0.0  ;;  %v2530_v6 = vadd.f32 %v5753_v24, %v5752_v36  ;;  %v2532_v62 = vadd.f32 %v5157_v14, %v5755_v37  ;;  %v5756_v36 = vld [vmem:[#allocation16_spill] sm:$0xff]  ;;  %v5758_v37 = vld [vmem:[#allocation18_spill] sm:$0xff]  ;;  %s4309_s20 = scalar_lea.vmem %s3135_s19, 2432  ;;  %p4314_p2 = scmp.lt.s32.totalorder %s3135_s19, %s3135_s19 }
 0x330   :  { %v2533_v40 = vadd.f32 %v5169_v10, %v5756_v36  ;;  %v2535_v10 = vadd.f32 %v5189_v58, %v5758_v37  ;;  %v5762_v37 = vld [vmem:[#allocation30_spill] sm:$0xff]  ;;  %p4310_p1 = scmp.ne.s32.totalorder %s3135_s19, %s4309_s20  ;;  %p4315_p3 = scmp.lt.s32.totalorder %s4309_s20, %s4309_s20 }
 0x331   :  { %v2648_v48 = vsub.f32 %v2528_v46, %v2408_v21  ;;  %v2574_v28 = vadd.f32 %v5490_v4, %v2530_v6  ;;  %v2576_v60 = vadd.f32 %v5490_v4, %v2532_v62 }
 0x332   :  { %p4316_p4 = por %p4315_p3, %p4314_p2 }
 0x333   :  { %v2667_v8 = vpack.c.bf16 %v2648_v48, %v2647_v11  ;;  %v2575_v48 = vadd.f32 %v5490_v4, %v2531_v53 }
 0x334   :  { %p4317_p5 = pnand %p4316_p4, %p4310_p1 }
 0x335   :  { %3761 = vmatmul.mubr.bf16.gmra.mxu1 %v2667_v8 }
 0x365   :  { %v2750_v41 = vpop.f32.mrf.mxu1 }
 0x366   :  { %v2751_v31 = vadd.f32 %v2750_v41, %v2573_v33  ;;  %v5757_v41 = vld [vmem:[#allocation17_spill] sm:$0xff] }
 0x367   :  { %v3690_v5 = vpop.f32.mrf.mxu1  ;;  %v2534_v14 = vadd.f32 %v5177_v42, %v5757_v41 }
 0x368   :  { %v2901_v34 = vmax.f32 %v2751_v31, 0.0 }
 0x369   :  { %v2753_v2 = vpop.f32.mrf.mxu1 }
 0x36a   :  { %v2754_v15 = vadd.f32 %v2753_v2, %v2574_v28  ;;  %v2577_v2 = vadd.f32 %v5490_v4, %v2533_v40 }
 0x36b   :  { %v3691_v61 = vpop.f32.mrf.mxu1 }
 0x36c   :  { %v2902_v21 = vmax.f32 %v2754_v15, 0.0  ;;  %v2578_v15 = vadd.f32 %v5490_v4, %v2534_v14  ;;  %v5761_v14 = vld [vmem:[#allocation25_spill] sm:$0xff] }
 0x36d   :  { %v2758_v46 = vpop.f32.mrf.mxu1 }
 0x36e   :  { %v3303_v11 = vpack.c.bf16 %v2902_v21, %v2901_v34  ;;  %v2759_v32 = vadd.f32 %v2758_v46, %v2575_v48  ;;  %v5759_v21 = vld [vmem:[#allocation19_spill] sm:$0xff] }
 0x36f   :  { %v3694_v8 = vpop.f32.mrf.mxu1  ;;  %v2536_v42 = vadd.f32 %v5197_v38, %v5759_v21  ;;  %v2538_v38 = vadd.f32 %v5217_v17, %v5761_v14 }
 0x370   :  { %3304 = vst [vmem:[#allocation8] sm:$0xff] %v3303_v11   ;;  %v2903_v33 = vmax.f32 %v2759_v32, 0.0  ;;  %v2579_v32 = vadd.f32 %v5490_v4, %v2535_v10 }
 0x371   :  { %v2761_v20 = vpop.f32.mrf.mxu1  ;;  %v2580_v36 = vadd.f32 %v5490_v4, %v2536_v42 }
 0x372   :  { %v2762_v24 = vadd.f32 %v2761_v20, %v2576_v60 }
 0x373   :  { %v3695_v6 = vpop.f32.mrf.mxu1 }
 0x374   :  { %v2904_v5 = vmax.f32 %v2762_v24, 0.0  ;;  %v5760_v24 = vld [vmem:[#allocation21_spill] sm:$0xff] }
 0x375   :  { %v2766_v31 = vpop.f32.mrf.mxu1  ;;  %v2537_v58 = vadd.f32 %v5209_v45, %v5760_v24  ;;  %v2539_v45 = vadd.f32 %v5229_v55, %v5762_v37 }
 0x376   :  { %v3308_v28 = vpack.c.bf16 %v2904_v5, %v2903_v33  ;;  %v2767_v53 = vadd.f32 %v2766_v31, %v2577_v2 }
 0x377   :  { %v3698_v43 = vpop.f32.mrf.mxu1  ;;  %v2581_v2 = vadd.f32 %v5490_v4, %v2537_v58  ;;  %v5765_v58 = vld [vmem:[#allocation45_spill] sm:$0xff] }
 0x378   :  { %3390 = vst [vmem:[#allocation8 + $0x8] sm:$0xff] %v3308_v28   ;;  %v2905_v46 = vmax.f32 %v2767_v53, 0.0 }
 0x379   :  { %v2769_v61 = vpop.f32.mrf.mxu1 }
 0x37a   :  { %v2770_v62 = vadd.f32 %v2769_v61, %v2578_v15  ;;  %v2582_v15 = vadd.f32 %v5490_v4, %v2538_v38 }
 0x37b   :  { %v3699_v34 = vpop.f32.mrf.mxu1 }
 0x37c   :  { %v2906_v11 = vmax.f32 %v2770_v62, 0.0  ;;  %v5763_v34 = vld [vmem:[#allocation35_spill] sm:$0xff] }
 0x37d   :  { %v2774_v48 = vpop.f32.mrf.mxu1  ;;  %v2540_v17 = vadd.f32 %v5237_v51, %v5763_v34  ;;  %v2542_v51 = vadd.f32 %v5257_v22, %v5765_v58 }
 0x37e   :  { %v3313_v8 = vpack.c.bf16 %v2906_v11, %v2905_v46  ;;  %v2775_v20 = vadd.f32 %v2774_v48, %v2579_v32  ;;  %v2583_v48 = vadd.f32 %v5490_v4, %v2539_v45 }
 0x37f   :  { %v3702_v60 = vpop.f32.mrf.mxu1 }
 0x380   :  { %3391 = vst [vmem:[#allocation8 + $0x10] sm:$0xff] %v3313_v8   ;;  %v2907_v33 = vmax.f32 %v2775_v20, 0.0  ;;  %v2584_v60 = vadd.f32 %v5490_v4, %v2540_v17 }
 0x381   :  { %v2777_v40 = vpop.f32.mrf.mxu1 }
 0x382   :  { %v2778_v6 = vadd.f32 %v2777_v40, %v2580_v36  ;;  %v5764_v36 = vld [vmem:[#allocation40_spill] sm:$0xff] }
 0x383   :  { %v3703_v41 = vpop.f32.mrf.mxu1  ;;  %v2541_v55 = vadd.f32 %v5249_v26, %v5764_v36 }
 0x384   :  { %v2908_v5 = vmax.f32 %v2778_v6, 0.0 }
 0x385   :  { %v2782_v31 = vpop.f32.mrf.mxu1 }
 0x386   :  { %v3318_v28 = vpack.c.bf16 %v2908_v5, %v2907_v33  ;;  %v2783_v53 = vadd.f32 %v2782_v31, %v2581_v2  ;;  %v2585_v33 = vadd.f32 %v5490_v4, %v2541_v55 }
 0x387   :  { %v3706_v43 = vpop.f32.mrf.mxu1 }
 0x388   :  { %3392 = vst [vmem:[#allocation8 + $0x18] sm:$0xff] %v3318_v28   ;;  %v2909_v21 = vmax.f32 %v2783_v53, 0.0  ;;  %v2586_v28 = vadd.f32 %v5490_v4, %v2542_v51  ;;  %v5766_v43 = vld [vmem:[#allocation50_spill] sm:$0xff] }
 0x389   :  { %v2785_v61 = vpop.f32.mrf.mxu1  ;;  %v2543_v26 = vadd.f32 %v5269_v50, %v5766_v43 }
 0x38a   :  { %v2786_v10 = vadd.f32 %v2785_v61, %v2582_v15  ;;  %v5767_v61 = vld [vmem:[#allocation55_spill] sm:$0xff] }
 0x38b   :  { %v3707_v62 = vpop.f32.mrf.mxu1  ;;  %v2544_v22 = vadd.f32 %v5277_v1, %v5767_v61  ;;  %v2587_v34 = vadd.f32 %v5490_v4, %v2543_v26 }
 0x38c   :  { %v2910_v42 = vmax.f32 %v2786_v10, 0.0 }
 0x38d   :  { %v2790_v46 = vpop.f32.mrf.mxu1 }
 0x38e   :  { %v3323_v11 = vpack.c.bf16 %v2910_v42, %v2909_v21  ;;  %v2791_v32 = vadd.f32 %v2790_v46, %v2583_v48  ;;  %v2588_v42 = vadd.f32 %v5490_v4, %v2544_v22 }
 0x38f   :  { %v3710_v8 = vpop.f32.mrf.mxu1 }
 0x390   :  { %3393 = vst [vmem:[#allocation8 + $0x20] sm:$0xff] %v3323_v11   ;;  %v2911_v6 = vmax.f32 %v2791_v32, 0.0  ;;  %v5768_v11 = vld [vmem:[#allocation60_spill] sm:$0xff]  ;;  %v5769_v32 = vld [vmem:[#allocation66_spill] sm:$0xff] }
 0x391   :  { %v2793_v20 = vpop.f32.mrf.mxu1  ;;  %v2545_v50 = vadd.f32 %v5289_v59, %v5768_v11  ;;  %v2546_v1 = vadd.f32 %v5297_v0, %v5769_v32 }
 0x392   :  { %v2794_v40 = vadd.f32 %v2793_v20, %v2584_v60 }
 0x393   :  { %v3711_v24 = vpop.f32.mrf.mxu1  ;;  %v2590_v51 = vadd.f32 %v5490_v4, %v2546_v1 }
 0x394   :  { %v2912_v41 = vmax.f32 %v2794_v40, 0.0  ;;  %v2589_v40 = vadd.f32 %v5490_v4, %v2545_v50 }
 0x395   :  { %v2798_v14 = vpop.f32.mrf.mxu1 }
 0x396   :  { %v3328_v38 = vpack.c.bf16 %v2912_v41, %v2911_v6  ;;  %v2799_v31 = vadd.f32 %v2798_v14, %v2585_v33  ;;  %v5770_v41 = vld [vmem:[#allocation72_spill] sm:$0xff]  ;;  %v5771_v33 = vld [vmem:[#allocation77_spill] sm:$0xff] }
 0x397   :  { %v3714_v5 = vpop.f32.mrf.mxu1  ;;  %v2547_v59 = vadd.f32 %v5309_v9, %v5770_v41  ;;  %v2548_v0 = vadd.f32 %v5317_v25, %v5771_v33  ;;  %v2549_v9 = vadd.f32 %v5329_v49, %v5154_v47  ;;  %v2550_v25 = vadd.f32 %v5337_v56, %v5172_v27 }
 0x398   :  { %3394 = vst [vmem:[#allocation8 + $0x28] sm:$0xff] %v3328_v38   ;;  %v2913_v37 = vmax.f32 %v2799_v31, 0.0  ;;  %v2551_v47 = vadd.f32 %v5349_v12, %v5194_v44  ;;  %v2552_v27 = vadd.f32 %v5357_v13, %v5212_v23  ;;  %v2553_v44 = vadd.f32 %v5369_v16, %v5234_v18 }
 0x399   :  { %v2801_v2 = vpop.f32.mrf.mxu1  ;;  %v2591_v43 = vadd.f32 %v5490_v4, %v2547_v59  ;;  %v2554_v23 = vadd.f32 %v5377_v35, %v5252_v63  ;;  %v2555_v18 = vadd.f32 %v5389_v54, %v5274_v19  ;;  %v2556_v63 = vadd.f32 %v5397_v7, %v5292_v57 }
 0x39a   :  { %v2802_v53 = vadd.f32 %v2801_v2, %v2586_v28  ;;  %v2595_v1 = vadd.f32 %v5490_v4, %v2551_v47  ;;  %v5776_v47 = vld [vmem:[#allocation23_spill] sm:$0xff] }
 0x39b   :  { %v3715_v15 = vpop.f32.mrf.mxu1 }
 0x39c   :  { %v2914_v45 = vmax.f32 %v2802_v53, 0.0  ;;  %v2592_v15 = vadd.f32 %v5490_v4, %v2548_v0 }
 0x39d   :  { %v2806_v10 = vpop.f32.mrf.mxu1 }
 0x39e   :  { %v3333_v62 = vpack.c.bf16 %v2914_v45, %v2913_v37  ;;  %v2807_v21 = vadd.f32 %v2806_v10, %v2587_v34 }
 0x39f   :  { %v3718_v17 = vpop.f32.mrf.mxu1 }
 0x3a0   :  { %3395 = vst [vmem:[#allocation8 + $0x30] sm:$0xff] %v3333_v62   ;;  %v2915_v60 = vmax.f32 %v2807_v21, 0.0  ;;  %v2593_v17 = vadd.f32 %v5490_v4, %v2549_v9  ;;  %v5773_v9 = vld [vmem:[#allocation20_spill] sm:$0xff] }
 0x3a1   :  { %v2809_v46 = vpop.f32.mrf.mxu1  ;;  %v2558_v57 = vadd.f32 %v5415_v29, %v5773_v9 }
 0x3a2   :  { %v2810_v48 = vadd.f32 %v2809_v46, %v2588_v42  ;;  %v2594_v46 = vadd.f32 %v5490_v4, %v2550_v25 }
 0x3a3   :  { %v3719_v8 = vpop.f32.mrf.mxu1 }
 0x3a4   :  { %v2916_v20 = vmax.f32 %v2810_v48, 0.0 }
 0x3a5   :  { %v2814_v36 = vpop.f32.mrf.mxu1 }
 0x3a6   :  { %v3338_v55 = vpack.c.bf16 %v2916_v20, %v2915_v60  ;;  %v2815_v58 = vadd.f32 %v2814_v36, %v2589_v40  ;;  %v2596_v36 = vadd.f32 %v5490_v4, %v2552_v27 }
 0x3a7   :  { %v3722_v24 = vpop.f32.mrf.mxu1 }
 0x3a8   :  { %3396 = vst [vmem:[#allocation8 + $0x38] sm:$0xff] %v3338_v55   ;;  %v2917_v5 = vmax.f32 %v2815_v58, 0.0 }
 0x3a9   :  { %v2817_v6 = vpop.f32.mrf.mxu1 }
 0x3aa   :  { %v2818_v14 = vadd.f32 %v2817_v6, %v2590_v51  ;;  %v2597_v6 = vadd.f32 %v5490_v4, %v2553_v44 }
 0x3ab   :  { %v3723_v38 = vpop.f32.mrf.mxu1 }
 0x3ac   :  { %v2918_v31 = vmax.f32 %v2818_v14, 0.0  ;;  %v2598_v14 = vadd.f32 %v5490_v4, %v2554_v23  ;;  %v5780_v23 = vld [vmem:[#allocation31_spill] sm:$0xff] }
 0x3ad   :  { %v2822_v28 = vpop.f32.mrf.mxu1 }
 0x3ae   :  { %v3343_v2 = vpack.c.bf16 %v2918_v31, %v2917_v5  ;;  %v2823_v53 = vadd.f32 %v2822_v28, %v2591_v43  ;;  %v2599_v28 = vadd.f32 %v5490_v4, %v2555_v18 }
 0x3af   :  { %v3726_v26 = vpop.f32.mrf.mxu1 }
 0x3b0   :  { %3397 = vst [vmem:[#allocation8 + $0x40] sm:$0xff] %v3343_v2   ;;  %v2919_v45 = vmax.f32 %v2823_v53, 0.0  ;;  %v2600_v26 = vadd.f32 %v5490_v4, %v2556_v63 }
 0x3b1   :  { %v2825_v61 = vpop.f32.mrf.mxu1 }
 0x3b2   :  { %v2826_v22 = vadd.f32 %v2825_v61, %v2592_v15  ;;  %v5772_v15 = vld [vmem:[#allocation63_spill] sm:$0xff] }
 0x3b3   :  { %v3727_v37 = vpop.f32.mrf.mxu1  ;;  %v2557_v19 = vadd.f32 %v5407_v3, %v5772_v15 }
 0x3b4   :  { %v2920_v10 = vmax.f32 %v2826_v22, 0.0 }
 0x3b5   :  { %v2830_v62 = vpop.f32.mrf.mxu1 }
 0x3b6   :  { %v3348_v34 = vpack.c.bf16 %v2920_v10, %v2919_v45  ;;  %v2831_v42 = vadd.f32 %v2830_v62, %v2593_v17  ;;  %v2601_v45 = vadd.f32 %v5490_v4, %v2557_v19  ;;  %v5785_v19 = vld [vmem:[#allocation32_spill] sm:$0xff] }
 0x3b7   :  { %v3730_v21 = vpop.f32.mrf.mxu1 }
 0x3b8   :  { %3398 = vst [vmem:[#allocation8 + $0x48] sm:$0xff] %v3348_v34   ;;  %v2921_v56 = vmax.f32 %v2831_v42, 0.0  ;;  %v2602_v34 = vadd.f32 %v5490_v4, %v2558_v57  ;;  %v5774_v21 = vld [vmem:[#allocation22_spill] sm:$0xff]  ;;  %v5775_v42 = vld [vmem:[#allocation75_spill] sm:$0xff]  ;;  %v2286_v57 = vpop.f32.mrf.mxu0 }
 0x3b9   :  { %v2833_v11 = vpop.f32.mrf.mxu1  ;;  %v2559_v3 = vadd.f32 %v5775_v42, %v5774_v21 }
 0x3ba   :  { %v2834_v49 = vadd.f32 %v2833_v11, %v2594_v46 }
 0x3bb   :  { %v3731_v50 = vpop.f32.mrf.mxu1 }
 0x3bc   :  { %v2922_v48 = vmax.f32 %v2834_v49, 0.0  ;;  %v5777_v49 = vld [vmem:[#allocation27_spill] sm:$0xff] }
 0x3bd   :  { %v2838_v8 = vpop.f32.mrf.mxu1  ;;  %v2560_v29 = vadd.f32 %v5777_v49, %v5776_v47 }
 0x3be   :  { %v3353_v32 = vpack.c.bf16 %v2922_v48, %v2921_v56  ;;  %v2839_v20 = vadd.f32 %v2838_v8, %v2595_v1  ;;  %v2603_v8 = vadd.f32 %v5490_v4, %v2559_v3 }
 0x3bf   :  { %v3734_v60 = vpop.f32.mrf.mxu1 }
 0x3c0   :  { %3399 = vst [vmem:[#allocation8 + $0x50] sm:$0xff] %v3353_v32   ;;  %v2923_v13 = vmax.f32 %v2839_v20, 0.0  ;;  %v2604_v60 = vadd.f32 %v5490_v4, %v2560_v29 }
 0x3c1   :  { %v2841_v55 = vpop.f32.mrf.mxu1 }
 0x3c2   :  { %v2842_v12 = vadd.f32 %v2841_v55, %v2596_v36  ;;  %v5778_v36 = vld [vmem:[#allocation69_spill] sm:$0xff] }
 0x3c3   :  { %v3735_v40 = vpop.f32.mrf.mxu1  ;;  %v2561_v55 = vadd.f32 %v5442_v52, %v5778_v36 }
 0x3c4   :  { %v2924_v24 = vmax.f32 %v2842_v12, 0.0  ;;  %v5779_v40 = vld [vmem:[#allocation26_spill] sm:$0xff] }
 0x3c5   :  { %v2846_v58 = vpop.f32.mrf.mxu1 }
 0x3c6   :  { %v3358_v51 = vpack.c.bf16 %v2924_v24, %v2923_v13  ;;  %v2847_v59 = vadd.f32 %v2846_v58, %v2597_v6  ;;  %v2562_v13 = vadd.f32 %v5780_v23, %v5779_v40 }
 0x3c7   :  { %v3738_v41 = vpop.f32.mrf.mxu1 }
 0x3c8   :  { %3400 = vst [vmem:[#allocation8 + $0x58] sm:$0xff] %v3358_v51   ;;  %v2925_v35 = vmax.f32 %v2847_v59, 0.0  ;;  %v2605_v41 = vadd.f32 %v5490_v4, %v2561_v55 }
 0x3c9   :  { %v2849_v38 = vpop.f32.mrf.mxu1 }
 0x3ca   :  { %v2850_v16 = vadd.f32 %v2849_v38, %v2598_v14  ;;  %v2606_v38 = vadd.f32 %v5490_v4, %v2562_v13 }
 0x3cb   :  { %v3739_v33 = vpop.f32.mrf.mxu1 }
 0x3cc   :  { %v2926_v0 = vmax.f32 %v2850_v16, 0.0  ;;  %v5781_v16 = vld [vmem:[#allocation24_spill] sm:$0xff]  ;;  %v5782_v33 = vld [vmem:[#allocation29_spill] sm:$0xff] }
 0x3cd   :  { %v2854_v5 = vpop.f32.mrf.mxu1  ;;  %v2563_v52 = vadd.f32 %v5782_v33, %v5781_v16 }
 0x3ce   :  { %v3363_v31 = vpack.c.bf16 %v2926_v0, %v2925_v35  ;;  %v2855_v43 = vadd.f32 %v2854_v5, %v2599_v28  ;;  %v5783_v0 = vld [vmem:[#allocation28_spill] sm:$0xff]  ;;  %v5784_v5 = vld [vmem:[#allocation33_spill] sm:$0xff] }
 0x3cf   :  { %v3742_v2 = vpop.f32.mrf.mxu1 }
 0x3d0   :  { %3401 = vst [vmem:[#allocation8 + $0x60] sm:$0xff] %v3363_v31   ;;  %v2927_v7 = vmax.f32 %v2855_v43, 0.0  ;;  %v2564_v31 = vadd.f32 %v5784_v5, %v5783_v0 }
 0x3d1   :  { %v2857_v53 = vpop.f32.mrf.mxu1 }
 0x3d2   :  { %v2858_v54 = vadd.f32 %v2857_v53, %v2600_v26  ;;  %v2607_v53 = vadd.f32 %v5490_v4, %v2563_v52  ;;  %v2608_v9 = vadd.f32 %v5490_v4, %v2564_v31 }
 0x3d3   :  { %v3743_v61 = vpop.f32.mrf.mxu1 }
 0x3d4   :  { %v2928_v22 = vmax.f32 %v2858_v54, 0.0  ;;  %v2565_v54 = vadd.f32 %v5474_v39, %v5785_v19 }
 0x3d5   :  { %v2862_v37 = vpop.f32.mrf.mxu1 }
 0x3d6   :  { %v3368_v25 = vpack.c.bf16 %v2928_v22, %v2927_v7  ;;  %v2863_v62 = vadd.f32 %v2862_v37, %v2601_v45 }
 0x3d7   :  { %v3746_v10 = vpop.f32.mrf.mxu1 }
 0x3d8   :  { %3402 = vst [vmem:[#allocation8 + $0x68] sm:$0xff] %v3368_v25   ;;  %v2929_v50 = vmax.f32 %v2863_v62, 0.0  ;;  %v2566_v25 = vadd.f32 %v2286_v57, %v5485_v30  ;;  %v2609_v62 = vadd.f32 %v5490_v4, %v2565_v54 }
 0x3d9   :  { %v2865_v17 = vpop.f32.mrf.mxu1 }
 0x3da   :  { %v2866_v46 = vadd.f32 %v2865_v17, %v2602_v34  ;;  %v2610_v3 = vadd.f32 %v5490_v4, %v2566_v25 }
 0x3db   :  { %v3747_v11 = vpop.f32.mrf.mxu1 }
 0x3dc   :  { %v2930_v27 = vmax.f32 %v2866_v46, 0.0 }
 0x3dd   :  { %v2870_v56 = vpop.f32.mrf.mxu1 }
 0x3de   :  { %v3373_v48 = vpack.c.bf16 %v2930_v27, %v2929_v50  ;;  %v2871_v1 = vadd.f32 %v2870_v56, %v2603_v8 }
 0x3df   :  { %v3750_v32 = vpop.f32.mrf.mxu1 }
 0x3e0   :  { %3403 = vst [vmem:[#allocation8 + $0x70] sm:$0xff] %v3373_v48   ;;  %v2931_v24 = vmax.f32 %v2871_v1, 0.0 }
 0x3e1   :  { %v2873_v20 = vpop.f32.mrf.mxu1 }
 0x3e2   :  { %v2874_v44 = vadd.f32 %v2873_v20, %v2604_v60 }
 0x3e3   :  { %v3751_v12 = vpop.f32.mrf.mxu1 }
 0x3e4   :  { %v2932_v58 = vmax.f32 %v2874_v44, 0.0 }
 0x3e5   :  { %v2878_v51 = vpop.f32.mrf.mxu1 }
 0x3e6   :  { %v3378_v6 = vpack.c.bf16 %v2932_v58, %v2931_v24  ;;  %v2879_v14 = vadd.f32 %v2878_v51, %v2605_v41 }
 0x3e7   :  { %v3754_v59 = vpop.f32.mrf.mxu1 }
 0x3e8   :  { %3404 = vst [vmem:[#allocation8 + $0x78] sm:$0xff] %v3378_v6   ;;  %v2933_v28 = vmax.f32 %v2879_v14, 0.0 }
 0x3e9   :  { %v2881_v18 = vpop.f32.mrf.mxu1 }
 0x3ea   :  { %v2882_v63 = vadd.f32 %v2881_v18, %v2606_v38 }
 0x3eb   :  { %v3755_v35 = vpop.f32.mrf.mxu1 }
 0x3ec   :  { %v2934_v2 = vmax.f32 %v2882_v63, 0.0 }
 0x3ed   :  { %v2886_v43 = vpop.f32.mrf.mxu1 }
 0x3ee   :  { %v3383_v26 = vpack.c.bf16 %v2934_v2, %v2933_v28  ;;  %v2887_v61 = vadd.f32 %v2886_v43, %v2607_v53 }
 0x3ef   :  { %v3758_v15 = vpop.f32.mrf.mxu1 }
 0x3f0   :  { %3405 = vst [vmem:[#allocation8 + $0x80] sm:$0xff] %v3383_v26   ;;  %v2935_v45 = vmax.f32 %v2887_v61, 0.0 }
 0x3f1   :  { %v2889_v7 = vpop.f32.mrf.mxu1 }
 0x3f2   :  { %v2890_v22 = vadd.f32 %v2889_v7, %v2608_v9 }
 0x3f3   :  { %v3759_v37 = vpop.f32.mrf.mxu1 }
 0x3f4   :  { %v2936_v10 = vmax.f32 %v2890_v22, 0.0 }
 0x3f5   :  { %v2894_v34 = vpop.f32.mrf.mxu1 }
 0x3f6   :  { %v3388_v17 = vpack.c.bf16 %v2936_v10, %v2935_v45  ;;  %v2895_v21 = vadd.f32 %v2894_v34, %v2609_v62 }
 0x3f7   :  { %v3762_v42 = vpop.f32.mrf.mxu1 }
 0x3f8   :  { %3406 = vst [vmem:[#allocation8 + $0x88] sm:$0xff] %v3388_v17   ;;  %v2937_v39 = vmax.f32 %v2895_v21, 0.0 }
 0x3f9   :  { %v2897_v46 = vpop.f32.mrf.mxu1 }
 0x3fa   :  { %v3298_v11 = vpack.c.bf16 %v2937_v39, %v2937_v39  ;;  %v2898_v47 = vadd.f32 %v2897_v46, %v2610_v3 }
 0x3fb   :  { %v3763_v49 = vpop.f32.mrf.mxu1 }
 0x3fc   :  { %3127 = vst [vmem:[#allocation8 + $0x90] sm:$0xf] %v3298_v11  ;;  %v2938_v30 = vmax.f32 %v2898_v47, 0.0 }
 0x3fe   :  { %v3299_v29 = vpack.c.bf16 %v2938_v30, %v2938_v30 }
 0x400   :  { %3128 = vst [vmem:[#allocation8 + $0x94] sm:$0x3] %v3299_v29 }
 0x401   :  { %4320 = shalt.err (!%p4317_p5)
}
 0x402   :  { %s4346_s21 = smov 64   ;;  %s4347_s22 = smov 4  }
 0x403   :  { %3140 = dma.vmem_to_hbm [thread:$0]  %s3135_s19, 2432, %s5610_s4, [#allocation4], %s4346_s21, %s4346_s21, %s4347_s22  }
 0x404   :  { %4333 = dma.done.wait [#allocation4], 2432  }
 0x405   :  { %4334 = vsyncadd [#allocation4], 4294964864 }
 0x406   :  { %3144 = vsyncpa [#allocation3], 1 }
 0x407   :  { %3145 = vsyncpa [#allocation6], 1 }
 0x408   :  { %3146 = vsyncpa [#allocation4], 1 }

</bundles_post_ra>
